<compile_context>
chip_gen: v7x
topology: tpu7x:2x2x1
jax: 0.10.0
libtpu: 0.0.40
codegen_flags: <defaults>
</compile_context>

<pallas_src>
import jax
import jax.numpy as jnp
from jax.experimental import pallas as pl
from jax.experimental.pallas import tpu as pltpu

IMAGE_SIZE = 28
KSIZE = 5
EPS = 1e-5
NEG_INF = -1e30


# --------------------------------------------------------------------------
# Small helpers
# --------------------------------------------------------------------------

def _round_up(v, m):
    return (v + m - 1) // m * m


def _img_block(n, cap=8):
    """Images per grid step: largest divisor of n <= cap that still leaves >= 2
    grid steps (so both v7x TensorCores get work); always falls back to 1, so
    any batch size yields a valid grid (no divisor-hunting pathologies)."""
    upper = min(cap, n // 2) if n >= 2 else 1
    for ib in range(max(upper, 1), 0, -1):
        if n % ib == 0:
            return ib
    return 1


def _heads_batch(n):
    """Padded batch rows + row tile for the heads kernel (>= 2 grid steps)."""
    bp = max(16, _round_up(n, 16))
    if bp <= 256:
        return bp, bp // 2
    bp = _round_up(bp, 256)
    return bp, 128


def bn_fold(gamma, beta, mean, var, eps=EPS):
    scale = gamma / jnp.sqrt(var + eps)
    shift = beta - mean * scale
    return scale, shift


# --------------------------------------------------------------------------
# Pallas kernels
# --------------------------------------------------------------------------

def _conv1_pool_kernel(p_ref, w_ref, s_ref, t_ref, o_ref):
    """Fused conv1: patches(quadrant-ordered) @ w  + BN + ReLU + 2x2 maxpool.

    p_ref: (ib, 4, 144, Kp) bf16 -- dim 1 is the (oh%2, ow%2) pooling quadrant,
           dim 2 is the pooled pixel (oh//2)*12 + (ow//2).
    """
    ib, nq, rows, kp = p_ref.shape
    cout = w_ref.shape[1]
    p = p_ref[...].reshape(ib * nq * rows, kp)
    y = jnp.dot(p, w_ref[...], preferred_element_type=jnp.float32)
    y = jnp.maximum(y * s_ref[...] + t_ref[...], 0.0)            # BN + ReLU (f32)
    y = y.reshape(ib, nq, rows, cout)
    o_ref[...] = jnp.max(y, axis=1).astype(o_ref.dtype)          # 2x2 max-pool


def _conv2_pool_kernel(x_ref, w_ref, s_ref, t_ref, o_ref):
    """Fully fused conv2: in-kernel im2col (25 shifted slices of the VMEM-
    resident activation) -> MXU accumulate -> BN + ReLU -> H-pool.

    x_ref: (ib, 12, 12, 64) bf16, w_ref: (25, 64, Cout) bf16.
    o_ref: (ib, 4, 8, Cout) bf16 (H of the 2x2 pool done; W half done outside).
    """
    ib, h, w, c = x_ref.shape
    oh, ow = h - (KSIZE - 1), w - (KSIZE - 1)                    # 8, 8
    cout = w_ref.shape[-1]
    x = x_ref[...]
    acc = jnp.zeros((ib * oh * ow, cout), jnp.float32)
    for kh in range(KSIZE):
        for kw in range(KSIZE):
            xs = x[:, kh:kh + oh, kw:kw + ow, :].reshape(ib * oh * ow, c)
            acc = acc + jnp.dot(xs, w_ref[kh * KSIZE + kw],
                                preferred_element_type=jnp.float32)
    y = jnp.maximum(acc * s_ref[...] + t_ref[...], 0.0)          # BN + ReLU (f32)
    y = y.reshape(ib, oh // 2, 2, ow, cout)
    o_ref[...] = jnp.max(y, axis=2).astype(o_ref.dtype)          # pool over H pairs


def _heads_kernel(x_ref, w1_ref, s1_ref, t1_ref,
                  w2c_ref, s2c_ref, t2c_ref, w3c_ref, b3c_ref,
                  w2d_ref, b2d_ref, oc_ref, od_ref):
    """Merged class + domain classifier heads (eval-mode BN/Dropout folded)."""
    x = x_ref[...]                                                   # (tb, 800) bf16
    h = jnp.dot(x, w1_ref[...], preferred_element_type=jnp.float32)  # (tb, 256)
    h = jnp.maximum(h * s1_ref[...] + t1_ref[...], 0.0)              # Linear+BN(+Drop)+ReLU
    hc = h[:, :128].astype(jnp.bfloat16)                             # class hidden (100 pad 128)
    hd = h[:, 128:].astype(jnp.bfloat16)                             # domain hidden

    # class branch: Linear -> BN -> ReLU -> Linear -> LogSoftmax (padded logits -1e30)
    zc = jnp.dot(hc, w2c_ref[...], preferred_element_type=jnp.float32)
    zc = jnp.maximum(zc * s2c_ref[...] + t2c_ref[...], 0.0)
    zc = jnp.dot(zc.astype(jnp.bfloat16), w3c_ref[...],
                 preferred_element_type=jnp.float32) + b3c_ref[...]
    zc = zc - jnp.max(zc, axis=1, keepdims=True)
    oc_ref[...] = zc - jnp.log(jnp.sum(jnp.exp(zc), axis=1, keepdims=True))

    # domain branch: Linear -> LogSoftmax
    zd = jnp.dot(hd, w2d_ref[...], preferred_element_type=jnp.float32) + b2d_ref[...]
    zd = zd - jnp.max(zd, axis=1, keepdims=True)
    od_ref[...] = zd - jnp.log(jnp.sum(jnp.exp(zd), axis=1, keepdims=True))


# --------------------------------------------------------------------------
# pallas_call wrappers
# --------------------------------------------------------------------------

def conv1_pool(patches, w, scale, shift):
    """patches: (N, 4, 144, Kp) bf16; w: (Kp, 64) bf16 -> (N, 144, 64) bf16."""
    n, nq, rows, kp = patches.shape
    cout = w.shape[1]
    ib = _img_block(n)
    return pl.pallas_call(
        _conv1_pool_kernel,
        out_shape=jax.ShapeDtypeStruct((n, rows, cout), jnp.bfloat16),
        grid=(n // ib,),
        in_specs=[
            pl.BlockSpec((ib, nq, rows, kp), lambda i: (i, 0, 0, 0)),
            pl.BlockSpec((kp, cout), lambda i: (0, 0)),
            pl.BlockSpec((1, cout), lambda i: (0, 0)),
            pl.BlockSpec((1, cout), lambda i: (0, 0)),
        ],
        out_specs=pl.BlockSpec((ib, rows, cout), lambda i: (i, 0, 0)),
        compiler_params=pltpu.CompilerParams(dimension_semantics=("parallel",)),
    )(patches, w, scale.reshape(1, cout), shift.reshape(1, cout))


def conv2_pool(x, w, scale, shift):
    """x: (N, 12, 12, 64) bf16; w: (25, 64, Cout) bf16 -> (N, 4, 8, Cout) bf16."""
    n, h, wd, c = x.shape
    cout = w.shape[-1]
    oh, ow = h - (KSIZE - 1), wd - (KSIZE - 1)
    ib = _img_block(n)
    return pl.pallas_call(
        _conv2_pool_kernel,
        out_shape=jax.ShapeDtypeStruct((n, oh // 2, ow, cout), jnp.bfloat16),
        grid=(n // ib,),
        in_specs=[
            pl.BlockSpec((ib, h, wd, c), lambda i: (i, 0, 0, 0)),
            pl.BlockSpec((KSIZE * KSIZE, c, cout), lambda i: (0, 0, 0)),
            pl.BlockSpec((1, cout), lambda i: (0, 0)),
            pl.BlockSpec((1, cout), lambda i: (0, 0)),
        ],
        out_specs=pl.BlockSpec((ib, oh // 2, ow, cout), lambda i: (i, 0, 0, 0)),
        compiler_params=pltpu.CompilerParams(dimension_semantics=("parallel",)),
    )(x, w, scale.reshape(1, cout), shift.reshape(1, cout))


def heads(feats, hp):
    (w1, s1, t1, w2c, s2c, t2c, w3c, b3c, w2d, b2d) = hp
    n, d = feats.shape
    bp, tb = _heads_batch(n)
    x = jnp.zeros((bp, d), jnp.bfloat16).at[:n].set(feats.astype(jnp.bfloat16))
    args = (x, w1, s1, t1, w2c, s2c, t2c, w3c, b3c, w2d, b2d)

    def resident(a):                       # weights: constant index map -> stay in VMEM
        nd = a.ndim
        return pl.BlockSpec(a.shape, lambda i, _nd=nd: (0,) * _nd)

    oc, od = pl.pallas_call(
        _heads_kernel,
        out_shape=(jax.ShapeDtypeStruct((bp, 128), jnp.float32),
                   jax.ShapeDtypeStruct((bp, 128), jnp.float32)),
        grid=(bp // tb,),
        in_specs=[pl.BlockSpec((tb, d), lambda i: (i, 0))]
                 + [resident(a) for a in args[1:]],
        out_specs=(pl.BlockSpec((tb, 128), lambda i: (i, 0)),
                   pl.BlockSpec((tb, 128), lambda i: (i, 0))),
        compiler_params=pltpu.CompilerParams(dimension_semantics=("parallel",)),
    )(*args)
    return oc[:n, :10], od[:n, :2]


# --------------------------------------------------------------------------
# Glue (minimal im2col for conv1, parameter setup) in plain JAX
# --------------------------------------------------------------------------

def im2col_pool_quadrants(x_nhwc, k=KSIZE):
    """im2col for conv1 with rows ordered (n, oh%2, ow%2, oh//2, ow//2) so the
    2x2 pool becomes a max over 4 tile-aligned row blocks inside the kernel.
    TODO(synk): conv1 im2col is still materialized by XLA (at minimal K)."""
    n, h, w, c = x_nhwc.shape
    oh, ow = h - k + 1, w - k + 1
    cols = [x_nhwc[:, kh:kh + oh, kw:kw + ow, :]
            for kh in range(k) for kw in range(k)]
    p = jnp.stack(cols, axis=3).reshape(n, oh, ow, k * k * c)
    p = p.reshape(n, oh // 2, 2, ow // 2, 2, k * k * c)
    p = p.transpose(0, 2, 4, 1, 3, 5)                       # (n, 2, 2, oh/2, ow/2, K)
    p = p.reshape(n, 4, (oh // 2) * (ow // 2), k * k * c)
    kc = k * k * c
    kp = _round_up(kc, 8)
    if kp != kc:
        p = jnp.pad(p, ((0, 0), (0, 0), (0, 0), (0, kp - kc)))
    return p.astype(jnp.bfloat16)


def init_params(key):
    ks = jax.random.split(key, 8)

    def lin_w(k, din, dout):
        return jax.random.normal(k, (din, dout), jnp.float32) / jnp.sqrt(float(din))

    def bn_default(c):
        return bn_fold(jnp.ones((c,), jnp.float32), jnp.zeros((c,), jnp.float32),
                       jnp.zeros((c,), jnp.float32), jnp.ones((c,), jnp.float32))

    # ---- conv1: Conv2d(3,64,5) + BN2d(64); kept in (kh,kw,ci,co) form so the
    #      forward pass can fold the 1->3 channel broadcast when cin == 1. ----
    w1 = jax.random.normal(ks[0], (KSIZE, KSIZE, 3, 64), jnp.float32) / jnp.sqrt(75.0)
    b1 = jnp.zeros((64,), jnp.float32)
    s1, t1 = bn_default(64)
    t1 = s1 * b1 + t1                                       # conv bias folded into BN shift

    # ---- conv2: Conv2d(64,50,5) + BN2d(50); NO cin padding, cout padded 50->64 ----
    w2 = jax.random.normal(ks[1], (KSIZE, KSIZE, 64, 50), jnp.float32) / jnp.sqrt(64 * 25.0)
    b2 = jnp.zeros((50,), jnp.float32)
    s2, t2 = bn_default(50)
    t2 = s2 * b2 + t2
    w2k = jnp.zeros((KSIZE * KSIZE, 64, 64), jnp.float32)
    w2k = w2k.at[:, :, :50].set(w2.reshape(KSIZE * KSIZE, 64, 50))
    s2p = jnp.ones((64,), jnp.float32).at[:50].set(s2)
    t2p = jnp.zeros((64,), jnp.float32).at[:50].set(t2)

    # ---- merged classifier heads ----
    w1c = lin_w(ks[2], 800, 100); b1c = jnp.zeros((100,), jnp.float32)
    cs1, ct1 = bn_default(100);   ct1 = cs1 * b1c + ct1
    w2c = lin_w(ks[3], 100, 100); b2c = jnp.zeros((100,), jnp.float32)
    cs2, ct2 = bn_default(100);   ct2 = cs2 * b2c + ct2
    w3c = lin_w(ks[4], 100, 10);  b3c = jnp.zeros((10,), jnp.float32)

    w1d = lin_w(ks[5], 800, 100); b1d = jnp.zeros((100,), jnp.float32)
    ds1, dt1 = bn_default(100);   dt1 = ds1 * b1d + dt1
    w2d = lin_w(ks[6], 100, 2);   b2d = jnp.zeros((2,), jnp.float32)

    # first layer of both heads fused into a single (800, 256) matmul
    w1h = jnp.zeros((800, 256), jnp.float32).at[:, :100].set(w1c).at[:, 128:228].set(w1d)
    s1h = jnp.ones((256,), jnp.float32).at[:100].set(cs1).at[128:228].set(ds1)
    t1h = jnp.zeros((256,), jnp.float32).at[:100].set(ct1).at[128:228].set(dt1)

    w2cp = jnp.zeros((128, 128), jnp.float32).at[:100, :100].set(w2c)
    s2cp = jnp.ones((128,), jnp.float32).at[:100].set(cs2)
    t2cp = jnp.zeros((128,), jnp.float32).at[:100].set(ct2)
    w3cp = jnp.zeros((128, 128), jnp.float32).at[:100, :10].set(w3c)
    b3cp = jnp.full((128,), NEG_INF, jnp.float32).at[:10].set(b3c)   # padded logits -> -inf-ish (f32)

    w2dp = jnp.zeros((128, 128), jnp.float32).at[:100, :2].set(w2d)
    b2dp = jnp.full((128,), NEG_INF, jnp.float32).at[:2].set(b2d)

    heads_p = (w1h.astype(jnp.bfloat16), s1h.reshape(1, 256), t1h.reshape(1, 256),
               w2cp.astype(jnp.bfloat16), s2cp.reshape(1, 128), t2cp.reshape(1, 128),
               w3cp.astype(jnp.bfloat16), b3cp.reshape(1, 128),
               w2dp.astype(jnp.bfloat16), b2dp.reshape(1, 128))

    return {"w1": w1, "s1": s1, "t1": t1,
            "w2": w2k.astype(jnp.bfloat16), "s2": s2p, "t2": t2p,
            "heads": heads_p}


def dann_forward(x, params, grl_lambda=1.0):
    # x: (N, C, 28, 28) NCHW like PyTorch (C == 1 or 3)
    n, cin = x.shape[0], x.shape[1]
    x_nhwc = jnp.transpose(x.astype(jnp.float32), (0, 2, 3, 1))

    # conv1 weight: fold the 1->3 broadcast (w.[x,x,x] == (sum_ci w).x) for
    # grayscale inputs -> K = 25 (padded to 32) and no input replication.
    w1 = params["w1"]
    if cin == 1:
        w1 = jnp.sum(w1, axis=2, keepdims=True)             # (5,5,1,64)
    elif cin != 3:
        raise ValueError("DANN expects 1 or 3 input channels")
    kc = KSIZE * KSIZE * w1.shape[2]
    kp = _round_up(kc, 8)
    w1m = w1.reshape(kc, 64)
    if kp != kc:
        w1m = jnp.pad(w1m, ((0, kp - kc), (0, 0)))
    w1m = w1m.astype(jnp.bfloat16)

    # Stage 1: Conv2d(cin,64,5) + BN + ReLU + MaxPool2d(2), fully fused epilogue
    p1 = im2col_pool_quadrants(x_nhwc, KSIZE)               # (N, 4, 144, Kp)
    y1 = conv1_pool(p1, w1m, params["s1"], params["t1"])    # (N, 144, 64)
    y1 = y1.reshape(n, 12, 12, 64)

    # Stage 2: Conv2d(64,50,5) + BN + ReLU + pool -- im2col fused in-kernel
    y2 = conv2_pool(y1, params["w2"], params["s2"], params["t2"])   # (N, 4, 8, 64)
    # W-half of the 2x2 pool on the tiny H-pooled map (2 KB/image of XLA glue)
    y2 = jnp.maximum(y2[:, :, 0::2, :], y2[:, :, 1::2, :])          # (N, 4, 4, 64)
    # Dropout2d: identity in eval mode.

    # flatten in PyTorch NCHW order: view(-1, 50*4*4); drop channel padding
    feats = jnp.transpose(y2[..., :50], (0, 3, 1, 2)).reshape(n, 50 * 4 * 4)
    # GradientReversalFunction is identity in the forward pass; both heads share feats.
    class_pred, domain_pred = heads(feats, params["heads"])
    return class_pred, domain_pred


if __name__ == "__main__":
    key = jax.random.PRNGKey(0)
    kx, kparam = jax.random.split(key)
    x = jax.random.normal(kx, (2, 1, IMAGE_SIZE, IMAGE_SIZE), jnp.float32)
    params = init_params(kparam)

    class_pred, domain_pred = jax.jit(dann_forward)(x, params)
    jax.block_until_ready((class_pred, domain_pred))

    assert class_pred.shape == (2, 10) and domain_pred.shape == (2, 2)
    assert bool(jnp.all(jnp.isfinite(class_pred))) and bool(jnp.all(jnp.isfinite(domain_pred)))
    print("KERNEL_OK")
</pallas_src>

<mosaic_0001>
module attributes {stable_mosaic.version = 11 : i64} {
  func.func @_conv1_pool_kernel(%arg0: i32, %arg1: memref<1x4x144x32xbf16, #tpu.memory_space<vmem>>, %arg2: memref<32x64xbf16, #tpu.memory_space<vmem>>, %arg3: memref<1x64xf32, #tpu.memory_space<vmem>>, %arg4: memref<1x64xf32, #tpu.memory_space<vmem>>, %arg5: memref<1x144x64xbf16, #tpu.memory_space<vmem>>) attributes {dimension_semantics = [#tpu.dimension_semantics<parallel>], iteration_bounds = array<i64: 2>, scalar_prefetch = 0 : i64, scratch_operands = 0 : i64, tpu.core_type = #tpu.core_type<tc>, window_params = [{transform_indices = @transform_0, window_bounds = array<i64: 1, 4, 144, 32>}, {pipeline_mode = #tpu.pipeline_mode<synchronous>, transform_indices = @transform_1, window_bounds = array<i64: 32, 64>}, {pipeline_mode = #tpu.pipeline_mode<synchronous>, transform_indices = @transform_2, window_bounds = array<i64: 1, 64>}, {pipeline_mode = #tpu.pipeline_mode<synchronous>, transform_indices = @transform_3, window_bounds = array<i64: 1, 64>}, {transform_indices = @transform_4, window_bounds = array<i64: 1, 144, 64>}]} {
    %c0 = arith.constant 0 : index
    %c0_0 = arith.constant 0 : index
    %c0_1 = arith.constant 0 : index
    %c0_2 = arith.constant 0 : index
    %0 = vector.load %arg1[%c0, %c0_0, %c0_1, %c0_2] : memref<1x4x144x32xbf16, #tpu.memory_space<vmem>>, vector<1x4x144x32xbf16>
    %1 = vector.shape_cast %0 : vector<1x4x144x32xbf16> to vector<576x32xbf16>
    %c0_3 = arith.constant 0 : index
    %c0_4 = arith.constant 0 : index
    %2 = vector.load %arg2[%c0_3, %c0_4] : memref<32x64xbf16, #tpu.memory_space<vmem>>, vector<32x64xbf16>
    %cst = arith.constant dense<0.000000e+00> : vector<576x64xf32>
    %3 = tpu.matmul %1, %2, %cst {dimension_numbers = #tpu.dot_dimension_numbers<[1], [0], [0], [1], [0, 0, 1, 1], [], []>} : vector<576x32xbf16>, vector<32x64xbf16>, vector<576x64xf32> -> vector<576x64xf32>
    %c0_5 = arith.constant 0 : index
    %c0_6 = arith.constant 0 : index
    %4 = vector.load %arg3[%c0_5, %c0_6] : memref<1x64xf32, #tpu.memory_space<vmem>>, vector<1x64xf32>
    %5 = vector.broadcast %4 : vector<1x64xf32> to vector<576x64xf32>
    %6 = arith.mulf %3, %5 : vector<576x64xf32>
    %c0_7 = arith.constant 0 : index
    %c0_8 = arith.constant 0 : index
    %7 = vector.load %arg4[%c0_7, %c0_8] : memref<1x64xf32, #tpu.memory_space<vmem>>, vector<1x64xf32>
    %8 = vector.broadcast %7 : vector<1x64xf32> to vector<576x64xf32>
    %9 = arith.addf %6, %8 : vector<576x64xf32>
    %cst_9 = arith.constant 0.000000e+00 : f32
    %10 = vector.broadcast %cst_9 : f32 to vector<576x64xf32>
    %11 = arith.maximumf %9, %10 : vector<576x64xf32>
    %12 = vector.shape_cast %11 : vector<576x64xf32> to vector<1x4x144x64xf32>
    %cst_10 = arith.constant dense<0xFF800000> : vector<1x144x64xf32>
    %13 = vector.multi_reduction <maximumf>, %12, %cst_10 [1] : vector<1x4x144x64xf32> to vector<1x144x64xf32>
    %14 = arith.truncf %13 : vector<1x144x64xf32> to vector<1x144x64xbf16>
    %c0_11 = arith.constant 0 : index
    %c0_12 = arith.constant 0 : index
    %c0_13 = arith.constant 0 : index
    %15 = vector.load %arg5[%c0_11, %c0_12, %c0_13] : memref<1x144x64xbf16, #tpu.memory_space<vmem>>, vector<1x144x64xbf16>
    tpu.vector_store %arg5[%c0_11, %c0_12, %c0_13], %14 {strides = array<i32>} : memref<1x144x64xbf16, #tpu.memory_space<vmem>>, vector<1x144x64xbf16>,
    return
  }
  func.func @transform_0(%arg0: i32) -> (i32, i32, i32, i32) {
    %c0_i32 = arith.constant 0 : i32
    %c0_i32_0 = arith.constant 0 : i32
    %c0_i32_1 = arith.constant 0 : i32
    %c0_i32_2 = arith.constant 0 : i32
    return %arg0, %c0_i32, %c0_i32_0, %c0_i32_1 : i32, i32, i32, i32
  }
  func.func @transform_1(%arg0: i32) -> (i32, i32) {
    %c0_i32 = arith.constant 0 : i32
    %c0_i32_0 = arith.constant 0 : i32
    %c0_i32_1 = arith.constant 0 : i32
    return %c0_i32, %c0_i32_0 : i32, i32
  }
  func.func @transform_2(%arg0: i32) -> (i32, i32) {
    %c0_i32 = arith.constant 0 : i32
    %c0_i32_0 = arith.constant 0 : i32
    %c0_i32_1 = arith.constant 0 : i32
    return %c0_i32, %c0_i32_0 : i32, i32
  }
  func.func @transform_3(%arg0: i32) -> (i32, i32) {
    %c0_i32 = arith.constant 0 : i32
    %c0_i32_0 = arith.constant 0 : i32
    %c0_i32_1 = arith.constant 0 : i32
    return %c0_i32, %c0_i32_0 : i32, i32
  }
  func.func @transform_4(%arg0: i32) -> (i32, i32, i32) {
    %c0_i32 = arith.constant 0 : i32
    %c0_i32_0 = arith.constant 0 : i32
    %c0_i32_1 = arith.constant 0 : i32
    return %arg0, %c0_i32, %c0_i32_0 : i32, i32, i32
  }
}

module attributes {stable_mosaic.version = 11 : i64} {
  func.func @_conv2_pool_kernel(%arg0: i32, %arg1: memref<1x12x12x64xbf16, #tpu.memory_space<vmem>>, %arg2: memref<25x64x64xbf16, #tpu.memory_space<vmem>>, %arg3: memref<1x64xf32, #tpu.memory_space<vmem>>, %arg4: memref<1x64xf32, #tpu.memory_space<vmem>>, %arg5: memref<1x4x8x64xbf16, #tpu.memory_space<vmem>>) attributes {dimension_semantics = [#tpu.dimension_semantics<parallel>], iteration_bounds = array<i64: 2>, scalar_prefetch = 0 : i64, scratch_operands = 0 : i64, tpu.core_type = #tpu.core_type<tc>, window_params = [{transform_indices = @transform_0, window_bounds = array<i64: 1, 12, 12, 64>}, {pipeline_mode = #tpu.pipeline_mode<synchronous>, transform_indices = @transform_1, window_bounds = array<i64: 25, 64, 64>}, {pipeline_mode = #tpu.pipeline_mode<synchronous>, transform_indices = @transform_2, window_bounds = array<i64: 1, 64>}, {pipeline_mode = #tpu.pipeline_mode<synchronous>, transform_indices = @transform_3, window_bounds = array<i64: 1, 64>}, {transform_indices = @transform_4, window_bounds = array<i64: 1, 4, 8, 64>}]} {
    %c0 = arith.constant 0 : index
    %c0_0 = arith.constant 0 : index
    %c0_1 = arith.constant 0 : index
    %c0_2 = arith.constant 0 : index
    %0 = vector.load %arg1[%c0, %c0_0, %c0_1, %c0_2] : memref<1x12x12x64xbf16, #tpu.memory_space<vmem>>, vector<1x12x12x64xbf16>
    %cst = arith.constant 0.000000e+00 : f32
    %1 = vector.broadcast %cst : f32 to vector<64x64xf32>
    %2 = vector.extract_strided_slice %0 {offsets = [0, 0, 0, 0], sizes = [1, 8, 8, 64], strides = [1, 1, 1, 1]} : vector<1x12x12x64xbf16> to vector<1x8x8x64xbf16>
    %3 = vector.shape_cast %2 : vector<1x8x8x64xbf16> to vector<64x64xbf16>
    %c0_3 = arith.constant 0 : index
    %c0_4 = arith.constant 0 : index
    %c0_5 = arith.constant 0 : index
    %4 = vector.load %arg2[%c0_3, %c0_4, %c0_5] : memref<25x64x64xbf16, #tpu.memory_space<vmem>>, vector<1x64x64xbf16>
    %5 = vector.shape_cast %4 : vector<1x64x64xbf16> to vector<64x64xbf16>
    %cst_6 = arith.constant dense<0.000000e+00> : vector<64x64xf32>
    %6 = tpu.matmul %3, %5, %cst_6 {dimension_numbers = #tpu.dot_dimension_numbers<[1], [0], [0], [1], [0, 0, 1, 1], [], []>} : vector<64x64xbf16>, vector<64x64xbf16>, vector<64x64xf32> -> vector<64x64xf32>
    %7 = arith.addf %1, %6 : vector<64x64xf32>
    %8 = vector.extract_strided_slice %0 {offsets = [0, 0, 1, 0], sizes = [1, 8, 8, 64], strides = [1, 1, 1, 1]} : vector<1x12x12x64xbf16> to vector<1x8x8x64xbf16>
    %9 = vector.shape_cast %8 : vector<1x8x8x64xbf16> to vector<64x64xbf16>
    %c1 = arith.constant 1 : index
    %c0_7 = arith.constant 0 : index
    %c0_8 = arith.constant 0 : index
    %10 = vector.load %arg2[%c1, %c0_7, %c0_8] : memref<25x64x64xbf16, #tpu.memory_space<vmem>>, vector<1x64x64xbf16>
    %11 = vector.shape_cast %10 : vector<1x64x64xbf16> to vector<64x64xbf16>
    %cst_9 = arith.constant dense<0.000000e+00> : vector<64x64xf32>
    %12 = tpu.matmul %9, %11, %cst_9 {dimension_numbers = #tpu.dot_dimension_numbers<[1], [0], [0], [1], [0, 0, 1, 1], [], []>} : vector<64x64xbf16>, vector<64x64xbf16>, vector<64x64xf32> -> vector<64x64xf32>
    %13 = arith.addf %7, %12 : vector<64x64xf32>
    %14 = vector.extract_strided_slice %0 {offsets = [0, 0, 2, 0], sizes = [1, 8, 8, 64], strides = [1, 1, 1, 1]} : vector<1x12x12x64xbf16> to vector<1x8x8x64xbf16>
    %15 = vector.shape_cast %14 : vector<1x8x8x64xbf16> to vector<64x64xbf16>
    %c2 = arith.constant 2 : index
    %c0_10 = arith.constant 0 : index
    %c0_11 = arith.constant 0 : index
    %16 = vector.load %arg2[%c2, %c0_10, %c0_11] : memref<25x64x64xbf16, #tpu.memory_space<vmem>>, vector<1x64x64xbf16>
    %17 = vector.shape_cast %16 : vector<1x64x64xbf16> to vector<64x64xbf16>
    %cst_12 = arith.constant dense<0.000000e+00> : vector<64x64xf32>
    %18 = tpu.matmul %15, %17, %cst_12 {dimension_numbers = #tpu.dot_dimension_numbers<[1], [0], [0], [1], [0, 0, 1, 1], [], []>} : vector<64x64xbf16>, vector<64x64xbf16>, vector<64x64xf32> -> vector<64x64xf32>
    %19 = arith.addf %13, %18 : vector<64x64xf32>
    %20 = vector.extract_strided_slice %0 {offsets = [0, 0, 3, 0], sizes = [1, 8, 8, 64], strides = [1, 1, 1, 1]} : vector<1x12x12x64xbf16> to vector<1x8x8x64xbf16>
    %21 = vector.shape_cast %20 : vector<1x8x8x64xbf16> to vector<64x64xbf16>
    %c3 = arith.constant 3 : index
    %c0_13 = arith.constant 0 : index
    %c0_14 = arith.constant 0 : index
    %22 = vector.load %arg2[%c3, %c0_13, %c0_14] : memref<25x64x64xbf16, #tpu.memory_space<vmem>>, vector<1x64x64xbf16>
    %23 = vector.shape_cast %22 : vector<1x64x64xbf16> to vector<64x64xbf16>
    %cst_15 = arith.constant dense<0.000000e+00> : vector<64x64xf32>
    %24 = tpu.matmul %21, %23, %cst_15 {dimension_numbers = #tpu.dot_dimension_numbers<[1], [0], [0], [1], [0, 0, 1, 1], [], []>} : vector<64x64xbf16>, vector<64x64xbf16>, vector<64x64xf32> -> vector<64x64xf32>
    %25 = arith.addf %19, %24 : vector<64x64xf32>
    %26 = vector.extract_strided_slice %0 {offsets = [0, 0, 4, 0], sizes = [1, 8, 8, 64], strides = [1, 1, 1, 1]} : vector<1x12x12x64xbf16> to vector<1x8x8x64xbf16>
    %27 = vector.shape_cast %26 : vector<1x8x8x64xbf16> to vector<64x64xbf16>
    %c4 = arith.constant 4 : index
    %c0_16 = arith.constant 0 : index
    %c0_17 = arith.constant 0 : index
    %28 = vector.load %arg2[%c4, %c0_16, %c0_17] : memref<25x64x64xbf16, #tpu.memory_space<vmem>>, vector<1x64x64xbf16>
    %29 = vector.shape_cast %28 : vector<1x64x64xbf16> to vector<64x64xbf16>
    %cst_18 = arith.constant dense<0.000000e+00> : vector<64x64xf32>
    %30 = tpu.matmul %27, %29, %cst_18 {dimension_numbers = #tpu.dot_dimension_numbers<[1], [0], [0], [1], [0, 0, 1, 1], [], []>} : vector<64x64xbf16>, vector<64x64xbf16>, vector<64x64xf32> -> vector<64x64xf32>
    %31 = arith.addf %25, %30 : vector<64x64xf32>
    %32 = vector.extract_strided_slice %0 {offsets = [0, 1, 0, 0], sizes = [1, 8, 8, 64], strides = [1, 1, 1, 1]} : vector<1x12x12x64xbf16> to vector<1x8x8x64xbf16>
    %33 = vector.shape_cast %32 : vector<1x8x8x64xbf16> to vector<64x64xbf16>
    %c5 = arith.constant 5 : index
    %c0_19 = arith.constant 0 : index
    %c0_20 = arith.constant 0 : index
    %34 = vector.load %arg2[%c5, %c0_19, %c0_20] : memref<25x64x64xbf16, #tpu.memory_space<vmem>>, vector<1x64x64xbf16>
    %35 = vector.shape_cast %34 : vector<1x64x64xbf16> to vector<64x64xbf16>
    %cst_21 = arith.constant dense<0.000000e+00> : vector<64x64xf32>
    %36 = tpu.matmul %33, %35, %cst_21 {dimension_numbers = #tpu.dot_dimension_numbers<[1], [0], [0], [1], [0, 0, 1, 1], [], []>} : vector<64x64xbf16>, vector<64x64xbf16>, vector<64x64xf32> -> vector<64x64xf32>
    %37 = arith.addf %31, %36 : vector<64x64xf32>
    %38 = vector.extract_strided_slice %0 {offsets = [0, 1, 1, 0], sizes = [1, 8, 8, 64], strides = [1, 1, 1, 1]} : vector<1x12x12x64xbf16> to vector<1x8x8x64xbf16>
    %39 = vector.shape_cast %38 : vector<1x8x8x64xbf16> to vector<64x64xbf16>
    %c6 = arith.constant 6 : index
    %c0_22 = arith.constant 0 : index
    %c0_23 = arith.constant 0 : index
    %40 = vector.load %arg2[%c6, %c0_22, %c0_23] : memref<25x64x64xbf16, #tpu.memory_space<vmem>>, vector<1x64x64xbf16>
    %41 = vector.shape_cast %40 : vector<1x64x64xbf16> to vector<64x64xbf16>
    %cst_24 = arith.constant dense<0.000000e+00> : vector<64x64xf32>
    %42 = tpu.matmul %39, %41, %cst_24 {dimension_numbers = #tpu.dot_dimension_numbers<[1], [0], [0], [1], [0, 0, 1, 1], [], []>} : vector<64x64xbf16>, vector<64x64xbf16>, vector<64x64xf32> -> vector<64x64xf32>
    %43 = arith.addf %37, %42 : vector<64x64xf32>
    %44 = vector.extract_strided_slice %0 {offsets = [0, 1, 2, 0], sizes = [1, 8, 8, 64], strides = [1, 1, 1, 1]} : vector<1x12x12x64xbf16> to vector<1x8x8x64xbf16>
    %45 = vector.shape_cast %44 : vector<1x8x8x64xbf16> to vector<64x64xbf16>
    %c7 = arith.constant 7 : index
    %c0_25 = arith.constant 0 : index
    %c0_26 = arith.constant 0 : index
    %46 = vector.load %arg2[%c7, %c0_25, %c0_26] : memref<25x64x64xbf16, #tpu.memory_space<vmem>>, vector<1x64x64xbf16>
    %47 = vector.shape_cast %46 : vector<1x64x64xbf16> to vector<64x64xbf16>
    %cst_27 = arith.constant dense<0.000000e+00> : vector<64x64xf32>
    %48 = tpu.matmul %45, %47, %cst_27 {dimension_numbers = #tpu.dot_dimension_numbers<[1], [0], [0], [1], [0, 0, 1, 1], [], []>} : vector<64x64xbf16>, vector<64x64xbf16>, vector<64x64xf32> -> vector<64x64xf32>
    %49 = arith.addf %43, %48 : vector<64x64xf32>
    %50 = vector.extract_strided_slice %0 {offsets = [0, 1, 3, 0], sizes = [1, 8, 8, 64], strides = [1, 1, 1, 1]} : vector<1x12x12x64xbf16> to vector<1x8x8x64xbf16>
    %51 = vector.shape_cast %50 : vector<1x8x8x64xbf16> to vector<64x64xbf16>
    %c8 = arith.constant 8 : index
    %c0_28 = arith.constant 0 : index
    %c0_29 = arith.constant 0 : index
    %52 = vector.load %arg2[%c8, %c0_28, %c0_29] : memref<25x64x64xbf16, #tpu.memory_space<vmem>>, vector<1x64x64xbf16>
    %53 = vector.shape_cast %52 : vector<1x64x64xbf16> to vector<64x64xbf16>
    %cst_30 = arith.constant dense<0.000000e+00> : vector<64x64xf32>
    %54 = tpu.matmul %51, %53, %cst_30 {dimension_numbers = #tpu.dot_dimension_numbers<[1], [0], [0], [1], [0, 0, 1, 1], [], []>} : vector<64x64xbf16>, vector<64x64xbf16>, vector<64x64xf32> -> vector<64x64xf32>
    %55 = arith.addf %49, %54 : vector<64x64xf32>
    %56 = vector.extract_strided_slice %0 {offsets = [0, 1, 4, 0], sizes = [1, 8, 8, 64], strides = [1, 1, 1, 1]} : vector<1x12x12x64xbf16> to vector<1x8x8x64xbf16>
    %57 = vector.shape_cast %56 : vector<1x8x8x64xbf16> to vector<64x64xbf16>
    %c9 = arith.constant 9 : index
    %c0_31 = arith.constant 0 : index
    %c0_32 = arith.constant 0 : index
    %58 = vector.load %arg2[%c9, %c0_31, %c0_32] : memref<25x64x64xbf16, #tpu.memory_space<vmem>>, vector<1x64x64xbf16>
    %59 = vector.shape_cast %58 : vector<1x64x64xbf16> to vector<64x64xbf16>
    %cst_33 = arith.constant dense<0.000000e+00> : vector<64x64xf32>
    %60 = tpu.matmul %57, %59, %cst_33 {dimension_numbers = #tpu.dot_dimension_numbers<[1], [0], [0], [1], [0, 0, 1, 1], [], []>} : vector<64x64xbf16>, vector<64x64xbf16>, vector<64x64xf32> -> vector<64x64xf32>
    %61 = arith.addf %55, %60 : vector<64x64xf32>
    %62 = vector.extract_strided_slice %0 {offsets = [0, 2, 0, 0], sizes = [1, 8, 8, 64], strides = [1, 1, 1, 1]} : vector<1x12x12x64xbf16> to vector<1x8x8x64xbf16>
    %63 = vector.shape_cast %62 : vector<1x8x8x64xbf16> to vector<64x64xbf16>
    %c10 = arith.constant 10 : index
    %c0_34 = arith.constant 0 : index
    %c0_35 = arith.constant 0 : index
    %64 = vector.load %arg2[%c10, %c0_34, %c0_35] : memref<25x64x64xbf16, #tpu.memory_space<vmem>>, vector<1x64x64xbf16>
    %65 = vector.shape_cast %64 : vector<1x64x64xbf16> to vector<64x64xbf16>
    %cst_36 = arith.constant dense<0.000000e+00> : vector<64x64xf32>
    %66 = tpu.matmul %63, %65, %cst_36 {dimension_numbers = #tpu.dot_dimension_numbers<[1], [0], [0], [1], [0, 0, 1, 1], [], []>} : vector<64x64xbf16>, vector<64x64xbf16>, vector<64x64xf32> -> vector<64x64xf32>
    %67 = arith.addf %61, %66 : vector<64x64xf32>
    %68 = vector.extract_strided_slice %0 {offsets = [0, 2, 1, 0], sizes = [1, 8, 8, 64], strides = [1, 1, 1, 1]} : vector<1x12x12x64xbf16> to vector<1x8x8x64xbf16>
    %69 = vector.shape_cast %68 : vector<1x8x8x64xbf16> to vector<64x64xbf16>
    %c11 = arith.constant 11 : index
    %c0_37 = arith.constant 0 : index
    %c0_38 = arith.constant 0 : index
    %70 = vector.load %arg2[%c11, %c0_37, %c0_38] : memref<25x64x64xbf16, #tpu.memory_space<vmem>>, vector<1x64x64xbf16>
    %71 = vector.shape_cast %70 : vector<1x64x64xbf16> to vector<64x64xbf16>
    %cst_39 = arith.constant dense<0.000000e+00> : vector<64x64xf32>
    %72 = tpu.matmul %69, %71, %cst_39 {dimension_numbers = #tpu.dot_dimension_numbers<[1], [0], [0], [1], [0, 0, 1, 1], [], []>} : vector<64x64xbf16>, vector<64x64xbf16>, vector<64x64xf32> -> vector<64x64xf32>
    %73 = arith.addf %67, %72 : vector<64x64xf32>
    %74 = vector.extract_strided_slice %0 {offsets = [0, 2, 2, 0], sizes = [1, 8, 8, 64], strides = [1, 1, 1, 1]} : vector<1x12x12x64xbf16> to vector<1x8x8x64xbf16>
    %75 = vector.shape_cast %74 : vector<1x8x8x64xbf16> to vector<64x64xbf16>
    %c12 = arith.constant 12 : index
    %c0_40 = arith.constant 0 : index
    %c0_41 = arith.constant 0 : index
    %76 = vector.load %arg2[%c12, %c0_40, %c0_41] : memref<25x64x64xbf16, #tpu.memory_space<vmem>>, vector<1x64x64xbf16>
    %77 = vector.shape_cast %76 : vector<1x64x64xbf16> to vector<64x64xbf16>
    %cst_42 = arith.constant dense<0.000000e+00> : vector<64x64xf32>
    %78 = tpu.matmul %75, %77, %cst_42 {dimension_numbers = #tpu.dot_dimension_numbers<[1], [0], [0], [1], [0, 0, 1, 1], [], []>} : vector<64x64xbf16>, vector<64x64xbf16>, vector<64x64xf32> -> vector<64x64xf32>
    %79 = arith.addf %73, %78 : vector<64x64xf32>
    %80 = vector.extract_strided_slice %0 {offsets = [0, 2, 3, 0], sizes = [1, 8, 8, 64], strides = [1, 1, 1, 1]} : vector<1x12x12x64xbf16> to vector<1x8x8x64xbf16>
    %81 = vector.shape_cast %80 : vector<1x8x8x64xbf16> to vector<64x64xbf16>
    %c13 = arith.constant 13 : index
    %c0_43 = arith.constant 0 : index
    %c0_44 = arith.constant 0 : index
    %82 = vector.load %arg2[%c13, %c0_43, %c0_44] : memref<25x64x64xbf16, #tpu.memory_space<vmem>>, vector<1x64x64xbf16>
    %83 = vector.shape_cast %82 : vector<1x64x64xbf16> to vector<64x64xbf16>
    %cst_45 = arith.constant dense<0.000000e+00> : vector<64x64xf32>
    %84 = tpu.matmul %81, %83, %cst_45 {dimension_numbers = #tpu.dot_dimension_numbers<[1], [0], [0], [1], [0, 0, 1, 1], [], []>} : vector<64x64xbf16>, vector<64x64xbf16>, vector<64x64xf32> -> vector<64x64xf32>
    %85 = arith.addf %79, %84 : vector<64x64xf32>
    %86 = vector.extract_strided_slice %0 {offsets = [0, 2, 4, 0], sizes = [1, 8, 8, 64], strides = [1, 1, 1, 1]} : vector<1x12x12x64xbf16> to vector<1x8x8x64xbf16>
    %87 = vector.shape_cast %86 : vector<1x8x8x64xbf16> to vector<64x64xbf16>
    %c14 = arith.constant 14 : index
    %c0_46 = arith.constant 0 : index
    %c0_47 = arith.constant 0 : index
    %88 = vector.load %arg2[%c14, %c0_46, %c0_47] : memref<25x64x64xbf16, #tpu.memory_space<vmem>>, vector<1x64x64xbf16>
    %89 = vector.shape_cast %88 : vector<1x64x64xbf16> to vector<64x64xbf16>
    %cst_48 = arith.constant dense<0.000000e+00> : vector<64x64xf32>
    %90 = tpu.matmul %87, %89, %cst_48 {dimension_numbers = #tpu.dot_dimension_numbers<[1], [0], [0], [1], [0, 0, 1, 1], [], []>} : vector<64x64xbf16>, vector<64x64xbf16>, vector<64x64xf32> -> vector<64x64xf32>
    %91 = arith.addf %85, %90 : vector<64x64xf32>
    %92 = vector.extract_strided_slice %0 {offsets = [0, 3, 0, 0], sizes = [1, 8, 8, 64], strides = [1, 1, 1, 1]} : vector<1x12x12x64xbf16> to vector<1x8x8x64xbf16>
    %93 = vector.shape_cast %92 : vector<1x8x8x64xbf16> to vector<64x64xbf16>
    %c15 = arith.constant 15 : index
    %c0_49 = arith.constant 0 : index
    %c0_50 = arith.constant 0 : index
    %94 = vector.load %arg2[%c15, %c0_49, %c0_50] : memref<25x64x64xbf16, #tpu.memory_space<vmem>>, vector<1x64x64xbf16>
    %95 = vector.shape_cast %94 : vector<1x64x64xbf16> to vector<64x64xbf16>
    %cst_51 = arith.constant dense<0.000000e+00> : vector<64x64xf32>
    %96 = tpu.matmul %93, %95, %cst_51 {dimension_numbers = #tpu.dot_dimension_numbers<[1], [0], [0], [1], [0, 0, 1, 1], [], []>} : vector<64x64xbf16>, vector<64x64xbf16>, vector<64x64xf32> -> vector<64x64xf32>
    %97 = arith.addf %91, %96 : vector<64x64xf32>
    %98 = vector.extract_strided_slice %0 {offsets = [0, 3, 1, 0], sizes = [1, 8, 8, 64], strides = [1, 1, 1, 1]} : vector<1x12x12x64xbf16> to vector<1x8x8x64xbf16>
    %99 = vector.shape_cast %98 : vector<1x8x8x64xbf16> to vector<64x64xbf16>
    %c16 = arith.constant 16 : index
    %c0_52 = arith.constant 0 : index
    %c0_53 = arith.constant 0 : index
    %100 = vector.load %arg2[%c16, %c0_52, %c0_53] : memref<25x64x64xbf16, #tpu.memory_space<vmem>>, vector<1x64x64xbf16>
    %101 = vector.shape_cast %100 : vector<1x64x64xbf16> to vector<64x64xbf16>
    %cst_54 = arith.constant dense<0.000000e+00> : vector<64x64xf32>
    %102 = tpu.matmul %99, %101, %cst_54 {dimension_numbers = #tpu.dot_dimension_numbers<[1], [0], [0], [1], [0, 0, 1, 1], [], []>} : vector<64x64xbf16>, vector<64x64xbf16>, vector<64x64xf32> -> vector<64x64xf32>
    %103 = arith.addf %97, %102 : vector<64x64xf32>
    %104 = vector.extract_strided_slice %0 {offsets = [0, 3, 2, 0], sizes = [1, 8, 8, 64], strides = [1, 1, 1, 1]} : vector<1x12x12x64xbf16> to vector<1x8x8x64xbf16>
    %105 = vector.shape_cast %104 : vector<1x8x8x64xbf16> to vector<64x64xbf16>
    %c17 = arith.constant 17 : index
    %c0_55 = arith.constant 0 : index
    %c0_56 = arith.constant 0 : index
    %106 = vector.load %arg2[%c17, %c0_55, %c0_56] : memref<25x64x64xbf16, #tpu.memory_space<vmem>>, vector<1x64x64xbf16>
    %107 = vector.shape_cast %106 : vector<1x64x64xbf16> to vector<64x64xbf16>
    %cst_57 = arith.constant dense<0.000000e+00> : vector<64x64xf32>
    %108 = tpu.matmul %105, %107, %cst_57 {dimension_numbers = #tpu.dot_dimension_numbers<[1], [0], [0], [1], [0, 0, 1, 1], [], []>} : vector<64x64xbf16>, vector<64x64xbf16>, vector<64x64xf32> -> vector<64x64xf32>
    %109 = arith.addf %103, %108 : vector<64x64xf32>
    %110 = vector.extract_strided_slice %0 {offsets = [0, 3, 3, 0], sizes = [1, 8, 8, 64], strides = [1, 1, 1, 1]} : vector<1x12x12x64xbf16> to vector<1x8x8x64xbf16>
    %111 = vector.shape_cast %110 : vector<1x8x8x64xbf16> to vector<64x64xbf16>
    %c18 = arith.constant 18 : index
    %c0_58 = arith.constant 0 : index
    %c0_59 = arith.constant 0 : index
    %112 = vector.load %arg2[%c18, %c0_58, %c0_59] : memref<25x64x64xbf16, #tpu.memory_space<vmem>>, vector<1x64x64xbf16>
    %113 = vector.shape_cast %112 : vector<1x64x64xbf16> to vector<64x64xbf16>
    %cst_60 = arith.constant dense<0.000000e+00> : vector<64x64xf32>
    %114 = tpu.matmul %111, %113, %cst_60 {dimension_numbers = #tpu.dot_dimension_numbers<[1], [0], [0], [1], [0, 0, 1, 1], [], []>} : vector<64x64xbf16>, vector<64x64xbf16>, vector<64x64xf32> -> vector<64x64xf32>
    %115 = arith.addf %109, %114 : vector<64x64xf32>
    %116 = vector.extract_strided_slice %0 {offsets = [0, 3, 4, 0], sizes = [1, 8, 8, 64], strides = [1, 1, 1, 1]} : vector<1x12x12x64xbf16> to vector<1x8x8x64xbf16>
    %117 = vector.shape_cast %116 : vector<1x8x8x64xbf16> to vector<64x64xbf16>
    %c19 = arith.constant 19 : index
    %c0_61 = arith.constant 0 : index
    %c0_62 = arith.constant 0 : index
    %118 = vector.load %arg2[%c19, %c0_61, %c0_62] : memref<25x64x64xbf16, #tpu.memory_space<vmem>>, vector<1x64x64xbf16>
    %119 = vector.shape_cast %118 : vector<1x64x64xbf16> to vector<64x64xbf16>
    %cst_63 = arith.constant dense<0.000000e+00> : vector<64x64xf32>
    %120 = tpu.matmul %117, %119, %cst_63 {dimension_numbers = #tpu.dot_dimension_numbers<[1], [0], [0], [1], [0, 0, 1, 1], [], []>} : vector<64x64xbf16>, vector<64x64xbf16>, vector<64x64xf32> -> vector<64x64xf32>
    %121 = arith.addf %115, %120 : vector<64x64xf32>
    %122 = vector.extract_strided_slice %0 {offsets = [0, 4, 0, 0], sizes = [1, 8, 8, 64], strides = [1, 1, 1, 1]} : vector<1x12x12x64xbf16> to vector<1x8x8x64xbf16>
    %123 = vector.shape_cast %122 : vector<1x8x8x64xbf16> to vector<64x64xbf16>
    %c20 = arith.constant 20 : index
    %c0_64 = arith.constant 0 : index
    %c0_65 = arith.constant 0 : index
    %124 = vector.load %arg2[%c20, %c0_64, %c0_65] : memref<25x64x64xbf16, #tpu.memory_space<vmem>>, vector<1x64x64xbf16>
    %125 = vector.shape_cast %124 : vector<1x64x64xbf16> to vector<64x64xbf16>
    %cst_66 = arith.constant dense<0.000000e+00> : vector<64x64xf32>
    %126 = tpu.matmul %123, %125, %cst_66 {dimension_numbers = #tpu.dot_dimension_numbers<[1], [0], [0], [1], [0, 0, 1, 1], [], []>} : vector<64x64xbf16>, vector<64x64xbf16>, vector<64x64xf32> -> vector<64x64xf32>
    %127 = arith.addf %121, %126 : vector<64x64xf32>
    %128 = vector.extract_strided_slice %0 {offsets = [0, 4, 1, 0], sizes = [1, 8, 8, 64], strides = [1, 1, 1, 1]} : vector<1x12x12x64xbf16> to vector<1x8x8x64xbf16>
    %129 = vector.shape_cast %128 : vector<1x8x8x64xbf16> to vector<64x64xbf16>
    %c21 = arith.constant 21 : index
    %c0_67 = arith.constant 0 : index
    %c0_68 = arith.constant 0 : index
    %130 = vector.load %arg2[%c21, %c0_67, %c0_68] : memref<25x64x64xbf16, #tpu.memory_space<vmem>>, vector<1x64x64xbf16>
    %131 = vector.shape_cast %130 : vector<1x64x64xbf16> to vector<64x64xbf16>
    %cst_69 = arith.constant dense<0.000000e+00> : vector<64x64xf32>
    %132 = tpu.matmul %129, %131, %cst_69 {dimension_numbers = #tpu.dot_dimension_numbers<[1], [0], [0], [1], [0, 0, 1, 1], [], []>} : vector<64x64xbf16>, vector<64x64xbf16>, vector<64x64xf32> -> vector<64x64xf32>
    %133 = arith.addf %127, %132 : vector<64x64xf32>
    %134 = vector.extract_strided_slice %0 {offsets = [0, 4, 2, 0], sizes = [1, 8, 8, 64], strides = [1, 1, 1, 1]} : vector<1x12x12x64xbf16> to vector<1x8x8x64xbf16>
    %135 = vector.shape_cast %134 : vector<1x8x8x64xbf16> to vector<64x64xbf16>
    %c22 = arith.constant 22 : index
    %c0_70 = arith.constant 0 : index
    %c0_71 = arith.constant 0 : index
    %136 = vector.load %arg2[%c22, %c0_70, %c0_71] : memref<25x64x64xbf16, #tpu.memory_space<vmem>>, vector<1x64x64xbf16>
    %137 = vector.shape_cast %136 : vector<1x64x64xbf16> to vector<64x64xbf16>
    %cst_72 = arith.constant dense<0.000000e+00> : vector<64x64xf32>
    %138 = tpu.matmul %135, %137, %cst_72 {dimension_numbers = #tpu.dot_dimension_numbers<[1], [0], [0], [1], [0, 0, 1, 1], [], []>} : vector<64x64xbf16>, vector<64x64xbf16>, vector<64x64xf32> -> vector<64x64xf32>
    %139 = arith.addf %133, %138 : vector<64x64xf32>
    %140 = vector.extract_strided_slice %0 {offsets = [0, 4, 3, 0], sizes = [1, 8, 8, 64], strides = [1, 1, 1, 1]} : vector<1x12x12x64xbf16> to vector<1x8x8x64xbf16>
    %141 = vector.shape_cast %140 : vector<1x8x8x64xbf16> to vector<64x64xbf16>
    %c23 = arith.constant 23 : index
    %c0_73 = arith.constant 0 : index
    %c0_74 = arith.constant 0 : index
    %142 = vector.load %arg2[%c23, %c0_73, %c0_74] : memref<25x64x64xbf16, #tpu.memory_space<vmem>>, vector<1x64x64xbf16>
    %143 = vector.shape_cast %142 : vector<1x64x64xbf16> to vector<64x64xbf16>
    %cst_75 = arith.constant dense<0.000000e+00> : vector<64x64xf32>
    %144 = tpu.matmul %141, %143, %cst_75 {dimension_numbers = #tpu.dot_dimension_numbers<[1], [0], [0], [1], [0, 0, 1, 1], [], []>} : vector<64x64xbf16>, vector<64x64xbf16>, vector<64x64xf32> -> vector<64x64xf32>
    %145 = arith.addf %139, %144 : vector<64x64xf32>
    %146 = vector.extract_strided_slice %0 {offsets = [0, 4, 4, 0], sizes = [1, 8, 8, 64], strides = [1, 1, 1, 1]} : vector<1x12x12x64xbf16> to vector<1x8x8x64xbf16>
    %147 = vector.shape_cast %146 : vector<1x8x8x64xbf16> to vector<64x64xbf16>
    %c24 = arith.constant 24 : index
    %c0_76 = arith.constant 0 : index
    %c0_77 = arith.constant 0 : index
    %148 = vector.load %arg2[%c24, %c0_76, %c0_77] : memref<25x64x64xbf16, #tpu.memory_space<vmem>>, vector<1x64x64xbf16>
    %149 = vector.shape_cast %148 : vector<1x64x64xbf16> to vector<64x64xbf16>
    %cst_78 = arith.constant dense<0.000000e+00> : vector<64x64xf32>
    %150 = tpu.matmul %147, %149, %cst_78 {dimension_numbers = #tpu.dot_dimension_numbers<[1], [0], [0], [1], [0, 0, 1, 1], [], []>} : vector<64x64xbf16>, vector<64x64xbf16>, vector<64x64xf32> -> vector<64x64xf32>
    %151 = arith.addf %145, %150 : vector<64x64xf32>
    %c0_79 = arith.constant 0 : index
    %c0_80 = arith.constant 0 : index
    %152 = vector.load %arg3[%c0_79, %c0_80] : memref<1x64xf32, #tpu.memory_space<vmem>>, vector<1x64xf32>
    %153 = vector.broadcast %152 : vector<1x64xf32> to vector<64x64xf32>
    %154 = arith.mulf %151, %153 : vector<64x64xf32>
    %c0_81 = arith.constant 0 : index
    %c0_82 = arith.constant 0 : index
    %155 = vector.load %arg4[%c0_81, %c0_82] : memref<1x64xf32, #tpu.memory_space<vmem>>, vector<1x64xf32>
    %156 = vector.broadcast %155 : vector<1x64xf32> to vector<64x64xf32>
    %157 = arith.addf %154, %156 : vector<64x64xf32>
    %cst_83 = arith.constant 0.000000e+00 : f32
    %158 = vector.broadcast %cst_83 : f32 to vector<64x64xf32>
    %159 = arith.maximumf %157, %158 : vector<64x64xf32>
    %160 = vector.shape_cast %159 : vector<64x64xf32> to vector<1x4x2x8x64xf32>
    %cst_84 = arith.constant dense<0xFF800000> : vector<1x4x8x64xf32>
    %161 = vector.multi_reduction <maximumf>, %160, %cst_84 [2] : vector<1x4x2x8x64xf32> to vector<1x4x8x64xf32>
    %162 = arith.truncf %161 : vector<1x4x8x64xf32> to vector<1x4x8x64xbf16>
    %c0_85 = arith.constant 0 : index
    %c0_86 = arith.constant 0 : index
    %c0_87 = arith.constant 0 : index
    %c0_88 = arith.constant 0 : index
    %163 = vector.load %arg5[%c0_85, %c0_86, %c0_87, %c0_88] : memref<1x4x8x64xbf16, #tpu.memory_space<vmem>>, vector<1x4x8x64xbf16>
    tpu.vector_store %arg5[%c0_85, %c0_86, %c0_87, %c0_88], %162 {strides = array<i32>} : memref<1x4x8x64xbf16, #tpu.memory_space<vmem>>, vector<1x4x8x64xbf16>,
    return
  }
  func.func @transform_0(%arg0: i32) -> (i32, i32, i32, i32) {
    %c0_i32 = arith.constant 0 : i32
    %c0_i32_0 = arith.constant 0 : i32
    %c0_i32_1 = arith.constant 0 : i32
    %c0_i32_2 = arith.constant 0 : i32
    return %arg0, %c0_i32, %c0_i32_0, %c0_i32_1 : i32, i32, i32, i32
  }
  func.func @transform_1(%arg0: i32) -> (i32, i32, i32) {
    %c0_i32 = arith.constant 0 : i32
    %c0_i32_0 = arith.constant 0 : i32
    %c0_i32_1 = arith.constant 0 : i32
    %c0_i32_2 = arith.constant 0 : i32
    return %c0_i32, %c0_i32_0, %c0_i32_1 : i32, i32, i32
  }
  func.func @transform_2(%arg0: i32) -> (i32, i32) {
    %c0_i32 = arith.constant 0 : i32
    %c0_i32_0 = arith.constant 0 : i32
    %c0_i32_1 = arith.constant 0 : i32
    return %c0_i32, %c0_i32_0 : i32, i32
  }
  func.func @transform_3(%arg0: i32) -> (i32, i32) {
    %c0_i32 = arith.constant 0 : i32
    %c0_i32_0 = arith.constant 0 : i32
    %c0_i32_1 = arith.constant 0 : i32
    return %c0_i32, %c0_i32_0 : i32, i32
  }
  func.func @transform_4(%arg0: i32) -> (i32, i32, i32, i32) {
    %c0_i32 = arith.constant 0 : i32
    %c0_i32_0 = arith.constant 0 : i32
    %c0_i32_1 = arith.constant 0 : i32
    %c0_i32_2 = arith.constant 0 : i32
    return %arg0, %c0_i32, %c0_i32_0, %c0_i32_1 : i32, i32, i32, i32
  }
}

module attributes {stable_mosaic.version = 11 : i64} {
  func.func @_heads_kernel(%arg0: i32, %arg1: memref<8x800xbf16, #tpu.memory_space<vmem>>, %arg2: memref<800x256xbf16, #tpu.memory_space<vmem>>, %arg3: memref<1x256xf32, #tpu.memory_space<vmem>>, %arg4: memref<1x256xf32, #tpu.memory_space<vmem>>, %arg5: memref<128x128xbf16, #tpu.memory_space<vmem>>, %arg6: memref<1x128xf32, #tpu.memory_space<vmem>>, %arg7: memref<1x128xf32, #tpu.memory_space<vmem>>, %arg8: memref<128x128xbf16, #tpu.memory_space<vmem>>, %arg9: memref<1x128xf32, #tpu.memory_space<vmem>>, %arg10: memref<128x128xbf16, #tpu.memory_space<vmem>>, %arg11: memref<1x128xf32, #tpu.memory_space<vmem>>, %arg12: memref<8x128xf32, #tpu.memory_space<vmem>>, %arg13: memref<8x128xf32, #tpu.memory_space<vmem>>) attributes {dimension_semantics = [#tpu.dimension_semantics<parallel>], iteration_bounds = array<i64: 2>, scalar_prefetch = 0 : i64, scratch_operands = 0 : i64, tpu.core_type = #tpu.core_type<tc>, window_params = [{transform_indices = @transform_0, window_bounds = array<i64: 8, 800>}, {pipeline_mode = #tpu.pipeline_mode<synchronous>, transform_indices = @transform_1, window_bounds = array<i64: 800, 256>}, {pipeline_mode = #tpu.pipeline_mode<synchronous>, transform_indices = @transform_2, window_bounds = array<i64: 1, 256>}, {pipeline_mode = #tpu.pipeline_mode<synchronous>, transform_indices = @transform_3, window_bounds = array<i64: 1, 256>}, {pipeline_mode = #tpu.pipeline_mode<synchronous>, transform_indices = @transform_4, window_bounds = array<i64: 128, 128>}, {pipeline_mode = #tpu.pipeline_mode<synchronous>, transform_indices = @transform_5, window_bounds = array<i64: 1, 128>}, {pipeline_mode = #tpu.pipeline_mode<synchronous>, transform_indices = @transform_6, window_bounds = array<i64: 1, 128>}, {pipeline_mode = #tpu.pipeline_mode<synchronous>, transform_indices = @transform_7, window_bounds = array<i64: 128, 128>}, {pipeline_mode = #tpu.pipeline_mode<synchronous>, transform_indices = @transform_8, window_bounds = array<i64: 1, 128>}, {pipeline_mode = #tpu.pipeline_mode<synchronous>, transform_indices = @transform_9, window_bounds = array<i64: 128, 128>}, {pipeline_mode = #tpu.pipeline_mode<synchronous>, transform_indices = @transform_10, window_bounds = array<i64: 1, 128>}, {transform_indices = @transform_11, window_bounds = array<i64: 8, 128>}, {transform_indices = @transform_12, window_bounds = array<i64: 8, 128>}]} {
    %c0 = arith.constant 0 : index
    %c0_0 = arith.constant 0 : index
    %0 = vector.load %arg1[%c0, %c0_0] : memref<8x800xbf16, #tpu.memory_space<vmem>>, vector<8x800xbf16>
    %c0_1 = arith.constant 0 : index
    %c0_2 = arith.constant 0 : index
    %1 = vector.load %arg2[%c0_1, %c0_2] : memref<800x256xbf16, #tpu.memory_space<vmem>>, vector<800x256xbf16>
    %cst = arith.constant dense<0.000000e+00> : vector<8x256xf32>
    %2 = tpu.matmul %0, %1, %cst {dimension_numbers = #tpu.dot_dimension_numbers<[1], [0], [0], [1], [0, 0, 1, 1], [], []>} : vector<8x800xbf16>, vector<800x256xbf16>, vector<8x256xf32> -> vector<8x256xf32>
    %c0_3 = arith.constant 0 : index
    %c0_4 = arith.constant 0 : index
    %3 = vector.load %arg3[%c0_3, %c0_4] : memref<1x256xf32, #tpu.memory_space<vmem>>, vector<1x256xf32>
    %4 = vector.broadcast %3 : vector<1x256xf32> to vector<8x256xf32>
    %5 = arith.mulf %2, %4 : vector<8x256xf32>
    %c0_5 = arith.constant 0 : index
    %c0_6 = arith.constant 0 : index
    %6 = vector.load %arg4[%c0_5, %c0_6] : memref<1x256xf32, #tpu.memory_space<vmem>>, vector<1x256xf32>
    %7 = vector.broadcast %6 : vector<1x256xf32> to vector<8x256xf32>
    %8 = arith.addf %5, %7 : vector<8x256xf32>
    %cst_7 = arith.constant 0.000000e+00 : f32
    %9 = vector.broadcast %cst_7 : f32 to vector<8x256xf32>
    %10 = arith.maximumf %8, %9 : vector<8x256xf32>
    %11 = vector.extract_strided_slice %10 {offsets = [0, 0], sizes = [8, 128], strides = [1, 1]} : vector<8x256xf32> to vector<8x128xf32>
    %12 = arith.truncf %11 : vector<8x128xf32> to vector<8x128xbf16>
    %13 = vector.extract_strided_slice %10 {offsets = [0, 128], sizes = [8, 128], strides = [1, 1]} : vector<8x256xf32> to vector<8x128xf32>
    %14 = arith.truncf %13 : vector<8x128xf32> to vector<8x128xbf16>
    %c0_8 = arith.constant 0 : index
    %c0_9 = arith.constant 0 : index
    %15 = vector.load %arg5[%c0_8, %c0_9] : memref<128x128xbf16, #tpu.memory_space<vmem>>, vector<128x128xbf16>
    %cst_10 = arith.constant dense<0.000000e+00> : vector<8x128xf32>
    %16 = tpu.matmul %12, %15, %cst_10 {dimension_numbers = #tpu.dot_dimension_numbers<[1], [0], [0], [1], [0, 0, 1, 1], [], []>} : vector<8x128xbf16>, vector<128x128xbf16>, vector<8x128xf32> -> vector<8x128xf32>
    %c0_11 = arith.constant 0 : index
    %c0_12 = arith.constant 0 : index
    %17 = vector.load %arg6[%c0_11, %c0_12] : memref<1x128xf32, #tpu.memory_space<vmem>>, vector<1x128xf32>
    %18 = vector.broadcast %17 : vector<1x128xf32> to vector<8x128xf32>
    %19 = arith.mulf %16, %18 : vector<8x128xf32>
    %c0_13 = arith.constant 0 : index
    %c0_14 = arith.constant 0 : index
    %20 = vector.load %arg7[%c0_13, %c0_14] : memref<1x128xf32, #tpu.memory_space<vmem>>, vector<1x128xf32>
    %21 = vector.broadcast %20 : vector<1x128xf32> to vector<8x128xf32>
    %22 = arith.addf %19, %21 : vector<8x128xf32>
    %cst_15 = arith.constant 0.000000e+00 : f32
    %23 = vector.broadcast %cst_15 : f32 to vector<8x128xf32>
    %24 = arith.maximumf %22, %23 : vector<8x128xf32>
    %25 = arith.truncf %24 : vector<8x128xf32> to vector<8x128xbf16>
    %c0_16 = arith.constant 0 : index
    %c0_17 = arith.constant 0 : index
    %26 = vector.load %arg8[%c0_16, %c0_17] : memref<128x128xbf16, #tpu.memory_space<vmem>>, vector<128x128xbf16>
    %cst_18 = arith.constant dense<0.000000e+00> : vector<8x128xf32>
    %27 = tpu.matmul %25, %26, %cst_18 {dimension_numbers = #tpu.dot_dimension_numbers<[1], [0], [0], [1], [0, 0, 1, 1], [], []>} : vector<8x128xbf16>, vector<128x128xbf16>, vector<8x128xf32> -> vector<8x128xf32>
    %c0_19 = arith.constant 0 : index
    %c0_20 = arith.constant 0 : index
    %28 = vector.load %arg9[%c0_19, %c0_20] : memref<1x128xf32, #tpu.memory_space<vmem>>, vector<1x128xf32>
    %29 = vector.broadcast %28 : vector<1x128xf32> to vector<8x128xf32>
    %30 = arith.addf %27, %29 : vector<8x128xf32>
    %cst_21 = arith.constant dense<0xFF800000> : vector<8xf32>
    %31 = vector.multi_reduction <maximumf>, %30, %cst_21 [1] : vector<8x128xf32> to vector<8xf32>
    %32 = vector.shape_cast %31 : vector<8xf32> to vector<8x1xf32>
    %33 = vector.broadcast %32 : vector<8x1xf32> to vector<8x128xf32>
    %34 = arith.subf %30, %33 : vector<8x128xf32>
    %35 = math.exp %34 : vector<8x128xf32>
    %cst_22 = arith.constant dense<0.000000e+00> : vector<8xf32>
    %36 = vector.multi_reduction <add>, %35, %cst_22 [1] : vector<8x128xf32> to vector<8xf32>
    %37 = vector.shape_cast %36 : vector<8xf32> to vector<8x1xf32>
    %38 = math.log %37 : vector<8x1xf32>
    %39 = vector.broadcast %38 : vector<8x1xf32> to vector<8x128xf32>
    %40 = arith.subf %34, %39 : vector<8x128xf32>
    %c0_23 = arith.constant 0 : index
    %c0_24 = arith.constant 0 : index
    %41 = vector.load %arg12[%c0_23, %c0_24] : memref<8x128xf32, #tpu.memory_space<vmem>>, vector<8x128xf32>
    tpu.vector_store %arg12[%c0_23, %c0_24], %40 {strides = array<i32>} : memref<8x128xf32, #tpu.memory_space<vmem>>, vector<8x128xf32>,
    %c0_25 = arith.constant 0 : index
    %c0_26 = arith.constant 0 : index
    %42 = vector.load %arg10[%c0_25, %c0_26] : memref<128x128xbf16, #tpu.memory_space<vmem>>, vector<128x128xbf16>
    %cst_27 = arith.constant dense<0.000000e+00> : vector<8x128xf32>
    %43 = tpu.matmul %14, %42, %cst_27 {dimension_numbers = #tpu.dot_dimension_numbers<[1], [0], [0], [1], [0, 0, 1, 1], [], []>} : vector<8x128xbf16>, vector<128x128xbf16>, vector<8x128xf32> -> vector<8x128xf32>
    %c0_28 = arith.constant 0 : index
    %c0_29 = arith.constant 0 : index
    %44 = vector.load %arg11[%c0_28, %c0_29] : memref<1x128xf32, #tpu.memory_space<vmem>>, vector<1x128xf32>
    %45 = vector.broadcast %44 : vector<1x128xf32> to vector<8x128xf32>
    %46 = arith.addf %43, %45 : vector<8x128xf32>
    %cst_30 = arith.constant dense<0xFF800000> : vector<8xf32>
    %47 = vector.multi_reduction <maximumf>, %46, %cst_30 [1] : vector<8x128xf32> to vector<8xf32>
    %48 = vector.shape_cast %47 : vector<8xf32> to vector<8x1xf32>
    %49 = vector.broadcast %48 : vector<8x1xf32> to vector<8x128xf32>
    %50 = arith.subf %46, %49 : vector<8x128xf32>
    %51 = math.exp %50 : vector<8x128xf32>
    %cst_31 = arith.constant dense<0.000000e+00> : vector<8xf32>
    %52 = vector.multi_reduction <add>, %51, %cst_31 [1] : vector<8x128xf32> to vector<8xf32>
    %53 = vector.shape_cast %52 : vector<8xf32> to vector<8x1xf32>
    %54 = math.log %53 : vector<8x1xf32>
    %55 = vector.broadcast %54 : vector<8x1xf32> to vector<8x128xf32>
    %56 = arith.subf %50, %55 : vector<8x128xf32>
    %c0_32 = arith.constant 0 : index
    %c0_33 = arith.constant 0 : index
    %57 = vector.load %arg13[%c0_32, %c0_33] : memref<8x128xf32, #tpu.memory_space<vmem>>, vector<8x128xf32>
    tpu.vector_store %arg13[%c0_32, %c0_33], %56 {strides = array<i32>} : memref<8x128xf32, #tpu.memory_space<vmem>>, vector<8x128xf32>,
    return
  }
  func.func @transform_0(%arg0: i32) -> (i32, i32) {
    %c0_i32 = arith.constant 0 : i32
    %c0_i32_0 = arith.constant 0 : i32
    return %arg0, %c0_i32 : i32, i32
  }
  func.func @transform_1(%arg0: i32) -> (i32, i32) {
    %c0_i32 = arith.constant 0 : i32
    %c0_i32_0 = arith.constant 0 : i32
    %c0_i32_1 = arith.constant 0 : i32
    return %c0_i32, %c0_i32_0 : i32, i32
  }
  func.func @transform_2(%arg0: i32) -> (i32, i32) {
    %c0_i32 = arith.constant 0 : i32
    %c0_i32_0 = arith.constant 0 : i32
    %c0_i32_1 = arith.constant 0 : i32
    return %c0_i32, %c0_i32_0 : i32, i32
  }
  func.func @transform_3(%arg0: i32) -> (i32, i32) {
    %c0_i32 = arith.constant 0 : i32
    %c0_i32_0 = arith.constant 0 : i32
    %c0_i32_1 = arith.constant 0 : i32
    return %c0_i32, %c0_i32_0 : i32, i32
  }
  func.func @transform_4(%arg0: i32) -> (i32, i32) {
    %c0_i32 = arith.constant 0 : i32
    %c0_i32_0 = arith.constant 0 : i32
    %c0_i32_1 = arith.constant 0 : i32
    return %c0_i32, %c0_i32_0 : i32, i32
  }
  func.func @transform_5(%arg0: i32) -> (i32, i32) {
    %c0_i32 = arith.constant 0 : i32
    %c0_i32_0 = arith.constant 0 : i32
    %c0_i32_1 = arith.constant 0 : i32
    return %c0_i32, %c0_i32_0 : i32, i32
  }
  func.func @transform_6(%arg0: i32) -> (i32, i32) {
    %c0_i32 = arith.constant 0 : i32
    %c0_i32_0 = arith.constant 0 : i32
    %c0_i32_1 = arith.constant 0 : i32
    return %c0_i32, %c0_i32_0 : i32, i32
  }
  func.func @transform_7(%arg0: i32) -> (i32, i32) {
    %c0_i32 = arith.constant 0 : i32
    %c0_i32_0 = arith.constant 0 : i32
    %c0_i32_1 = arith.constant 0 : i32
    return %c0_i32, %c0_i32_0 : i32, i32
  }
  func.func @transform_8(%arg0: i32) -> (i32, i32) {
    %c0_i32 = arith.constant 0 : i32
    %c0_i32_0 = arith.constant 0 : i32
    %c0_i32_1 = arith.constant 0 : i32
    return %c0_i32, %c0_i32_0 : i32, i32
  }
  func.func @transform_9(%arg0: i32) -> (i32, i32) {
    %c0_i32 = arith.constant 0 : i32
    %c0_i32_0 = arith.constant 0 : i32
    %c0_i32_1 = arith.constant 0 : i32
    return %c0_i32, %c0_i32_0 : i32, i32
  }
  func.func @transform_10(%arg0: i32) -> (i32, i32) {
    %c0_i32 = arith.constant 0 : i32
    %c0_i32_0 = arith.constant 0 : i32
    %c0_i32_1 = arith.constant 0 : i32
    return %c0_i32, %c0_i32_0 : i32, i32
  }
  func.func @transform_11(%arg0: i32) -> (i32, i32) {
    %c0_i32 = arith.constant 0 : i32
    %c0_i32_0 = arith.constant 0 : i32
    return %arg0, %c0_i32 : i32, i32
  }
  func.func @transform_12(%arg0: i32) -> (i32, i32) {
    %c0_i32 = arith.constant 0 : i32
    %c0_i32_0 = arith.constant 0 : i32
    return %arg0, %c0_i32 : i32, i32
  }
}

</mosaic_0001>

<bundles_post_ra>
// kernel: dann_forward.3
= control target key start
LH: loop header
LB: loop body
LE: loop exit
PB: predicated region body
PF: predicated region fallthrough
CT: control target
= control target key end

     0   :  { %s1720_s15 = smov 0   ;;  %s2226_s0 = inlined_call_operand.vmem [shape: bf16[2,4,144,32], index: 0, kind: input, shape index: {}]   ;;  %s2227_s1 = inlined_call_operand.vmem [shape: bf16[32,64], index: 1, kind: input, shape index: {}]   ;;  %s2228_s2 = inlined_call_operand.vmem [shape: f32[1,64], index: 2, kind: input, shape index: {}]   ;;  %s2229_s3 = inlined_call_operand.vmem [shape: f32[1,64], index: 3, kind: input, shape index: {}]   ;;  %s2230_s4 = inlined_call_operand.vmem [shape: bf16[2,144,64], index: 4, kind: output, shape index: {}]  }
   0x1 LB: > { %s1400_s16 = sadd.s32 4294967295, %s1693_s15   ;;  %p1404_p0 = scmp.ge.s32.totalorder %s1693_s15, 1  ;;  %s1693_s15 = sphi %s1720_s15, %s14_s15  }
   0x2   : > { %p162_p1 = scmp.lt.s32.totalorder %s1693_s15, 3 }
   0x4   : > { %p163_p2 = pnand %p1404_p0, %p162_p1 }
   0x5   : > { %v1649_v0 = vld [vmem:[%s2227_s1] sm:$0xff] (!%p163_p2)   ;;  %p188_p3 = scmp.lt.s32.totalorder (!%p163_p2), %s1400_s16, 1  ;;  %v1650_v1 = vld [vmem:[%s2227_s1 + $0x8] sm:$0xff] (!%p163_p2)   ;;  %vm467_vm0 = vcmask (!%p163_p2), 261120   ;;  %vm1127_vm1 = vcmask (!%p163_p2), 523264   ;;  %vm1326_vm2 = vcmask (!%p163_p2), 519168  }
   0x6   : > { %166 = sbr.rel (%p163_p2) target bundleno = 329 (0x149), region = 36  ;;  %1559 = vmatprep.subr.bf16.mxu0 (!%p163_p2), %v1649_v0  ;;  %1635 = vmatprep.subr.bf16.mxu1 (!%p163_p2), %v1649_v0  ;;  %v1817_v38 = vld [vmem:[%s2228_s2] ss:$0 sm:$0xff] (!%p163_p2) }
   0x7   : > { %1560 = vmatpush3.bf16.msra.mxu0 (!%p163_p2), %v1649_v0  ;;  %1637 = vmatpush3.bf16.msra.mxu1 (!%p163_p2), %v1649_v0  ;;  %v1822_v40 = vld [vmem:[%s2229_s3] ss:$0 sm:$0xff] (!%p163_p2) }
   0x8   : > { %1561 = vmatprep.subr.bf16.mxu0 (!%p163_p2), %v1650_v1  ;;  %1636 = vmatprep.subr.bf16.mxu1 (!%p163_p2), %v1650_v1 }
   0xb   : > { %1562 = vmatpush3.bf16.msra.mxu0 (!%p163_p2), %v1650_v1  ;;  %1638 = vmatpush3.bf16.msra.mxu1 (!%p163_p2), %v1650_v1 }
   0xd   : > { %s2232_s16 = smov (!%p188_p3, %s1400_s16), 1 }
   0xe   : > { %s1639_s21 = smul.u32 288, %s2232_s16 }
   0xf   : > { %s1640_s29 = smul.u32 72, %s2232_s16 }
  0x10   : > { %s1740_s24 = scalar_lea.vmem %s2226_s0, %s1639_s21 }
  0x11   : > { %v1651_v2 = vld [vmem:[%s1740_s24] sm:$0xff]   ;;  %v1652_v3 = vld [vmem:[%s1740_s24 + $0x8] sm:$0xff]   ;;  %v1653_v4 = vld [vmem:[%s1740_s24 + $0x90] sm:$0xff]   ;;  %s2027_s6 = scalar_lea.vmem %s2230_s4, %s1640_s29 }
  0x12   : > { %1563 = vmatprep.mubr.msk.bf16.mxu0 %vm467_vm0, %v1651_v2  ;;  %v1654_v5 = vld [vmem:[%s1740_s24 + $0x98] sm:$0xff]   ;;  %1599 = vmatprep.mubr.msk.bf16.mxu1 %vm467_vm0, %v1653_v4  ;;  %v1655_v6 = vld [vmem:[%s1740_s24 + $0x10] sm:$0xff]   ;;  %v1657_v7 = vld [vmem:[%s1740_s24 + $0xa0] sm:$0xff]  }
  0x13   : > { %1564 = vmatmul.mubr.msk.bf16.vlgmr.msra.gmra.mrb[0].mxu0 %vm467_vm0, %v1652_v3  ;;  %1600 = vmatmul.mubr.msk.bf16.vlgmr.msra.gmra.mrb[0].mxu1 %vm467_vm0, %v1654_v5  ;;  %v1656_v8 = vld [vmem:[%s1740_s24 + $0x18] sm:$0xff]   ;;  %v1659_v9 = vld [vmem:[%s1740_s24 + $0x20] sm:$0xff]   ;;  %v1658_v10 = vld [vmem:[%s1740_s24 + $0xa8] sm:$0xff]  }
  0x14   : > { %1567 = vmatprep.mubr.msk.bf16.mxu0 %vm467_vm0, %v1655_v6  ;;  %1603 = vmatprep.mubr.msk.bf16.mxu1 %vm467_vm0, %v1657_v7  ;;  %v1661_v11 = vld [vmem:[%s1740_s24 + $0xb0] sm:$0xff]   ;;  %v1660_v12 = vld [vmem:[%s1740_s24 + $0x28] sm:$0xff]   ;;  %v1662_v14 = vld [vmem:[%s1740_s24 + $0xb8] sm:$0xff]  }
  0x15   : > { %v1663_v13 = vld [vmem:[%s1740_s24 + $0x30] sm:$0xff]   ;;  %v1665_v15 = vld [vmem:[%s1740_s24 + $0xc0] sm:$0xff]   ;;  %v1664_v16 = vld [vmem:[%s1740_s24 + $0x38] sm:$0xff]  }
  0x16   : > { %v1667_v17 = vld [vmem:[%s1740_s24 + $0x40] sm:$0xff]   ;;  %v1666_v18 = vld [vmem:[%s1740_s24 + $0xc8] sm:$0xff]   ;;  %v1669_v19 = vld [vmem:[%s1740_s24 + $0xd0] sm:$0xff]  }
  0x17   : > { %v1668_v20 = vld [vmem:[%s1740_s24 + $0x48] sm:$0xff]   ;;  %v1671_v21 = vld [vmem:[%s1740_s24 + $0x50] sm:$0xff]   ;;  %v1670_v22 = vld [vmem:[%s1740_s24 + $0xd8] sm:$0xff]  }
  0x18   : > { %v1673_v23 = vld [vmem:[%s1740_s24 + $0xe0] sm:$0xff]   ;;  %v1672_v24 = vld [vmem:[%s1740_s24 + $0x58] sm:$0xff]   ;;  %v1674_v26 = vld [vmem:[%s1740_s24 + $0xe8] sm:$0xff]  }
  0x19   : > { %v1675_v25 = vld [vmem:[%s1740_s24 + $0x60] sm:$0xff]   ;;  %v1677_v27 = vld [vmem:[%s1740_s24 + $0xf0] sm:$0xff]   ;;  %v1676_v28 = vld [vmem:[%s1740_s24 + $0x68] sm:$0xff]  }
  0x1a   : > { %v1679_v29 = vld [vmem:[%s1740_s24 + $0x70] sm:$0xff]   ;;  %v1678_v30 = vld [vmem:[%s1740_s24 + $0xf8] sm:$0xff]   ;;  %v1681_v31 = vld [vmem:[%s1740_s24 + $0x100] sm:$0xff]  }
  0x1b   : > { %1568 = vmatmul.mubr.msk.bf16.gmra.mrb[4].mxu0 %vm467_vm0, %v1656_v8  ;;  %1604 = vmatmul.mubr.msk.bf16.gmra.mrb[4].mxu1 %vm467_vm0, %v1658_v10  ;;  %v1680_v32 = vld [vmem:[%s1740_s24 + $0x78] sm:$0xff]   ;;  %v1683_v33 = vld [vmem:[%s1740_s24 + $0x80] sm:$0xff]   ;;  %v1682_v34 = vld [vmem:[%s1740_s24 + $0x108] sm:$0xff]  }
  0x1c   : > { %1571 = vmatprep.mubr.msk.bf16.mxu0 %vm467_vm0, %v1659_v9  ;;  %1607 = vmatprep.mubr.msk.bf16.mxu1 %vm467_vm0, %v1661_v11  ;;  %v1685_v35 = vld [vmem:[%s1740_s24 + $0x110] sm:$0xff]   ;;  %v1684_v36 = vld [vmem:[%s1740_s24 + $0x88] sm:$0xff]   ;;  %v1686_v37 = vld [vmem:[%s1740_s24 + $0x118] sm:$0xff]  }
  0x23   : > { %1572 = vmatmul.mubr.msk.bf16.gmra.mrb[8].mxu0 %vm467_vm0, %v1660_v12  ;;  %1608 = vmatmul.mubr.msk.bf16.gmra.mrb[8].mxu1 %vm467_vm0, %v1662_v14 }
  0x24   : > { %1575 = vmatprep.mubr.msk.bf16.mxu0 %vm467_vm0, %v1663_v13  ;;  %1611 = vmatprep.mubr.msk.bf16.mxu1 %vm467_vm0, %v1665_v15 }
  0x2b   : > { %1576 = vmatmul.mubr.msk.bf16.gmra.mrb[12].mxu0 %vm467_vm0, %v1664_v16  ;;  %1612 = vmatmul.mubr.msk.bf16.gmra.mrb[12].mxu1 %vm467_vm0, %v1666_v18 }
  0x2c   : > { %1579 = vmatprep.mubr.msk.bf16.mxu0 %vm467_vm0, %v1667_v17  ;;  %1615 = vmatprep.mubr.msk.bf16.mxu1 %vm467_vm0, %v1669_v19 }
  0x33   : > { %1580 = vmatmul.mubr.msk.bf16.gmra.mrb[16].mxu0 %vm467_vm0, %v1668_v20  ;;  %1616 = vmatmul.mubr.msk.bf16.gmra.mrb[16].mxu1 %vm467_vm0, %v1670_v22 }
  0x34   : > { %1583 = vmatprep.mubr.msk.bf16.mxu0 %vm467_vm0, %v1671_v21  ;;  %1619 = vmatprep.mubr.msk.bf16.mxu1 %vm467_vm0, %v1673_v23 }
  0x3b   : > { %1584 = vmatmul.mubr.msk.bf16.gmra.mrb[20].mxu0 %vm467_vm0, %v1672_v24  ;;  %1620 = vmatmul.mubr.msk.bf16.gmra.mrb[20].mxu1 %vm467_vm0, %v1674_v26 }
  0x3c   : > { %1587 = vmatprep.mubr.msk.bf16.mxu0 %vm467_vm0, %v1675_v25  ;;  %1623 = vmatprep.mubr.msk.bf16.mxu1 %vm467_vm0, %v1677_v27 }
  0x43   : > { %1588 = vmatmul.mubr.msk.bf16.gmra.mrb[24].mxu0 %vm467_vm0, %v1676_v28  ;;  %1624 = vmatmul.mubr.msk.bf16.gmra.mrb[24].mxu1 %vm467_vm0, %v1678_v30 }
  0x44   : > { %1591 = vmatprep.mubr.msk.bf16.mxu0 %vm467_vm0, %v1679_v29  ;;  %1627 = vmatprep.mubr.msk.bf16.mxu1 %vm467_vm0, %v1681_v31 }
  0x4b   : > { %1592 = vmatmul.mubr.msk.bf16.gmra.mrb[28].mxu0 %vm467_vm0, %v1680_v32  ;;  %1628 = vmatmul.mubr.msk.bf16.gmra.mrb[28].mxu1 %vm467_vm0, %v1682_v34 }
  0x4c   : > { %1595 = vmatprep.mubr.msk.bf16.mxu0 %vm467_vm0, %v1683_v33  ;;  %1631 = vmatprep.mubr.msk.bf16.mxu1 %vm467_vm0, %v1685_v35 }
  0x53   : > { %1596 = vmatmul.mubr.msk.bf16.gmra.mrb[32].mxu0 %vm467_vm0, %v1684_v36  ;;  %1632 = vmatmul.mubr.msk.bf16.gmra.mrb[32].mxu1 %vm467_vm0, %v1686_v37 }
  0xe6   : > { %v1565_v39 = vpop.f32.mrb[0].mxu0  ;;  %v1601_v44 = vpop.f32.mrb[0].mxu1 }
  0xe7   : > { %v906_v41 = vmul.f32 %v1565_v39, %v1817_v38  ;;  %v610_v42 = vpop.f32.mrb[1].mxu0  ;;  %v942_v47 = vmul.f32 %v1601_v44, %v1817_v38  ;;  %v754_v49 = vpop.f32.mrb[1].mxu1 }
  0xe8   : > { %v904_v43 = vmul.f32 %v1817_v38, %v610_v42  ;;  %v1566_v45 = vpop.f32.mrb[2].mxu0  ;;  %v940_v52 = vmul.f32 %v1817_v38, %v754_v49  ;;  %v1602_v54 = vpop.f32.mrb[2].mxu1 }
  0xe9   : > { %v985_v46 = vadd.f32 %v1822_v40, %v906_v41  ;;  %v907_v48 = vmul.f32 %v1566_v45, %v1817_v38  ;;  %v613_v50 = vpop.f32.mrb[3].mxu0  ;;  %v1021_v56 = vadd.f32 %v1822_v40, %v942_v47  ;;  %v943_v58 = vmul.f32 %v1602_v54, %v1817_v38  ;;  %v757_v59 = vpop.f32.mrb[3].mxu1 }
  0xea   : > { %v983_v51 = vadd.f32 %v1822_v40, %v904_v43  ;;  %v905_v53 = vmul.f32 %v1817_v38, %v613_v50  ;;  %v1019_v61 = vadd.f32 %v1822_v40, %v940_v52  ;;  %v941_v63 = vmul.f32 %v1817_v38, %v757_v59 }
  0xeb   : > { %v1057_v55 = vmax.f32 %v985_v46, 0.0  ;;  %v986_v57 = vadd.f32 %v1822_v40, %v907_v48  ;;  %v1093_v0 = vmax.f32 %v1021_v56, 0.0  ;;  %v1022_v2 = vadd.f32 %v1822_v40, %v943_v58 }
  0xec   : > { %v1055_v60 = vmax.f32 %v983_v51, 0.0  ;;  %v984_v62 = vadd.f32 %v1822_v40, %v905_v53  ;;  %v1091_v3 = vmax.f32 %v1019_v61, 0.0  ;;  %v1020_v4 = vadd.f32 %v1822_v40, %v941_v63 }
  0xed   : > { %v1058_v1 = vmax.f32 %v986_v57, 0.0  ;;  %v1841_v6 = vsel %vm1127_vm1, %v1057_v55, -inf  ;;  %v1848_v11 = vsel %vm1127_vm1, %v1093_v0, -inf  ;;  %v1094_v13 = vmax.f32 %v1022_v2, 0.0 }
  0xee   : > { %v1569_v5 = vpop.f32.mrb[4].mxu0  ;;  %v1844_v7 = vsel %vm1127_vm1, %v1055_v60, -inf  ;;  %v1056_v8 = vmax.f32 %v984_v62, 0.0  ;;  %v1605_v15 = vpop.f32.mrb[4].mxu1  ;;  %v1855_v17 = vsel %vm1127_vm1, %v1091_v3, -inf  ;;  %v1092_v23 = vmax.f32 %v1020_v4, 0.0 }
  0xef   : > { %v910_v9 = vmul.f32 %v1569_v5, %v1817_v38  ;;  %v626_v10 = vpop.f32.mrb[5].mxu0  ;;  %v1851_v12 = vsel %vm1127_vm1, %v1058_v1, -inf  ;;  %v946_v19 = vmul.f32 %v1605_v15, %v1817_v38  ;;  %v770_v21 = vpop.f32.mrb[5].mxu1  ;;  %v1874_v43 = vsel %vm1127_vm1, %v1094_v13, -inf }
  0xf0   : > { %v908_v14 = vmul.f32 %v1817_v38, %v626_v10  ;;  %v1570_v16 = vpop.f32.mrb[6].mxu0  ;;  %v944_v25 = vmul.f32 %v1817_v38, %v770_v21  ;;  %v1606_v27 = vpop.f32.mrb[6].mxu1  ;;  %v1870_v37 = vsel %vm1127_vm1, %v1056_v8, -inf  ;;  %v1877_v44 = vsel %vm1127_vm1, %v1092_v23, -inf }
  0xf1   : > { %v989_v18 = vadd.f32 %v1822_v40, %v910_v9  ;;  %v911_v20 = vmul.f32 %v1570_v16, %v1817_v38  ;;  %v629_v22 = vpop.f32.mrb[7].mxu0  ;;  %v1025_v29 = vadd.f32 %v1822_v40, %v946_v19  ;;  %v947_v31 = vmul.f32 %v1606_v27, %v1817_v38  ;;  %v773_v32 = vpop.f32.mrb[7].mxu1 }
  0xf2   : > { %v987_v24 = vadd.f32 %v1822_v40, %v908_v14  ;;  %v909_v26 = vmul.f32 %v1817_v38, %v629_v22  ;;  %v1023_v34 = vadd.f32 %v1822_v40, %v944_v25  ;;  %v945_v36 = vmul.f32 %v1817_v38, %v773_v32 }
  0xf3   : > { %v1061_v28 = vmax.f32 %v989_v18, 0.0  ;;  %v990_v30 = vadd.f32 %v1822_v40, %v911_v20  ;;  %v1097_v39 = vmax.f32 %v1025_v29, 0.0  ;;  %v1026_v42 = vadd.f32 %v1822_v40, %v947_v31 }
  0xf4   : > { %v1059_v33 = vmax.f32 %v987_v24, 0.0  ;;  %v988_v35 = vadd.f32 %v1822_v40, %v909_v26  ;;  %v1095_v45 = vmax.f32 %v1023_v34, 0.0  ;;  %v1024_v46 = vadd.f32 %v1822_v40, %v945_v36 }
  0xf5   : > { %v1062_v41 = vmax.f32 %v990_v30, 0.0  ;;  %v1881_v48 = vsel %vm1127_vm1, %v1061_v28, -inf  ;;  %v1888_v53 = vsel %vm1127_vm1, %v1097_v39, -inf  ;;  %v1098_v55 = vmax.f32 %v1026_v42, 0.0 }
  0xf6   : > { %v1573_v47 = vpop.f32.mrb[8].mxu0  ;;  %v1884_v49 = vsel %vm1127_vm1, %v1059_v33, -inf  ;;  %v1060_v50 = vmax.f32 %v988_v35, 0.0  ;;  %v1609_v57 = vpop.f32.mrb[8].mxu1  ;;  %v1895_v59 = vsel %vm1127_vm1, %v1095_v45, -inf  ;;  %v1096_v1 = vmax.f32 %v1024_v46, 0.0 }
  0xf7   : > { %v914_v51 = vmul.f32 %v1573_v47, %v1817_v38  ;;  %v642_v52 = vpop.f32.mrb[9].mxu0  ;;  %v1891_v54 = vsel %vm1127_vm1, %v1062_v41, -inf  ;;  %v950_v61 = vmul.f32 %v1609_v57, %v1817_v38  ;;  %v786_v63 = vpop.f32.mrb[9].mxu1  ;;  %v1914_v24 = vsel %vm1127_vm1, %v1098_v55, -inf }
  0xf8   : > { %v912_v56 = vmul.f32 %v1817_v38, %v642_v52  ;;  %v1574_v58 = vpop.f32.mrb[10].mxu0  ;;  %v948_v3 = vmul.f32 %v1817_v38, %v786_v63  ;;  %v1610_v5 = vpop.f32.mrb[10].mxu1  ;;  %v1910_v20 = vsel %vm1127_vm1, %v1060_v50, -inf  ;;  %v1917_v25 = vsel %vm1127_vm1, %v1096_v1, -inf }
  0xf9   : > { %v993_v60 = vadd.f32 %v1822_v40, %v914_v51  ;;  %v915_v62 = vmul.f32 %v1574_v58, %v1817_v38  ;;  %v645_v0 = vpop.f32.mrb[11].mxu0  ;;  %v1029_v9 = vadd.f32 %v1822_v40, %v950_v61  ;;  %v951_v13 = vmul.f32 %v1610_v5, %v1817_v38  ;;  %v789_v14 = vpop.f32.mrb[11].mxu1 }
  0xfa   : > { %v991_v2 = vadd.f32 %v1822_v40, %v912_v56  ;;  %v913_v4 = vmul.f32 %v1817_v38, %v645_v0  ;;  %v1027_v16 = vadd.f32 %v1822_v40, %v948_v3  ;;  %v949_v19 = vmul.f32 %v1817_v38, %v789_v14 }
  0xfb   : > { %v1065_v8 = vmax.f32 %v993_v60, 0.0  ;;  %v994_v10 = vadd.f32 %v1822_v40, %v915_v62  ;;  %v1101_v21 = vmax.f32 %v1029_v9, 0.0  ;;  %v1030_v23 = vadd.f32 %v1822_v40, %v951_v13 }
  0xfc   : > { %v1063_v15 = vmax.f32 %v991_v2, 0.0  ;;  %v992_v18 = vadd.f32 %v1822_v40, %v913_v4  ;;  %v1099_v26 = vmax.f32 %v1027_v16, 0.0  ;;  %v1028_v27 = vadd.f32 %v1822_v40, %v949_v19 }
  0xfd   : > { %v1066_v22 = vmax.f32 %v994_v10, 0.0  ;;  %v1921_v29 = vsel %vm1127_vm1, %v1065_v8, -inf  ;;  %v1928_v34 = vsel %vm1127_vm1, %v1101_v21, -inf  ;;  %v1102_v36 = vmax.f32 %v1030_v23, 0.0 }
  0xfe   : > { %v1577_v28 = vpop.f32.mrb[12].mxu0  ;;  %v1924_v30 = vsel %vm1127_vm1, %v1063_v15, -inf  ;;  %v1064_v31 = vmax.f32 %v992_v18, 0.0  ;;  %v1613_v41 = vpop.f32.mrb[12].mxu1  ;;  %v1935_v45 = vsel %vm1127_vm1, %v1099_v26, -inf  ;;  %v1100_v55 = vmax.f32 %v1028_v27, 0.0 }
  0xff   : > { %v918_v32 = vmul.f32 %v1577_v28, %v1817_v38  ;;  %v658_v33 = vpop.f32.mrb[13].mxu0  ;;  %v1931_v35 = vsel %vm1127_vm1, %v1066_v22, -inf  ;;  %v954_v47 = vmul.f32 %v1613_v41, %v1817_v38  ;;  %v802_v51 = vpop.f32.mrb[13].mxu1  ;;  %v1955_v9 = vsel %vm1127_vm1, %v1102_v36, -inf }
 0x100   : > { %v916_v39 = vmul.f32 %v1817_v38, %v658_v33  ;;  %v1578_v42 = vpop.f32.mrb[14].mxu0  ;;  %v952_v57 = vmul.f32 %v1817_v38, %v802_v51  ;;  %v1614_v60 = vpop.f32.mrb[14].mxu1  ;;  %v1952_v8 = vsel %vm1127_vm1, %v1064_v31, -inf  ;;  %v1961_v14 = vsel %vm1127_vm1, %v1100_v55, -inf }
 0x101   : > { %v997_v46 = vadd.f32 %v1822_v40, %v918_v32  ;;  %v919_v50 = vmul.f32 %v1578_v42, %v1817_v38  ;;  %v661_v52 = vpop.f32.mrb[15].mxu0  ;;  %v1033_v62 = vadd.f32 %v1822_v40, %v954_v47  ;;  %v955_v0 = vmul.f32 %v1614_v60, %v1817_v38  ;;  %v805_v1 = vpop.f32.mrb[15].mxu1 }
 0x102   : > { %v995_v56 = vadd.f32 %v1822_v40, %v916_v39  ;;  %v917_v58 = vmul.f32 %v1817_v38, %v661_v52  ;;  %v1031_v3 = vadd.f32 %v1822_v40, %v952_v57  ;;  %v953_v5 = vmul.f32 %v1817_v38, %v805_v1 }
 0x103   : > { %v1069_v61 = vmax.f32 %v997_v46, 0.0  ;;  %v1945_v63 = vadd.f32 %v1822_v40, %v919_v50  ;;  %v1105_v10 = vmax.f32 %v1033_v62, 0.0  ;;  %v1958_v13 = vadd.f32 %v1822_v40, %v955_v0 }
 0x104   : > { %v1067_v2 = vmax.f32 %v995_v56, 0.0  ;;  %v996_v4 = vadd.f32 %v1822_v40, %v917_v58  ;;  %v1103_v15 = vmax.f32 %v1031_v3, 0.0  ;;  %v1032_v18 = vadd.f32 %v1822_v40, %v953_v5 }
 0x105   : > { %v1965_v21 = vsel %vm1127_vm1, %v1069_v61, -inf  ;;  %v1070_v23 = vmax.f32 %v1945_v63, 0.0  ;;  %v1973_v28 = vsel %vm1127_vm1, %v1105_v10, -inf  ;;  %v1106_v32 = vmax.f32 %v1958_v13, 0.0 }
 0x106   : > { %v1068_v16 = vmax.f32 %v996_v4, 0.0  ;;  %v1581_v19 = vpop.f32.mrb[16].mxu0  ;;  %v1968_v22 = vsel %vm1127_vm1, %v1067_v2, -inf  ;;  %v1976_v31 = vsel %vm1127_vm1, %v1103_v15, -inf  ;;  %v1617_v36 = vpop.f32.mrb[16].mxu1  ;;  %v1104_v52 = vmax.f32 %v1032_v18, 0.0 }
 0x107   : > { %v922_v26 = vmul.f32 %v1581_v19, %v1817_v38  ;;  %v674_v27 = vpop.f32.mrb[17].mxu0  ;;  %v958_v46 = vmul.f32 %v1617_v36, %v1817_v38  ;;  %v818_v50 = vpop.f32.mrb[17].mxu1 }
 0x108   : > { %v920_v33 = vmul.f32 %v1817_v38, %v674_v27  ;;  %v1582_v39 = vpop.f32.mrb[18].mxu0  ;;  %v1981_v41 = vsel %vm1127_vm1, %v1068_v16, -inf  ;;  %v956_v56 = vmul.f32 %v1817_v38, %v818_v50  ;;  %v1618_v58 = vpop.f32.mrb[18].mxu1  ;;  %v1998_v19 = vsel %vm1127_vm1, %v1104_v52, -inf }
 0x109   : > { %v1001_v42 = vadd.f32 %v1822_v40, %v922_v26  ;;  %v923_v47 = vmul.f32 %v1582_v39, %v1817_v38  ;;  %v677_v51 = vpop.f32.mrb[19].mxu0  ;;  %v1037_v61 = vadd.f32 %v1822_v40, %v958_v46  ;;  %v959_v0 = vmul.f32 %v1618_v58, %v1817_v38  ;;  %v821_v1 = vpop.f32.mrb[19].mxu1 }
 0x10a   : > { %v999_v55 = vadd.f32 %v1822_v40, %v920_v33  ;;  %v921_v57 = vmul.f32 %v1817_v38, %v677_v51  ;;  %v1035_v3 = vadd.f32 %v1822_v40, %v956_v56  ;;  %v957_v5 = vmul.f32 %v1817_v38, %v821_v1 }
 0x10b   : > { %v1073_v60 = vmax.f32 %v1001_v42, 0.0  ;;  %v1002_v62 = vadd.f32 %v1822_v40, %v923_v47  ;;  %v1109_v15 = vmax.f32 %v1037_v61, 0.0  ;;  %v1038_v18 = vadd.f32 %v1822_v40, %v959_v0 }
 0x10c   : > { %v1071_v2 = vmax.f32 %v999_v55, 0.0  ;;  %v1000_v4 = vadd.f32 %v1822_v40, %v921_v57  ;;  %v1107_v27 = vmax.f32 %v1035_v3, 0.0  ;;  %v2005_v47 = vadd.f32 %v1822_v40, %v957_v5 }
 0x10d   : > { %v1129_v10 = vsel %vm1127_vm1, %v1073_v60, -inf  ;;  %v1074_v16 = vmax.f32 %v1002_v62, 0.0  ;;  %v1133_v39 = vsel %vm1127_vm1, %v1109_v15, -inf  ;;  %v1110_v46 = vmax.f32 %v1038_v18, 0.0 }
 0x10e   : > { %v1130_v26 = vmax.f32 %v1844_v7, %v1129_v10  ;;  %v1072_v33 = vmax.f32 %v1000_v4, 0.0  ;;  %v1585_v36 = vpop.f32.mrb[20].mxu0  ;;  %v2008_v51 = vsel %vm1127_vm1, %v1071_v2, -inf  ;;  %v2013_v55 = vsel %vm1127_vm1, %v1107_v27, -inf  ;;  %v1621_v56 = vpop.f32.mrb[20].mxu1 }
 0x10f   : > { %v1136_v42 = vsel %vm1127_vm1, %v1074_v16, -inf  ;;  %v690_v50 = vpop.f32.mrb[21].mxu0  ;;  %v1140_v60 = vsel %vm1127_vm1, %v1110_v46, -inf  ;;  %v926_v61 = vmul.f32 %v1585_v36, %v1817_v38  ;;  %v834_v0 = vpop.f32.mrb[21].mxu1  ;;  %v1108_v5 = vmax.f32 %v2005_v47, 0.0 }
 0x110   : > { %v1132_v52 = vmax.f32 %v1130_v26, %v1855_v17  ;;  %v1137_v7 = vmax.f32 %v1870_v37, %v1136_v42  ;;  %v1586_v57 = vpop.f32.mrb[22].mxu0  ;;  %v2016_v58 = vsel %vm1127_vm1, %v1072_v33, -inf  ;;  %v924_v62 = vmul.f32 %v1817_v38, %v690_v50  ;;  %v1622_v4 = vpop.f32.mrb[22].mxu1 }
 0x111   : > { %v693_v1 = vpop.f32.mrb[23].mxu0  ;;  %v962_v37 = vmul.f32 %v1621_v56, %v1817_v38  ;;  %v927_v3 = vmul.f32 %v1586_v57, %v1817_v38  ;;  %v1005_v10 = vadd.f32 %v1822_v40, %v926_v61  ;;  %v960_v16 = vmul.f32 %v1817_v38, %v834_v0 }
 0x112   : > { %v1134_v2 = vmax.f32 %v1132_v52, %v1133_v39  ;;  %v1139_v17 = vmax.f32 %v1137_v7, %v1877_v44  ;;  %v1003_v15 = vadd.f32 %v1822_v40, %v924_v62  ;;  %v837_v44 = vpop.f32.mrb[23].mxu1  ;;  %v925_v46 = vmul.f32 %v1817_v38, %v693_v1 }
 0x113   : > { %v1041_v27 = vadd.f32 %v1822_v40, %v962_v37  ;;  %v1006_v33 = vadd.f32 %v1822_v40, %v927_v3  ;;  %v1077_v36 = vmax.f32 %v1005_v10, 0.0  ;;  %v1039_v42 = vadd.f32 %v1822_v40, %v960_v16 }
 0x114   : > { %v1503_v18 = vpack.c.bf16 %v1134_v2, %v1134_v2  ;;  %v1141_v26 = vmax.f32 %v1139_v17, %v1140_v60  ;;  %v1075_v39 = vmax.f32 %v1003_v15, 0.0  ;;  %v963_v56 = vmul.f32 %v1622_v4, %v1817_v38 }
 0x115   : > { %v1113_v52 = vmax.f32 %v1041_v27, 0.0  ;;  %v1078_v7 = vmax.f32 %v1006_v33, 0.0  ;;  %v1157_v60 = vsel %vm1127_vm1, %v1077_v36, -inf  ;;  %v1111_v62 = vmax.f32 %v1039_v42, 0.0 }
 0x116   : > { %1327 = vst.msk [vmem:[%s2027_s6] sm:$0xf] %vm1326_vm2, %v1503_v18  ;;  %v1504_v50 = vpack.c.bf16 %v1141_v26, %v1141_v26  ;;  %v1589_v57 = vpop.f32.mrb[24].mxu0  ;;  %v1143_v61 = vsel %vm1127_vm1, %v1075_v39, -inf  ;;  %v1004_v0 = vadd.f32 %v1822_v40, %v925_v46  ;;  %v1158_v1 = vmax.f32 %v1884_v49, %v1157_v60  ;;  %v1625_v4 = vpop.f32.mrb[24].mxu1 }
 0x117   : > { %v706_v2 = vpop.f32.mrb[25].mxu0  ;;  %v1144_v17 = vmax.f32 %v1841_v6, %v1143_v61  ;;  %v1161_v37 = vsel %vm1127_vm1, %v1113_v52, -inf  ;;  %v1164_v3 = vsel %vm1127_vm1, %v1078_v7, -inf  ;;  %v1147_v16 = vsel %vm1127_vm1, %v1111_v62, -inf  ;;  %v850_v27 = vpop.f32.mrb[25].mxu1 }
 0x118   : > { %1328 = vst.msk [vmem:[%s2027_s6 + $0x4] sm:$0xf] %vm1326_vm2, %v1504_v50  ;;  %v1590_v10 = vpop.f32.mrb[26].mxu0  ;;  %v1165_v15 = vmax.f32 %v1910_v20, %v1164_v3  ;;  %v1076_v18 = vmax.f32 %v1004_v0, 0.0  ;;  %v1042_v26 = vadd.f32 %v1822_v40, %v963_v56  ;;  %v1160_v36 = vmax.f32 %v1158_v1, %v1895_v59  ;;  %v1626_v42 = vpop.f32.mrb[26].mxu1 }
 0x119   : > { %v709_v33 = vpop.f32.mrb[27].mxu0  ;;  %v1146_v49 = vmax.f32 %v1144_v17, %v1848_v11  ;;  %v961_v6 = vmul.f32 %v1817_v38, %v837_v44  ;;  %v930_v39 = vmul.f32 %v1589_v57, %v1817_v38  ;;  %v928_v52 = vmul.f32 %v1817_v38, %v706_v2  ;;  %v853_v7 = vpop.f32.mrb[27].mxu1 }
 0x11a   : > { %v1150_v46 = vsel %vm1127_vm1, %v1076_v18, -inf  ;;  %v1114_v50 = vmax.f32 %v1042_v26, 0.0  ;;  %v1167_v20 = vmax.f32 %v1165_v15, %v1917_v25  ;;  %v1162_v56 = vmax.f32 %v1160_v36, %v1161_v37 }
 0x11b   : > { %v1148_v60 = vmax.f32 %v1146_v49, %v1147_v16  ;;  %v1151_v61 = vmax.f32 %v1851_v12, %v1150_v46  ;;  %v1040_v11 = vadd.f32 %v1822_v40, %v961_v6  ;;  %v1009_v44 = vadd.f32 %v1822_v40, %v930_v39 }
 0x11c   : > { %v1168_v59 = vsel %vm1127_vm1, %v1114_v50, -inf  ;;  %v1007_v57 = vadd.f32 %v1822_v40, %v928_v52  ;;  %v966_v62 = vmul.f32 %v1625_v4, %v1817_v38  ;;  %v1507_v25 = vpack.c.bf16 %v1162_v56, %v1162_v56 }
 0x11d   : > { %v1505_v0 = vpack.c.bf16 %v1148_v60, %v1148_v60  ;;  %v1169_v2 = vmax.f32 %v1167_v20, %v1168_v59  ;;  %v1112_v1 = vmax.f32 %v1040_v11, 0.0  ;;  %v1153_v37 = vmax.f32 %v1151_v61, %v1874_v43 }
 0x11e   : > { %v1593_v17 = vpop.f32.mrb[28].mxu0  ;;  %v1081_v12 = vmax.f32 %v1009_v44, 0.0  ;;  %v1079_v3 = vmax.f32 %v1007_v57, 0.0  ;;  %v1045_v15 = vadd.f32 %v1822_v40, %v966_v62  ;;  %1331 = vst.msk [vmem:[%s2027_s6 + $0x10] sm:$0xf] %vm1326_vm2, %v1507_v25  ;;  %v931_v26 = vmul.f32 %v1590_v10, %v1817_v38  ;;  %v1629_v49 = vpop.f32.mrb[28].mxu1 }
 0x11f   : > { %v722_v16 = vpop.f32.mrb[29].mxu0  ;;  %1329 = vst.msk [vmem:[%s2027_s6 + $0x8] sm:$0xf] %vm1326_vm2, %v1505_v0  ;;  %v1508_v18 = vpack.c.bf16 %v1169_v2, %v1169_v2  ;;  %v1154_v4 = vsel %vm1127_vm1, %v1112_v1, -inf  ;;  %v964_v36 = vmul.f32 %v1817_v38, %v850_v27  ;;  %v866_v20 = vpop.f32.mrb[29].mxu1  ;;  %v929_v44 = vmul.f32 %v1817_v38, %v709_v33 }
 0x120   : > { %v1594_v6 = vpop.f32.mrb[30].mxu0  ;;  %v1155_v43 = vmax.f32 %v1153_v37, %v1154_v4  ;;  %v1185_v39 = vsel %vm1127_vm1, %v1081_v12, -inf  ;;  %v1171_v46 = vsel %vm1127_vm1, %v1079_v3, -inf  ;;  %v1117_v50 = vmax.f32 %v1045_v15, 0.0  ;;  %v2084_v61 = vpop.f32.mrb[30].mxu1 }
 0x121   : > { %v2076_v52 = vpop.f32.mrb[31].mxu0  ;;  %1332 = vst.msk [vmem:[%s2027_s6 + $0x14] sm:$0xf] %vm1326_vm2, %v1508_v18  ;;  %v1186_v56 = vmax.f32 %v1924_v30, %v1185_v39  ;;  %v1172_v10 = vmax.f32 %v1881_v48, %v1171_v46  ;;  %v1010_v27 = vadd.f32 %v1822_v40, %v931_v26  ;;  %v1043_v60 = vadd.f32 %v1822_v40, %v964_v36  ;;  %v2089_v62 = vpop.f32.mrb[31].mxu1 }
 0x122   : > { %v1506_v11 = vpack.c.bf16 %v1155_v43, %v1155_v43  ;;  %v1189_v59 = vsel %vm1127_vm1, %v1117_v50, -inf  ;;  %v967_v57 = vmul.f32 %v1626_v42, %v1817_v38  ;;  %v1008_v2 = vadd.f32 %v1822_v40, %v929_v44 }
 0x123   : > { %v1188_v25 = vmax.f32 %v1186_v56, %v1935_v45  ;;  %v1082_v30 = vmax.f32 %v1010_v27, 0.0  ;;  %v1115_v0 = vmax.f32 %v1043_v60, 0.0  ;;  %v1174_v48 = vmax.f32 %v1172_v10, %v1888_v53 }
 0x124   : > { %1330 = vst.msk [vmem:[%s2027_s6 + $0xc] sm:$0xf] %vm1326_vm2, %v1506_v11  ;;  %v1046_v1 = vadd.f32 %v1822_v40, %v967_v57  ;;  %v965_v37 = vmul.f32 %v1817_v38, %v853_v7  ;;  %v934_v33 = vmul.f32 %v1593_v17, %v1817_v38  ;;  %v932_v45 = vmul.f32 %v1817_v38, %v722_v16 }
 0x125   : > { %v1190_v12 = vmax.f32 %v1188_v25, %v1189_v59  ;;  %v1192_v42 = vsel %vm1127_vm1, %v1082_v30, -inf  ;;  %v1175_v3 = vsel %vm1127_vm1, %v1115_v0, -inf  ;;  %v1080_v4 = vmax.f32 %v1008_v2, 0.0 }
 0x126   : > { %v1597_v15 = vpop.f32.mrb[32].mxu0  ;;  %v1193_v53 = vmax.f32 %v1952_v8, %v1192_v42  ;;  %v1176_v18 = vmax.f32 %v1174_v48, %v1175_v3  ;;  %v1118_v26 = vmax.f32 %v1046_v1, 0.0  ;;  %v1044_v7 = vadd.f32 %v1822_v40, %v965_v37  ;;  %v2106_v46 = vpop.f32.mrb[32].mxu1 }
 0x127   : > { %v738_v36 = vpop.f32.mrb[33].mxu0  ;;  %v1511_v43 = vpack.c.bf16 %v1190_v12, %v1190_v12  ;;  %v1013_v17 = vadd.f32 %v1822_v40, %v934_v33  ;;  %v1011_v39 = vadd.f32 %v1822_v40, %v932_v45  ;;  %v1178_v8 = vsel %vm1127_vm1, %v1080_v4, -inf  ;;  %v2113_v27 = vpop.f32.mrb[33].mxu1 }
 0x128   : > { %v2108_v50 = vpop.f32.mrb[34].mxu0  ;;  %v1509_v16 = vpack.c.bf16 %v1176_v18, %v1176_v18  ;;  %v1195_v56 = vmax.f32 %v1193_v53, %v1961_v14  ;;  %v1196_v10 = vsel %vm1127_vm1, %v1118_v26, -inf  ;;  %v1179_v11 = vmax.f32 %v1891_v54, %v1178_v8  ;;  %v2120_v25 = vpop.f32.mrb[34].mxu1 }
 0x129   : > { %v2115_v60 = vpop.f32.mrb[35].mxu0  ;;  %1335 = vst.msk [vmem:[%s2027_s6 + $0x20] sm:$0xf] %vm1326_vm2, %v1511_v43  ;;  %v1116_v59 = vmax.f32 %v1044_v7, 0.0  ;;  %v1085_v44 = vmax.f32 %v1013_v17, 0.0  ;;  %v1083_v57 = vmax.f32 %v1011_v39, 0.0  ;;  %v970_v14 = vmul.f32 %v1629_v49, %v1817_v38 }
 0x12a   : > { %1333 = vst.msk [vmem:[%s2027_s6 + $0x18] sm:$0xf] %vm1326_vm2, %v1509_v16  ;;  %v1197_v30 = vmax.f32 %v1195_v56, %v1196_v10  ;;  %v935_v0 = vmul.f32 %v1594_v6, %v1817_v38  ;;  %v968_v48 = vmul.f32 %v1817_v38, %v866_v20  ;;  %v2127_v2 = vpop.f32.mrb[35].mxu1  ;;  %v1181_v1 = vmax.f32 %v1179_v11, %v1914_v24 }
 0x12b   : > { %v1182_v54 = vsel %vm1127_vm1, %v1116_v59, -inf  ;;  %v1213_v37 = vsel %vm1127_vm1, %v1085_v44, -inf  ;;  %v1199_v33 = vsel %vm1127_vm1, %v1083_v57, -inf  ;;  %v1049_v3 = vadd.f32 %v1822_v40, %v970_v14 }
 0x12c   : > { %v1512_v12 = vpack.c.bf16 %v1197_v30, %v1197_v30  ;;  %v1214_v42 = vmax.f32 %v1968_v22, %v1213_v37  ;;  %v1200_v49 = vmax.f32 %v1921_v29, %v1199_v33  ;;  %v1183_v6 = vmax.f32 %v1181_v1, %v1182_v54 }
 0x12d   : > { %v1014_v20 = vadd.f32 %v1822_v40, %v935_v0  ;;  %v1047_v45 = vadd.f32 %v1822_v40, %v968_v48  ;;  %v933_v24 = vmul.f32 %v1817_v38, %v2076_v52  ;;  %v1121_v53 = vmax.f32 %v1049_v3, 0.0 }
 0x12e   : > { %1336 = vst.msk [vmem:[%s2027_s6 + $0x24] sm:$0xf] %vm1326_vm2, %v1512_v12  ;;  %v1216_v18 = vmax.f32 %v1214_v42, %v1976_v31  ;;  %v1202_v22 = vmax.f32 %v1200_v49, %v1928_v34  ;;  %v971_v29 = vmul.f32 %v2084_v61, %v1817_v38  ;;  %v1510_v4 = vpack.c.bf16 %v1183_v6, %v1183_v6 }
 0x12f   : > { %v1086_v26 = vmax.f32 %v1014_v20, 0.0  ;;  %v1119_v43 = vmax.f32 %v1047_v45, 0.0  ;;  %v1012_v7 = vadd.f32 %v1822_v40, %v933_v24  ;;  %v1217_v17 = vsel %vm1127_vm1, %v1121_v53, -inf }
 0x130   : > { %v1050_v39 = vadd.f32 %v1822_v40, %v971_v29  ;;  %v969_v52 = vmul.f32 %v1817_v38, %v2089_v62  ;;  %v938_v16 = vmul.f32 %v1597_v15, %v1817_v38  ;;  %1334 = vst.msk [vmem:[%s2027_s6 + $0x1c] sm:$0xf] %vm1326_vm2, %v1510_v4  ;;  %v1218_v34 = vmax.f32 %v1216_v18, %v1217_v17 }
 0x131   : > { %v1220_v31 = vsel %vm1127_vm1, %v1086_v26, -inf  ;;  %v1203_v61 = vsel %vm1127_vm1, %v1119_v43, -inf  ;;  %v1084_v8 = vmax.f32 %v1012_v7, 0.0  ;;  %v936_v57 = vmul.f32 %v1817_v38, %v738_v36 }
 0x132   : > { %v1221_v56 = vmax.f32 %v1981_v41, %v1220_v31  ;;  %v1204_v10 = vmax.f32 %v1202_v22, %v1203_v61  ;;  %v1122_v11 = vmax.f32 %v1050_v39, 0.0  ;;  %v1048_v59 = vadd.f32 %v1822_v40, %v969_v52 }
 0x133   : > { %v1515_v44 = vpack.c.bf16 %v1218_v34, %v1218_v34  ;;  %v1206_v62 = vsel %vm1127_vm1, %v1084_v8, -inf  ;;  %v1017_v15 = vadd.f32 %v1822_v40, %v938_v16  ;;  %v1015_v54 = vadd.f32 %v1822_v40, %v936_v57 }
 0x134   : > { %v1513_v30 = vpack.c.bf16 %v1204_v10, %v1204_v10  ;;  %v1207_v14 = vmax.f32 %v1931_v35, %v1206_v62  ;;  %v1223_v0 = vmax.f32 %v1221_v56, %v1998_v19  ;;  %v1224_v48 = vsel %vm1127_vm1, %v1122_v11, -inf }
 0x135   : > { %1339 = vst.msk [vmem:[%s2027_s6 + $0x30] sm:$0xf] %vm1326_vm2, %v1515_v44  ;;  %v1120_v41 = vmax.f32 %v1048_v59, 0.0  ;;  %v1089_v1 = vmax.f32 %v1017_v15, 0.0  ;;  %v974_v37 = vmul.f32 %v2106_v46, %v1817_v38  ;;  %v939_v35 = vmul.f32 %v2108_v50, %v1817_v38 }
 0x136   : > { %1337 = vst.msk [vmem:[%s2027_s6 + $0x28] sm:$0xf] %vm1326_vm2, %v1513_v30  ;;  %v1225_v33 = vmax.f32 %v1223_v0, %v1224_v48  ;;  %v1209_v36 = vmax.f32 %v1207_v14, %v1955_v9  ;;  %v972_v19 = vmul.f32 %v1817_v38, %v2113_v27  ;;  %v1087_v49 = vmax.f32 %v1015_v54, 0.0 }
 0x137   : > { %v1210_v12 = vsel %vm1127_vm1, %v1120_v41, -inf  ;;  %v1241_v42 = vsel %vm1127_vm1, %v1089_v1, -inf  ;;  %v1053_v3 = vadd.f32 %v1822_v40, %v974_v37  ;;  %v1018_v9 = vadd.f32 %v1822_v40, %v939_v35 }
 0x138   : > { %v1516_v46 = vpack.c.bf16 %v1225_v33, %v1225_v33  ;;  %v1211_v6 = vmax.f32 %v1209_v36, %v1210_v12  ;;  %v1242_v20 = vmax.f32 %v2008_v51, %v1241_v42  ;;  %v1227_v45 = vsel %vm1127_vm1, %v1087_v49, -inf }
 0x139   : > { %v1125_v50 = vmax.f32 %v1053_v3, 0.0  ;;  %v1051_v24 = vadd.f32 %v1822_v40, %v972_v19  ;;  %v937_v27 = vmul.f32 %v1817_v38, %v2115_v60  ;;  %v1228_v18 = vmax.f32 %v1965_v21, %v1227_v45 }
 0x13a   : > { %1340 = vst.msk [vmem:[%s2027_s6 + $0x34] sm:$0xf] %vm1326_vm2, %v1516_v46  ;;  %v1514_v53 = vpack.c.bf16 %v1211_v6, %v1211_v6  ;;  %v1244_v22 = vmax.f32 %v1242_v20, %v2013_v55  ;;  %v1090_v29 = vmax.f32 %v1018_v9, 0.0  ;;  %v975_v43 = vmul.f32 %v2120_v25, %v1817_v38 }
 0x13b   : > { %v1245_v51 = vsel %vm1127_vm1, %v1125_v50, -inf  ;;  %v1123_v4 = vmax.f32 %v1051_v24, 0.0  ;;  %v1016_v26 = vadd.f32 %v1822_v40, %v937_v27  ;;  %v1230_v17 = vmax.f32 %v1228_v18, %v1973_v28 }
 0x13c   : > { %1338 = vst.msk [vmem:[%s2027_s6 + $0x2c] sm:$0xf] %vm1326_vm2, %v1514_v53  ;;  %v1246_v7 = vmax.f32 %v1244_v22, %v1245_v51  ;;  %v1248_v60 = vsel %vm1127_vm1, %v1090_v29, -inf  ;;  %v973_v21 = vmul.f32 %v1817_v38, %v2127_v2  ;;  %v1054_v16 = vadd.f32 %v1822_v40, %v975_v43 }
 0x13d   : > { %v1249_v55 = vmax.f32 %v2016_v58, %v1248_v60  ;;  %v1231_v39 = vsel %vm1127_vm1, %v1123_v4, -inf  ;;  %v1088_v52 = vmax.f32 %v1016_v26, 0.0  ;;  %v1250_v25 = vsel %vm1127_vm1, %v1108_v5, -inf }
 0x13e   : > { %v1519_v34 = vpack.c.bf16 %v1246_v7, %v1246_v7  ;;  %v1232_v31 = vmax.f32 %v1230_v17, %v1231_v39  ;;  %v1052_v61 = vadd.f32 %v1822_v40, %v973_v21  ;;  %v1233_v38 = vsel %vm1127_vm1, %v1070_v23, -inf }
 0x13f   : > { %v1234_v28 = vsel %vm1127_vm1, %v1088_v52, -inf  ;;  %v1126_v58 = vmax.f32 %v1054_v16, 0.0  ;;  %v1251_v2 = vmax.f32 %v1249_v55, %v1250_v25  ;;  %v1236_v5 = vsel %vm1127_vm1, %v1106_v32, -inf }
 0x140   : > { %1343 = vst.msk [vmem:[%s2027_s6 + $0x40] sm:$0xf] %vm1326_vm2, %v1519_v34  ;;  %v1517_v8 = vpack.c.bf16 %v1232_v31, %v1232_v31  ;;  %v1235_v47 = vmax.f32 %v1233_v38, %v1234_v28  ;;  %v1124_v56 = vmax.f32 %v1052_v61, 0.0 }
 0x141   : > { %v1252_v40 = vsel %vm1127_vm1, %v1126_v58, -inf }
 0x142   : > { %1341 = vst.msk [vmem:[%s2027_s6 + $0x38] sm:$0xf] %vm1326_vm2, %v1517_v8  ;;  %v1253_v63 = vmax.f32 %v1251_v2, %v1252_v40  ;;  %v1237_v23 = vmax.f32 %v1235_v47, %v1236_v5  ;;  %v1238_v10 = vsel %vm1127_vm1, %v1124_v56, -inf }
 0x144   : > { %v1520_v11 = vpack.c.bf16 %v1253_v63, %v1253_v63  ;;  %v1239_v59 = vmax.f32 %v1237_v23, %v1238_v10 }
 0x146   : > { %1344 = vst.msk [vmem:[%s2027_s6 + $0x44] sm:$0xf] %vm1326_vm2, %v1520_v11  ;;  %v1518_v44 = vpack.c.bf16 %v1239_v59, %v1239_v59 }
 0x148   : > { %1342 = vst.msk [vmem:[%s2027_s6 + $0x3c] sm:$0xf] %vm1326_vm2, %v1518_v44 }
 0x149 PF: > { %s14_s15 = sadd.s32 1, %s1693_s15  }
 0x14a   : > { %p11_p4 = scmp.ge.s32.totalorder %s14_s15, 4  }
 0x14c   :  { %13 = sbr.rel (!%p11_p4) target bundleno = 1 (0x1), region = 66 }

// kernel: dann_forward.4
= control target key start
LH: loop header
LB: loop body
LE: loop exit
PB: predicated region body
PF: predicated region fallthrough
CT: control target
= control target key end

     0   :  { %s5111_s15 = smov 0   ;;  %s6304_s0 = inlined_call_operand.vmem [shape: bf16[2,12,12,64], index: 0, kind: input, shape index: {}]   ;;  %s6305_s1 = inlined_call_operand.vmem [shape: bf16[25,64,64], index: 1, kind: input, shape index: {}]   ;;  %s6306_s2 = inlined_call_operand.vmem [shape: f32[1,64], index: 2, kind: input, shape index: {}]   ;;  %s6307_s3 = inlined_call_operand.vmem [shape: f32[1,64], index: 3, kind: input, shape index: {}]   ;;  %s6308_s4 = inlined_call_operand.vmem [shape: bf16[2,4,8,64], index: 4, kind: output, shape index: {}]  }
   0x1 LB: > { %s3671_s16 = sadd.s32 4294967295, %s5084_s15   ;;  %p3675_p0 = scmp.ge.s32.totalorder %s5084_s15, 1  ;;  %s5084_s15 = sphi %s5111_s15, %s14_s15  }
   0x2   : > { %p162_p1 = scmp.lt.s32.totalorder %s5084_s15, 3 }
   0x4   : > { %p163_p2 = pnand %p3675_p0, %p162_p1 }
   0x6   : > { %166 = sbr.rel (%p163_p2) target bundleno = 478 (0x1de), region = 36 }
   0xd   : > { %v4964_v0 = vld [vmem:[%s6305_s1 + $0x20] sm:$0xff]   ;;  %p188_p3 = scmp.lt.s32.totalorder %s3671_s16, 1  ;;  %v4966_v2 = vld [vmem:[%s6305_s1 + $0x28] sm:$0xff]   ;;  %v4968_v4 = vld [vmem:[%s6305_s1 + $0x30] sm:$0xff]   ;;  %vm598_vm0 = vcmask 1042432   ;;  %vm599_vm1 = vcmask 1046532  }
   0xe   : > { %v4965_v1 = vld [vmem:[%s6305_s1 + $0x180] sm:$0xff]   ;;  %4355 = vmatprep.subr.bf16.mxu1 %v4964_v0  ;;  %v4967_v3 = vld [vmem:[%s6305_s1 + $0x188] sm:$0xff]   ;;  %v4969_v5 = vld [vmem:[%s6305_s1 + $0x190] sm:$0xff]   ;;  %vm391_vm2 = vcmask 523264   ;;  %vm231_vm4 = vsmask.f32 3328 }
   0xf   : > { %s6422_s16 = smov (!%p188_p3, %s3671_s16), 1  ;;  %4547 = vmatprep.subr.bf16.mxu0 %v4965_v1  ;;  %4356 = vmatpush3.bf16.msra.mxu1 %v4964_v0  ;;  %v4970_v6 = vld [vmem:[%s6305_s1 + $0x38] sm:$0xff]   ;;  %vm5190_vm3 = vmor %vm598_vm0, %vm599_vm1  ;;  %v5207_v29 = vld [vmem:[%s6305_s1] sm:$0xff]   ;;  %vm232_vm5 = vsmask.f32 7440  ;;  %vm976_vm10 = vcmask 1041408  }
  0x10   : > { %4548 = vmatpush3.bf16.msra.mxu0 %v4965_v1  ;;  %4357 = vmatprep.subr.bf16.mxu1 %v4966_v2  ;;  %s4955_s27 = smul.u32 96, %s6422_s16  ;;  %v4971_v7 = vld [vmem:[%s6305_s1 + $0x198] sm:$0xff]   ;;  %v4973_v38 = vld [vmem:[%s6305_s1 + $0x1a0] sm:$0xff]   ;;  %v4975_v50 = vld [vmem:[%s6305_s1 + $0x1a8] sm:$0xff]   ;;  %vm763_vm7 = vsmask.f32 2304 }
  0x11   : > { %4549 = vmatprep.subr.bf16.mxu0 %v4967_v3  ;;  %v4977_v1 = vld [vmem:[%s6305_s1 + $0x1b0] sm:$0xff]   ;;  %vm5301_vm6 = vmor %vm231_vm4, %vm232_vm5  ;;  %vm764_vm8 = vsmask.f32 6416  ;;  %vm977_vm11 = vcmask 1045508   ;;  %v5069_v20 = vld [vmem:[%s6305_s1 + $0x178] sm:$0xff]   ;;  %s4154_s10 = sshll.u32 %s6422_s16, 4 }
  0x12   : > { %s5143_s6 = scalar_lea.vmem %s6304_s0, %s4955_s27  ;;  %vm5461_vm9 = vmor %vm763_vm7, %vm764_vm8  ;;  %s197_s16 = scalar_lea.vmem %s6308_s4, %s4154_s10  ;;  %vm3611_vm13 = vcmask 519168  }
  0x13   : > { %4358 = vmatpush3.bf16.msra.mxu1 %v4966_v2  ;;  %v5152_v8 = vld [vmem:[%s5143_s6 + $0x8] sm:$0xf]  ;;  %v5155_v9 = vld [vmem:[%s5143_s6 + $0xc] sm:$0x3]  ;;  %v5158_v10 = vld [vmem:[%s5143_s6 + $0x10] sm:$0xf] }
  0x14   : > { %4550 = vmatpush3.bf16.msra.mxu0 %v4967_v3  ;;  %4359 = vmatprep.subr.bf16.mxu1 %v4968_v4  ;;  %v5161_v11 = vld [vmem:[%s5143_s6 + $0x14] sm:$0x3]  ;;  %v5164_v12 = vld [vmem:[%s5143_s6 + $0x18] sm:$0xf]  ;;  %v5167_v13 = vld [vmem:[%s5143_s6 + $0x20] sm:$0xf] }
  0x15   : > { %4551 = vmatprep.subr.bf16.mxu0 %v4969_v5  ;;  %v5170_v14 = vld [vmem:[%s5143_s6 + $0x1c] sm:$0x3]  ;;  %v5173_v15 = vld [vmem:[%s5143_s6 + $0x24] sm:$0x3]  ;;  %v5176_v16 = vld [vmem:[%s5143_s6 + $0x28] sm:$0xf]  ;;  %v5180_v17 = vcombine.low %v5164_v12, %v5167_v13 }
  0x16   : > { %v5183_v18 = vld [vmem:[%s5143_s6 + $0x2c] sm:$0x3]  ;;  %v5186_v19 = vld [vmem:[%s5143_s6 + $0x34] sm:$0x3]  ;;  %v5195_v21 = vld [vmem:[%s5143_s6 + $0x30] sm:$0xf] }
  0x17   : > { %4360 = vmatpush3.bf16.msra.mxu1 %v4968_v4  ;;  %6350 = vst [vmem:[#allocation2_spill] sm:$0xff] %v5180_v17  ;;  %v3712_v22 = vrot.slane %v5152_v8, 9  ;;  %v607_v23 = vrot.slane %v5155_v9, 5  ;;  %v3713_v24 = vrot.slane %v5158_v10, 9  ;;  %v611_v25 = vrot.slane %v5161_v11, 5  ;;  %vm5578_vm12 = vmor %vm976_vm10, %vm977_vm11 }
  0x18   : > { %4552 = vmatpush3.bf16.msra.mxu0 %v4969_v5  ;;  %4361 = vmatprep.subr.bf16.mxu1 %v4970_v6  ;;  %v3714_v26 = vrot.slane %v5164_v12, 9  ;;  %v615_v27 = vrot.slane %v5170_v14, 5  ;;  %v3715_v28 = vrot.slane %v5167_v13, 9  ;;  %v5210_v30 = vld [vmem:[%s5143_s6] sm:$0xf]  ;;  %v619_v32 = vrot.slane %v5173_v15, 5 }
  0x19   : > { %4553 = vmatprep.subr.bf16.mxu0 %v4971_v7  ;;  %v5214_v31 = vsel %vm5190_vm3, %v3713_v24, %v611_v25  ;;  %v3716_v33 = vrot.slane %v5176_v16, 9  ;;  %v623_v35 = vrot.slane %v5183_v18, 5  ;;  %v3717_v36 = vrot.slane %v5195_v21, 9  ;;  %v5228_v39 = vld [vmem:[%s5143_s6 + $0x4] sm:$0x3] }
  0x1a   : > { %6353 = vst [vmem:[#allocation3_spill] sm:$0xff] %v5214_v31  ;;  %v616_v34 = vsel %vm5190_vm3, %v3714_v26, %v615_v27  ;;  %v627_v37 = vrot.slane %v5186_v19, 5  ;;  %v620_v40 = vsel %vm5190_vm3, %v3715_v28, %v619_v32  ;;  %v5243_v46 = vsel %vm5190_vm3, %v3712_v22, %v607_v23  ;;  %v5395_v51 = vld [vmem:[%s5143_s6 + $0x4c] sm:$0x3]  ;;  %v5061_v32 = vld [vmem:[%s6305_s1 + $0x158] sm:$0xff]  }
  0x1b   : > { %4362 = vmatpush3.bf16.msra.mxu1 %v4970_v6  ;;  %v5233_v41 = vcombine.low %v5214_v31, %v616_v34  ;;  %v624_v44 = vsel %vm5190_vm3, %v3716_v33, %v623_v35  ;;  %v5260_v53 = vcombine.low %v616_v34, %v620_v40  ;;  %v810_v55 = vshrl.u32 %v5173_v15, 16 }
  0x1c   : > { %4554 = vmatpush3.bf16.msra.mxu0 %v4971_v7  ;;  %4371 = vmatprep.subr.bf16.mxu1 %v5207_v29  ;;  %v5247_v47 = vsel %vm5190_vm3, %v3717_v36, %v627_v37  ;;  %v5249_v48 = vcombine.low %v620_v40, %v624_v44  ;;  %v6314_v56 = vshrl.u32 %v5210_v30, 16  ;;  %v6313_v57 = vshll.u32 %v5210_v30, 16  ;;  %v4979_v36 = vld [vmem:[%s6305_s1 + $0x1b8] sm:$0xff]  }
  0x1d   : > { %4563 = vmatprep.subr.bf16.mxu0 %v4973_v38  ;;  %4555 = vmatprep.mubr.msk.bf16.mxu0 %vm391_vm2, %v5233_v41  ;;  %6355 = vst [vmem:[#allocation5_spill] sm:$0xff] %v5260_v53  ;;  %v5263_v54 = vcombine.low %v624_v44, %v5247_v47  ;;  %v6312_v58 = vshll.u32 %v5228_v39, 16  ;;  %v6311_v59 = vshrl.u32 %v5152_v8, 16  ;;  %v6310_v60 = vshll.u32 %v5152_v8, 16 }
  0x1e   : > { %6354 = vst [vmem:[#allocation4_spill] sm:$0xff] %v5249_v48  ;;  %v237_v61 = vrot.slane %v6314_v56, 4  ;;  %v6309_v62 = vshll.u32 %v5155_v9, 16  ;;  %v6319_v63 = vshrl.u32 %v5158_v10, 16  ;;  %v6318_v0 = vshll.u32 %v5158_v10, 16 }
  0x1f   : > { %6356 = vst [vmem:[#allocation6_spill] sm:$0xff] %v5263_v54  ;;  %4556 = vmatmul.mubr.msk.bf16.vlgmr.msra.gmra.mrb[0].mxu0 %vm391_vm2, %v5249_v48  ;;  %v240_v2 = vrot.slane %v6313_v57, 5  ;;  %v246_v3 = vrot.slane %v6312_v58, 5  ;;  %v251_v4 = vrot.slane %v6311_v59, 4  ;;  %v254_v5 = vrot.slane %v6310_v60, 5 }
  0x20   : > { %4564 = vmatpush3.bf16.msra.mxu0 %v4973_v38  ;;  %v260_v6 = vrot.slane %v6309_v62, 5  ;;  %v265_v7 = vrot.slane %v6319_v63, 4  ;;  %v268_v22 = vrot.slane %v6318_v0, 5  ;;  %v272_v23 = vshll.u32 %v5161_v11, 16  ;;  %v5382_v58 = vld [vmem:[%s5143_s6 + $0x44] sm:$0x3] }
  0x21   : > { %4565 = vmatprep.subr.bf16.mxu0 %v4975_v50  ;;  %v241_v24 = vor.u32 %v240_v2, %v237_v61  ;;  %v255_v25 = vor.u32 %v254_v5, %v251_v4  ;;  %v6317_v26 = vshrl.u32 %v5164_v12, 16  ;;  %v6316_v27 = vshll.u32 %v5164_v12, 16  ;;  %v5315_v2 = vld [vmem:[%s5143_s6 + $0x38] sm:$0xf]  ;;  %v5318_v4 = vld [vmem:[%s5143_s6 + $0x3c] sm:$0x3] }
  0x22   : > { %v820_v28 = vshrl.u32 %v5183_v18, 16  ;;  %v269_v33 = vor.u32 %v268_v22, %v265_v7  ;;  %v274_v34 = vrot.slane %v272_v23, 5  ;;  %v6315_v35 = vshll.u32 %v5170_v14, 16  ;;  %v5390_v56 = vld [vmem:[%s5143_s6 + $0x48] sm:$0xf] }
  0x23   : > { %v242_v37 = vrot.slane %v241_v24, 4  ;;  %v256_v38 = vrot.slane %v255_v25, 4  ;;  %v279_v40 = vrot.slane %v6317_v26, 4  ;;  %v282_v44 = vrot.slane %v6316_v27, 5 }
  0x24   : > { %4566 = vmatpush3.bf16.msra.mxu0 %v4975_v50  ;;  %v270_v61 = vrot.slane %v269_v33, 4  ;;  %v5322_v5 = vcombine.low %v5158_v10, %v5164_v12  ;;  %v5326_v7 = vcombine.low %v5167_v13, %v5176_v16  ;;  %v288_v33 = vrot.slane %v6315_v35, 5 }
  0x25   : > { %4567 = vmatprep.subr.bf16.mxu0 %v4977_v1  ;;  %v247_v22 = vsel %vm5301_vm6, %v242_v37, %v246_v3  ;;  %v5332_v24 = vsel %vm5301_vm6, %v256_v38, %v260_v6  ;;  %v283_v25 = vor.u32 %v282_v44, %v279_v40  ;;  %v5336_v52 = vrot.slane %v810_v55, 5  ;;  %v5353_v55 = vld [vmem:[%s6305_s1 + $0x1c0] sm:$0xff]   ;;  %v4974_v44 = vld [vmem:[%s6305_s1 + $0x8] sm:$0xff]  }
  0x26   : > { %6359 = vst [vmem:[#allocation7_spill] sm:$0xff] %v5322_v5  ;;  %6360 = vst [vmem:[#allocation8_spill] sm:$0xff] %v5332_v24  ;;  %v5338_v62 = vrot.slane %v820_v28, 5  ;;  %v5342_v50 = vsel %vm5301_vm6, %v270_v61, %v274_v34  ;;  %v3687_v60 = vcombine.low %v247_v22, %v5332_v24  ;;  %v5345_v6 = vrot.slane %v272_v23, 6 }
  0x27   : > { %6361 = vst [vmem:[#allocation9_spill] sm:$0xff] %v5342_v50  ;;  %v284_v3 = vrot.slane %v283_v25, 4  ;;  %v631_v28 = vrot.slane %v5318_v4, 5  ;;  %v291_v34 = vshrl.u32 %v5167_v13, 16  ;;  %v294_v23 = vshll.u32 %v5167_v13, 16 }
  0x28   : > { %4568 = vmatpush3.bf16.msra.mxu0 %v4977_v1  ;;  %v3718_v1 = vrot.slane %v5315_v2, 9  ;;  %4363 = vmatprep.mubr.msk.bf16.mxu1 %vm391_vm2, %v3687_v60  ;;  %v300_v38 = vshll.u32 %v5173_v15, 16  ;;  %v305_v60 = vshrl.u32 %v5176_v16, 16  ;;  %v308_v61 = vshll.u32 %v5176_v16, 16  ;;  %v5371_v25 = vld [vmem:[%s5143_s6 + $0x40] sm:$0xf] }
  0x29   : > { %4569 = vmatprep.subr.bf16.mxu0 %v4979_v36  ;;  %v5362_v40 = vsel %vm5301_vm6, %v284_v3, %v288_v33  ;;  %v314_v22 = vshll.u32 %v5183_v18, 16  ;;  %v293_v3 = vrot.slane %v291_v34, 4  ;;  %v296_v59 = vrot.slane %v294_v23, 5 }
  0x2a   : > { %6362 = vst [vmem:[#allocation10_spill] sm:$0xff] %v5362_v40  ;;  %v5375_v37 = vcombine.low %v5342_v50, %v5362_v40  ;;  %v5379_v33 = vsel %vm5190_vm3, %v3718_v1, %v631_v28  ;;  %v307_v42 = vrot.slane %v305_v60, 4  ;;  %v310_v43 = vrot.slane %v308_v61, 5 }
  0x2b   : > { %v5387_v57 = vcombine.low %v5247_v47, %v5379_v33  ;;  %v297_v1 = vor.u32 %v296_v59, %v293_v3  ;;  %v316_v28 = vrot.slane %v314_v22, 5  ;;  %v806_v45 = vrot.slane %v291_v34, 5  ;;  %v4976_v59 = vld [vmem:[%s6305_s1 + $0x10] sm:$0xff]  }
  0x2c   : > { %4570 = vmatpush3.bf16.msra.mxu0 %v4979_v36  ;;  %6363 = vst [vmem:[#allocation11_spill] sm:$0xff] %v5375_v37  ;;  %v302_v36 = vrot.slane %v300_v38, 5  ;;  %4364 = vmatmul.mubr.msk.bf16.vlgmr.msra.gmra.mrb[0].mxu1 %vm391_vm2, %v5375_v37  ;;  %v807_v35 = vrot.slane %v294_v23, 6  ;;  %v311_v47 = vor.u32 %v310_v43, %v307_v42  ;;  %v5400_v27 = vrot.slane %v300_v38, 6 }
  0x2d   : > { %4579 = vmatprep.subr.bf16.mxu0 %v5353_v55  ;;  %6364 = vst [vmem:[#allocation12_spill] sm:$0xff] %v5387_v57  ;;  %4372 = vmatpush3.bf16.msra.mxu1 %v5207_v29  ;;  %v816_v26 = vrot.slane %v305_v60, 5  ;;  %v817_v49 = vrot.slane %v308_v61, 6  ;;  %v298_v0 = vrot.slane %v297_v1, 4  ;;  %v5402_v37 = vrot.slane %v314_v22, 6 }
  0x2e   : > { %4559 = vmatprep.mubr.msk.bf16.mxu0 %vm391_vm2, %v5387_v57  ;;  %4373 = vmatprep.subr.bf16.mxu1 %v4974_v44  ;;  %v808_v63 = vor.u32 %v807_v35, %v806_v45  ;;  %v3827_v34 = vrot.slane %v5371_v25, 9  ;;  %v312_v29 = vrot.slane %v311_v47, 4  ;;  %v814_v23 = vor.u32 %v5400_v27, %v5336_v52  ;;  %v4978_v27 = vld [vmem:[%s6305_s1 + $0x18] sm:$0xff]  }
  0x2f   : > { %v818_v42 = vor.u32 %v817_v49, %v816_v26  ;;  %v1405_v43 = vrot.slane %v5382_v58, 5  ;;  %v5413_v38 = vsel %vm5301_vm6, %v298_v0, %v302_v36  ;;  %v824_v35 = vor.u32 %v5402_v37, %v5338_v62 }
  0x30   : > { %6365 = vst [vmem:[#allocation13_spill] sm:$0xff] %v5413_v38  ;;  %v809_v45 = vrot.slane %v808_v63, 4  ;;  %v3923_v60 = vrot.slane %v5390_v56, 9  ;;  %v5420_v61 = vsel %vm5301_vm6, %v312_v29, %v316_v28  ;;  %v2030_v52 = vrot.slane %v5395_v51, 5 }
  0x31   : > { %4374 = vmatpush3.bf16.msra.mxu1 %v4974_v44  ;;  %6366 = vst [vmem:[#allocation14_spill] sm:$0xff] %v5420_v61  ;;  %v819_v22 = vrot.slane %v818_v42, 4  ;;  %v5424_v49 = vsel %vm5190_vm3, %v3827_v34, %v1405_v43  ;;  %v5429_v63 = vcombine.low %v5413_v38, %v5420_v61  ;;  %v319_v62 = vshrl.u32 %v5195_v21, 16 }
  0x32   : > { %4375 = vmatprep.subr.bf16.mxu1 %v4976_v59  ;;  %v322_v0 = vshll.u32 %v5195_v21, 16  ;;  %v328_v26 = vshll.u32 %v5186_v19, 16  ;;  %v5439_v37 = vsel %vm5190_vm3, %v3923_v60, %v2030_v52  ;;  %v333_v44 = vshrl.u32 %v5315_v2, 16  ;;  %v5453_v60 = vld [vmem:[%s6305_s1 + $0x40] sm:$0xff]  }
  0x33   : > { %6367 = vst [vmem:[#allocation15_spill] sm:$0xff] %v5429_v63  ;;  %6368 = vst [vmem:[#allocation16_spill] sm:$0xff] %v5439_v37  ;;  %v336_v3 = vshll.u32 %v5315_v2, 16  ;;  %v342_v36 = vshll.u32 %v5318_v4, 16  ;;  %4367 = vmatprep.mubr.msk.bf16.mxu1 %vm391_vm2, %v5429_v63  ;;  %v5448_v1 = vcombine.low %v5424_v49, %v5439_v37  ;;  %v321_v28 = vrot.slane %v319_v62, 4 }
  0x34   : > { %v324_v47 = vrot.slane %v322_v0, 5  ;;  %v330_v34 = vrot.slane %v328_v26, 5  ;;  %v335_v29 = vrot.slane %v333_v44, 4  ;;  %v6370_v63 = vshrl.u32 %v5158_v10, 16 }
  0x35   : > { %6369 = vst [vmem:[#allocation17_spill] sm:$0xff] %v5448_v1  ;;  %v338_v42 = vrot.slane %v336_v3, 5  ;;  %v344_v43 = vrot.slane %v342_v36, 5  ;;  %4376 = vmatpush3.bf16.msra.mxu1 %v4976_v59  ;;  %4560 = vmatmul.mubr.msk.bf16.gmra.mrb[4].mxu0 %vm391_vm2, %v5448_v1  ;;  %v6371_v50 = vshll.u32 %v5158_v10, 16  ;;  %v6374_v54 = vshrl.u32 %v5161_v11, 16  ;;  %v5074_v59 = vld [vmem:[%s6305_s1 + $0x318] sm:$0xff]  }
  0x36   : > { %v325_v52 = vor.u32 %v324_v47, %v321_v28  ;;  %4377 = vmatprep.subr.bf16.mxu1 %v4978_v27  ;;  %v786_v31 = vrot.slane %v6370_v63, 5  ;;  %v6375_v61 = vshrl.u32 %v5164_v12, 16  ;;  %v6376_v28 = vshll.u32 %v5164_v12, 16 }
  0x37   : > { %v787_v24 = vrot.slane %v6371_v50, 6  ;;  %v339_v37 = vor.u32 %v338_v42, %v335_v29  ;;  %v792_v53 = vrot.slane %v6374_v54, 5  ;;  %v6377_v63 = vshrl.u32 %v5170_v14, 16 }
  0x38   : > { %v796_v1 = vrot.slane %v6375_v61, 5  ;;  %v797_v47 = vrot.slane %v6376_v28, 6  ;;  %v326_v40 = vrot.slane %v325_v52, 4  ;;  %v6378_v50 = vshll.u32 %v5170_v14, 16 }
  0x39   : > { %v788_v38 = vor.u32 %v787_v24, %v786_v31  ;;  %v802_v17 = vrot.slane %v6377_v63, 5  ;;  %v340_v42 = vrot.slane %v339_v37, 4  ;;  %4378 = vmatpush3.bf16.msra.mxu1 %v4978_v27  ;;  %v794_v57 = vor.u32 %v5345_v6, %v792_v53 }
  0x3a   : > { %v803_v29 = vrot.slane %v6378_v50, 6  ;;  %v798_v48 = vor.u32 %v797_v47, %v796_v1  ;;  %v5478_v54 = vsel %vm5461_vm9, %v809_v45, %v814_v23  ;;  %v5482_v61 = vsel %vm5301_vm6, %v326_v40, %v330_v34  ;;  %4387 = vmatprep.subr.bf16.mxu1 %v5453_v60 }
  0x3b   : > { %v789_v31 = vrot.slane %v788_v38, 4  ;;  %v825_v52 = vsel %vm5461_vm9, %v819_v22, %v824_v35  ;;  %v1001_v27 = vrot.slane %v5183_v18, 6  ;;  %v5490_v53 = vsel %vm5301_vm6, %v340_v42, %v344_v43 }
  0x3c   : > { %v804_v24 = vor.u32 %v803_v29, %v802_v17  ;;  %v799_v6 = vrot.slane %v798_v48, 4  ;;  %v5493_v23 = vcombine.low %v5478_v54, %v825_v52  ;;  %v5497_v17 = vcombine.low %v5482_v61, %v5490_v53  ;;  %v4985_v48 = vld [vmem:[%s6305_s1 + $0x1c8] sm:$0xff]  }
  0x3d   : > { %v5501_v40 = vsel %vm5461_vm9, %v789_v31, %v794_v57  ;;  %v826_v38 = vrot.slane %v319_v62, 5  ;;  %v827_v45 = vrot.slane %v322_v0, 6  ;;  %v830_v22 = vshrl.u32 %v5186_v19, 16 }
  0x3e   : > { %6379 = vst [vmem:[#allocation18_spill] sm:$0xff] %v5497_v17  ;;  %v5505_v35 = vsel %vm5461_vm9, %v799_v6, %v804_v24  ;;  %v833_v37 = vrot.slane %v328_v26, 6  ;;  %v836_v1 = vrot.slane %v333_v44, 5  ;;  %4368 = vmatmul.mubr.msk.bf16.gmra.mrb[4].mxu1 %vm391_vm2, %v5497_v17  ;;  %v837_v0 = vrot.slane %v336_v3, 6  ;;  %v4984_v6 = vld [vmem:[%s6305_s1 + $0x48] sm:$0xff]  }
  0x3f   : > { %v5515_v57 = vcombine.low %v5501_v40, %v5505_v35  ;;  %v828_v62 = vor.u32 %v827_v45, %v826_v38  ;;  %v840_v34 = vshrl.u32 %v5318_v4, 16  ;;  %v6380_v43 = vcombine.low %v5210_v30, %v5152_v8 }
  0x40   : > { %v832_v28 = vrot.slane %v830_v22, 5  ;;  %v843_v47 = vrot.slane %v342_v36, 6  ;;  %v6343_v26 = vshrl.u32 %v5371_v25, 16  ;;  %v6342_v44 = vshll.u32 %v5371_v25, 16 }
  0x41   : > { %4379 = vmatprep.mubr.msk.bf16.mxu1 %vm391_vm2, %v6380_v43  ;;  %4571 = vmatprep.mubr.msk.bf16.mxu0 %vm391_vm2, %v5515_v57  ;;  %v829_v63 = vrot.slane %v828_v62, 4  ;;  %v838_v50 = vor.u32 %v837_v0, %v836_v1  ;;  %v842_v29 = vrot.slane %v840_v34, 5  ;;  %v6339_v3 = vshll.u32 %v5382_v58, 16 }
  0x42   : > { %4572 = vmatmul.mubr.msk.bf16.vlgmr.msra.gmra.mrb[0].mxu0 %vm391_vm2, %v5493_v23  ;;  %v834_v42 = vor.u32 %v833_v37, %v832_v28  ;;  %v1530_v31 = vrot.slane %v6343_v26, 5  ;;  %v1531_v36 = vrot.slane %v6342_v44, 6  ;;  %v1534_v24 = vshrl.u32 %v5382_v58, 16 }
  0x43   : > { %4580 = vmatpush3.bf16.msra.mxu0 %v5353_v55  ;;  %v839_v38 = vrot.slane %v838_v50, 4  ;;  %v844_v45 = vor.u32 %v843_v47, %v842_v29  ;;  %v1537_v22 = vrot.slane %v6339_v3, 6  ;;  %v6341_v37 = vshrl.u32 %v5390_v56, 16 }
  0x44   : > { %4581 = vmatprep.subr.bf16.mxu0 %v4985_v48  ;;  %v835_v1 = vsel %vm5461_vm9, %v829_v63, %v834_v42  ;;  %v1532_v62 = vor.u32 %v1531_v36, %v1530_v31  ;;  %v1536_v0 = vrot.slane %v1534_v24, 5  ;;  %v6340_v34 = vshll.u32 %v5390_v56, 16  ;;  %v4987_v36 = vld [vmem:[%s6305_s1 + $0x50] sm:$0xff]  }
  0x45   : > { %v5546_v55 = vsel %vm5461_vm9, %v839_v38, %v844_v45  ;;  %v5548_v43 = vcombine.low %v825_v52, %v835_v1  ;;  %v6338_v28 = vshll.u32 %v5395_v51, 16  ;;  %v2143_v47 = vrot.slane %v6341_v37, 5  ;;  %v4988_v52 = vld [vmem:[%s6305_s1 + $0x1d0] sm:$0xff]  }
  0x46   : > { %v6381_v50 = vshrl.u32 %v5210_v30, 16  ;;  %v5558_v63 = vcombine.low %v835_v1, %v5546_v55  ;;  %v1533_v42 = vrot.slane %v1532_v62, 4  ;;  %v2144_v31 = vrot.slane %v6340_v34, 6  ;;  %4380 = vmatmul.mubr.msk.bf16.vlgmr.msra.gmra.mrb[0].mxu1 %vm391_vm2, %v5322_v5  ;;  %v4991_v1 = vld [vmem:[%s6305_s1 + $0x1d8] sm:$0xff]   ;;  %v5013_v62 = vld [vmem:[%s6305_s1 + $0x220] sm:$0xff]  }
  0x47   : > { %4582 = vmatpush3.bf16.msra.mxu0 %v4985_v48  ;;  %v1538_v24 = vor.u32 %v1537_v22, %v1536_v0  ;;  %v2147_v38 = vshrl.u32 %v5395_v51, 16  ;;  %v2150_v45 = vrot.slane %v6338_v28, 6  ;;  %v3761_v48 = vrot.slane %v5158_v10, 10  ;;  %4388 = vmatpush3.bf16.msra.mxu1 %v5453_v60 }
  0x48   : > { %v5555_v29 = vrot.slane %v6381_v50, 5  ;;  %v6384_v50 = vrot.slane %v5228_v39, 5  ;;  %v6385_v22 = vrot.slane %v5210_v30, 9  ;;  %4575 = vmatprep.mubr.msk.bf16.mxu0 %vm391_vm2, %v5558_v63  ;;  %v2145_v28 = vor.u32 %v2144_v31, %v2143_v47  ;;  %4389 = vmatprep.subr.bf16.mxu1 %v4984_v6 }
  0x49   : > { %v989_v3 = vrot.slane %v5161_v11, 6  ;;  %v3762_v34 = vrot.slane %v5164_v12, 10  ;;  %4383 = vmatprep.mubr.msk.bf16.mxu1 %vm391_vm2, %v5326_v7  ;;  %v2149_v10 = vrot.slane %v2147_v38, 5  ;;  %v993_v37 = vrot.slane %v5170_v14, 6  ;;  %4583 = vmatprep.subr.bf16.mxu0 %v4988_v52 }
  0x4a   : > { %v604_v0 = vsel %vm5190_vm3, %v6385_v22, %v6384_v50  ;;  %v3763_v44 = vrot.slane %v5167_v13, 10  ;;  %v3764_v50 = vrot.slane %v5176_v16, 10  ;;  %v2146_v60 = vrot.slane %v2145_v28, 4 }
  0x4b   : > { %v5601_v47 = vsel %vm5578_vm12, %v3761_v48, %v989_v3  ;;  %v3765_v11 = vrot.slane %v5195_v21, 10  ;;  %v1005_v12 = vrot.slane %v5186_v19, 6  ;;  %v5607_v31 = vsel %vm5461_vm9, %v1533_v42, %v1538_v24  ;;  %4584 = vmatpush3.bf16.msra.mxu0 %v4988_v52  ;;  %4390 = vmatpush3.bf16.msra.mxu1 %v4984_v6  ;;  %v4990_v6 = vld [vmem:[%s6305_s1 + $0x58] sm:$0xff]  }
  0x4c   : > { %v2151_v38 = vor.u32 %v2150_v45, %v2149_v10  ;;  %v5611_v13 = vcombine.low %v5195_v21, %v5315_v2  ;;  %v5615_v14 = vsel %vm5578_vm12, %v3762_v34, %v993_v37  ;;  %v6387_v16 = vshll.u32 %v5210_v30, 16  ;;  %4585 = vmatprep.subr.bf16.mxu0 %v4991_v1  ;;  %4391 = vmatprep.subr.bf16.mxu1 %v4987_v36 }
  0x4d   : > { %v1002_v19 = vsel %vm5578_vm12, %v3764_v50, %v1001_v27  ;;  %v1006_v28 = vsel %vm5578_vm12, %v3765_v11, %v1005_v12  ;;  %v3766_v42 = vrot.slane %v5315_v2, 10  ;;  %v5635_v18 = vcombine.low %v5601_v47, %v5615_v14  ;;  %v4993_v50 = vld [vmem:[%s6305_s1 + $0x1e0] sm:$0xff]  }
  0x4e   : > { %6386 = vst [vmem:[#allocation19_spill] sm:$0xff] %v5611_v13  ;;  %v767_v3 = vrot.slane %v6387_v16, 6  ;;  %v5628_v37 = vsel %vm5461_vm9, %v2146_v60, %v2151_v38  ;;  %v1009_v27 = vrot.slane %v5318_v4, 6  ;;  %v5638_v34 = vcombine.low %v1002_v19, %v1006_v28  ;;  %4384 = vmatmul.mubr.msk.bf16.gmra.mrb[4].mxu1 %vm391_vm2, %v5611_v13 }
  0x4f   : > { %v3727_v52 = vcombine.low %v604_v0, %v5243_v46  ;;  %v6388_v24 = vshll.u32 %v5228_v39, 16  ;;  %v6389_v48 = vshrl.u32 %v5152_v8, 16  ;;  %v5649_v10 = vcombine.low %v5607_v31, %v5628_v37  ;;  %4586 = vmatpush3.bf16.msra.mxu0 %v4991_v1  ;;  %4392 = vmatpush3.bf16.msra.mxu1 %v4987_v36 }
  0x50   : > { %v6391_v4 = vshll.u32 %v5152_v8, 16  ;;  %v6392_v0 = vrot.slane %v5173_v15, 6  ;;  %v770_v12 = vshrl.u32 %v5228_v39, 16  ;;  %v6393_v38 = vshll.u32 %v5155_v9, 16  ;;  %4393 = vmatprep.subr.bf16.mxu1 %v4990_v6  ;;  %4595 = vmatprep.subr.bf16.mxu0 %v4993_v50 }
  0x51   : > { %v5643_v45 = vrot.slane %v6388_v24, 6  ;;  %v776_v22 = vrot.slane %v6389_v48, 5  ;;  %6390 = vst [vmem:[#allocation20_spill] sm:$0xff] %v5649_v10  ;;  %4576 = vmatmul.mubr.msk.bf16.gmra.mrb[4].mxu0 %vm391_vm2, %v5649_v10  ;;  %v5673_v24 = vsel %vm5578_vm12, %v3766_v42, %v1009_v27  ;;  %v780_v15 = vshrl.u32 %v5155_v9, 16  ;;  %4395 = vmatprep.mubr.msk.bf16.mxu1 %vm391_vm2, %v3727_v52 }
  0x52   : > { %v777_v60 = vrot.slane %v6391_v4, 6  ;;  %v5662_v11 = vsel %vm5578_vm12, %v3763_v44, %v6392_v0  ;;  %v5667_v16 = vrot.slane %v6393_v38, 6  ;;  %4587 = vmatprep.mubr.msk.bf16.mxu0 %vm391_vm2, %v5635_v18  ;;  %v4992_v44 = vld [vmem:[%s6305_s1 + $0x60] sm:$0xff]   ;;  %v3868_v1 = vrot.slane %v5371_v25, 10  ;;  %v4994_v38 = vld [vmem:[%s6305_s1 + $0x68] sm:$0xff]  }
  0x53   : > { %v1665_v48 = vrot.slane %v5382_v58, 6  ;;  %v3958_v36 = vrot.slane %v5390_v56, 10  ;;  %v768_v4 = vor.u32 %v767_v3, %v5555_v29  ;;  %v5687_v42 = vcombine.low %v5662_v11, %v1002_v19  ;;  %4394 = vmatpush3.bf16.msra.mxu1 %v4990_v6  ;;  %v4995_v3 = vld [vmem:[%s6305_s1 + $0x1e8] sm:$0xff]  }
  0x54   : > { %v2266_v27 = vrot.slane %v5395_v51, 6  ;;  %v772_v0 = vrot.slane %v770_v12, 5  ;;  %v5694_v26 = vcombine.low %v1006_v28, %v5673_v24  ;;  %v778_v10 = vor.u32 %v777_v60, %v776_v22  ;;  %4403 = vmatprep.subr.bf16.mxu1 %v4992_v44 }
  0x55   : > { %v3759_v5 = vrot.slane %v5210_v30, 10  ;;  %v981_v29 = vrot.slane %v5228_v39, 6  ;;  %v782_v19 = vrot.slane %v780_v15, 5  ;;  %v3760_v52 = vrot.slane %v5152_v8, 10 }
  0x56   : > { %v985_v12 = vrot.slane %v5155_v9, 6  ;;  %v6394_v17 = vshrl.u32 %v5371_v25, 16  ;;  %v1666_v28 = vsel %vm5578_vm12, %v3868_v1, %v1665_v48  ;;  %v769_v30 = vrot.slane %v768_v4, 4  ;;  %4396 = vmatmul.mubr.msk.bf16.vlgmr.msra.gmra.mrb[0].mxu1 %vm391_vm2, %v5233_v41 }
  0x57   : > { %v5709_v39 = vsel %vm5578_vm12, %v3759_v5, %v981_v29  ;;  %v6395_v6 = vshll.u32 %v5371_v25, 16  ;;  %v5715_v8 = vsel %vm5578_vm12, %v3958_v36, %v2266_v27  ;;  %v6397_v15 = vshll.u32 %v5390_v56, 16  ;;  %4404 = vmatpush3.bf16.msra.mxu1 %v4992_v44  ;;  %v6400_v44 = vld [vmem:[#allocation4_spill] sm:$0xff] }
  0x58   : > { %v1268_v13 = vrot.slane %v6394_v17, 4  ;;  %v5719_v9 = vsel %vm5578_vm12, %v3760_v52, %v985_v12  ;;  %v6396_v17 = vshrl.u32 %v5390_v56, 16  ;;  %v774_v5 = vor.u32 %v5643_v45, %v772_v0  ;;  %4405 = vmatprep.subr.bf16.mxu1 %v4994_v38  ;;  %v4996_v45 = vld [vmem:[%s6305_s1 + $0x70] sm:$0xff]   ;;  %4399 = vmatprep.mubr.msk.bf16.mxu1 %vm391_vm2, %v6400_v44 }
  0x59   : > { %v1271_v22 = vrot.slane %v6395_v6, 5  ;;  %v1908_v1 = vrot.slane %v6397_v15, 5  ;;  %v779_v48 = vrot.slane %v778_v10, 4  ;;  %v3775_v36 = vcombine.low %v5709_v39, %v5719_v9  ;;  %4588 = vmatmul.mubr.msk.bf16.vlgmr.msra.gmra.mrb[0].mxu0 %vm391_vm2, %v5687_v42  ;;  %v5815_v15 = vld [vmem:[%s5143_s6 + $0x50] sm:$0xf]  ;;  %v5015_v39 = vld [vmem:[%s6305_s1 + $0x228] sm:$0xff]  }
  0x5a   : > { %v1905_v60 = vrot.slane %v6396_v17, 4  ;;  %v784_v27 = vor.u32 %v5667_v16, %v782_v19  ;;  %v6398_v29 = vshll.u32 %v5382_v58, 16  ;;  %v6399_v6 = vshll.u32 %v5395_v51, 16  ;;  %4596 = vmatpush3.bf16.msra.mxu0 %v4993_v50  ;;  %4591 = vmatprep.mubr.msk.bf16.mxu0 %vm391_vm2, %v5694_v26  ;;  %v4997_v51 = vld [vmem:[%s6305_s1 + $0x1f0] sm:$0xff]   ;;  %v5003_v17 = vld [vmem:[%s6305_s1 + $0x200] sm:$0xff]  }
  0x5b   : > { %v1272_v4 = vor.u32 %v1271_v22, %v1268_v13  ;;  %v5742_v10 = vcombine.low %v5379_v33, %v5424_v49  ;;  %v5746_v16 = vcombine.low %v5505_v35, %v5478_v54  ;;  %v5750_v58 = vcombine.low %v5546_v55, %v5607_v31  ;;  %4597 = vmatprep.subr.bf16.mxu0 %v4995_v3  ;;  %v5001_v22 = vld [vmem:[%s6305_s1 + $0x80] sm:$0xff]  }
  0x5c   : > { %v1277_v52 = vrot.slane %v6398_v29, 5  ;;  %v1909_v12 = vor.u32 %v1908_v1, %v1905_v60  ;;  %v1914_v41 = vrot.slane %v6399_v6, 5  ;;  %v5760_v33 = vcombine.low %v1666_v28, %v5715_v8  ;;  %4406 = vmatpush3.bf16.msra.mxu1 %v4994_v38  ;;  %v6402_v60 = vld [vmem:[#allocation2_spill] sm:$0xff]  ;;  %v5819_v1 = vld [vmem:[%s5143_s6 + $0x54] sm:$0x3] }
  0x5d   : > { %v1273_v13 = vrot.slane %v1272_v4, 4  ;;  %v5764_v49 = vcombine.low %v5615_v14, %v5662_v11  ;;  %v775_v54 = vsel %vm5461_vm9, %v769_v30, %v774_v5  ;;  %v5770_v35 = vsel %vm5461_vm9, %v779_v48, %v784_v27  ;;  %4407 = vmatprep.subr.bf16.mxu1 %v4996_v45  ;;  %v4998_v14 = vld [vmem:[%s6305_s1 + $0x78] sm:$0xff]   ;;  %v5075_v5 = vld [vmem:[%s5143_s6 + $0x28] sm:$0xf] }
  0x5e   : > { %v1910_v50 = vrot.slane %v1909_v12, 4  ;;  %v5777_v31 = vcombine.low %v5673_v24, %v1666_v28  ;;  %4598 = vmatpush3.bf16.msra.mxu0 %v4995_v3  ;;  %v3856_v0 = vcombine.low %v5770_v35, %v5501_v40  ;;  %v5790_v38 = vcombine.low %v5371_v25, %v5390_v56  ;;  %v4999_v24 = vld [vmem:[%s6305_s1 + $0x1f8] sm:$0xff]   ;;  %v6401_v28 = vld [vmem:[#allocation12_spill] sm:$0xff]  ;;  %v5004_v27 = vld [vmem:[%s6305_s1 + $0x88] sm:$0xff]  }
  0x5f   : > { %v5774_v55 = vsel %vm5301_vm6, %v1273_v13, %v1277_v52  ;;  %4599 = vmatprep.subr.bf16.mxu0 %v4997_v51  ;;  %v3877_v3 = vcombine.low %v5719_v9, %v5601_v47  ;;  %4400 = vmatmul.mubr.msk.bf16.gmra.mrb[4].mxu1 %vm391_vm2, %v6401_v28  ;;  %v3747_v30 = vcombine.low %v775_v54, %v5770_v35  ;;  %v4045_v4 = vrot.slane %v5815_v15, 10  ;;  %v5005_v52 = vld [vmem:[%s6305_s1 + $0x208] sm:$0xff]   ;;  %v5863_v13 = vld [vmem:[%s5143_s6 + $0x58] sm:$0xf]  ;;  %v5050_v40 = vld [vmem:[%s6305_s1 + $0x130] sm:$0xff]  }
  0x60   : > { %v5784_v11 = vsel %vm5301_vm6, %v1910_v50, %v1914_v41  ;;  %4408 = vmatpush3.bf16.msra.mxu1 %v4996_v45  ;;  %v5823_v48 = vcombine.low %v5075_v5, %v5195_v21  ;;  %v2855_v29 = vrot.slane %v5819_v1, 6  ;;  %v5835_v12 = vcombine.low %v5315_v2, %v5371_v25  ;;  %v5007_v2 = vld [vmem:[%s6305_s1 + $0x90] sm:$0xff]   ;;  %v5010_v45 = vld [vmem:[%s6305_s1 + $0x98] sm:$0xff]   ;;  %v6416_v47 = vld [vmem:[#allocation18_spill] sm:$0xff] }
  0x61   : > { %v5799_v19 = vcombine.low %v5774_v55, %v5784_v11  ;;  %4592 = vmatmul.mubr.msk.bf16.gmra.mrb[4].mxu0 %vm391_vm2, %v5760_v33  ;;  %4409 = vmatprep.subr.bf16.mxu1 %v4998_v14  ;;  %v2492_v6 = vshrl.u32 %v5815_v15, 16  ;;  %v2495_v25 = vshll.u32 %v5815_v15, 16  ;;  %v5011_v50 = vld [vmem:[%s6305_s1 + $0x218] sm:$0xff]   ;;  %v3081_v35 = vshrl.u32 %v5863_v13, 16  ;;  %v5059_v9 = vld [vmem:[%s6305_s1 + $0x150] sm:$0xff]  }
  0x62   : > { %4600 = vmatpush3.bf16.msra.mxu0 %v4997_v51  ;;  %4603 = vmatprep.mubr.msk.bf16.mxu0 %vm391_vm2, %v6402_v60  ;;  %v5841_v21 = vsel %vm5578_vm12, %v4045_v4, %v2855_v29  ;;  %v3984_v51 = vcombine.low %v5390_v56, %v5815_v15  ;;  %v6403_v56 = vld [vmem:[#allocation13_spill] sm:$0xff]  ;;  %v5012_v29 = vld [vmem:[%s6305_s1 + $0xa0] sm:$0xff]  }
  0x63   : > { %4601 = vmatprep.subr.bf16.mxu0 %v4999_v24  ;;  %4411 = vmatprep.mubr.msk.bf16.mxu1 %vm391_vm2, %v3747_v30  ;;  %v4054_v41 = vcombine.low %v5715_v8, %v5841_v21  ;;  %v2494_v54 = vrot.slane %v2492_v6, 4  ;;  %v2497_v30 = vrot.slane %v2495_v25, 5  ;;  %v5047_v8 = vld [vmem:[%s6305_s1 + $0x128] sm:$0xff]  }
  0x64   : > { %4410 = vmatpush3.bf16.msra.mxu1 %v4998_v14  ;;  %v5873_v14 = vld [vmem:[%s5143_s6 + $0x5c] sm:$0x3] }
  0x65   : > { %4419 = vmatprep.subr.bf16.mxu1 %v5001_v22 }
  0x66   : > { %4602 = vmatpush3.bf16.msra.mxu0 %v4999_v24  ;;  %v4132_v24 = vrot.slane %v5863_v13, 10 }
  0x67   : > { %4611 = vmatprep.subr.bf16.mxu0 %v5003_v17  ;;  %4412 = vmatmul.mubr.msk.bf16.vlgmr.msra.gmra.mrb[0].mxu1 %vm391_vm2, %v5515_v57  ;;  %v5009_v57 = vld [vmem:[%s6305_s1 + $0x210] sm:$0xff]  }
  0x68   : > { %4420 = vmatpush3.bf16.msra.mxu1 %v5001_v22  ;;  %4415 = vmatprep.mubr.msk.bf16.mxu1 %vm391_vm2, %v5493_v23  ;;  %v3444_v22 = vrot.slane %v5873_v14, 6 }
  0x69   : > { %4604 = vmatmul.mubr.msk.bf16.vlgmr.msra.gmra.mrb[0].mxu0 %vm391_vm2, %v5823_v48  ;;  %4421 = vmatprep.subr.bf16.mxu1 %v5004_v27 }
  0x6a   : > { %4612 = vmatpush3.bf16.msra.mxu0 %v5003_v17  ;;  %4607 = vmatprep.mubr.msk.bf16.mxu0 %vm391_vm2, %v5835_v12  ;;  %v6404_v17 = vld [vmem:[#allocation10_spill] sm:$0xff]  ;;  %v5887_v4 = vsel %vm5578_vm12, %v4132_v24, %v3444_v22  ;;  %v5077_v22 = vld [vmem:[%s5143_s6 + $0x10] sm:$0xf] }
  0x6b   : > { %4613 = vmatprep.subr.bf16.mxu0 %v5005_v52  ;;  %v5881_v5 = vcombine.low %v6404_v17, %v6403_v56  ;;  %v2501_v56 = vshll.u32 %v5819_v1, 16 }
  0x6c   : > { %4422 = vmatpush3.bf16.msra.mxu1 %v5004_v27  ;;  %v4141_v27 = vcombine.low %v5841_v21, %v5887_v4 }
  0x6d   : > { %4423 = vmatprep.subr.bf16.mxu1 %v5007_v2  ;;  %v2503_v24 = vrot.slane %v2501_v56, 5 }
  0x6e   : > { %4614 = vmatpush3.bf16.msra.mxu0 %v5005_v52  ;;  %v2498_v52 = vor.u32 %v2497_v30, %v2494_v54  ;;  %v5076_v30 = vld [vmem:[%s5143_s6 + $0x8] sm:$0xf] }
  0x6f   : > { %4615 = vmatprep.subr.bf16.mxu0 %v5009_v57  ;;  %4416 = vmatmul.mubr.msk.bf16.gmra.mrb[4].mxu1 %vm391_vm2, %v5558_v63  ;;  %v3795_v17 = vcombine.low %v5076_v30, %v5077_v22  ;;  %v2733_v30 = vrot.slane %v2495_v25, 6  ;;  %v2736_v22 = vshrl.u32 %v5819_v1, 16 }
  0x70   : > { %4424 = vmatpush3.bf16.msra.mxu1 %v5007_v2  ;;  %4427 = vmatprep.mubr.msk.bf16.mxu1 %vm391_vm2, %v3775_v36  ;;  %v6405_v2 = vld [vmem:[#allocation14_spill] sm:$0xff]  ;;  %v2499_v54 = vrot.slane %v2498_v52, 4  ;;  %v5016_v36 = vld [vmem:[%s6305_s1 + $0xb0] sm:$0xff]  }
  0x71   : > { %4608 = vmatmul.mubr.msk.bf16.gmra.mrb[4].mxu0 %vm391_vm2, %v3984_v51  ;;  %4425 = vmatprep.subr.bf16.mxu1 %v5010_v45  ;;  %v5014_v51 = vld [vmem:[%s6305_s1 + $0xa8] sm:$0xff]   ;;  %v5022_v52 = vld [vmem:[%s6305_s1 + $0x240] sm:$0xff]  }
  0x72   : > { %4616 = vmatpush3.bf16.msra.mxu0 %v5009_v57  ;;  %4619 = vmatprep.mubr.msk.bf16.mxu0 %vm391_vm2, %v5881_v5  ;;  %v5907_v57 = vcombine.low %v6405_v2, %v5482_v61  ;;  %v5919_v61 = vcombine.low %v5490_v53, %v5774_v55  ;;  %v5017_v53 = vld [vmem:[%s6305_s1 + $0x230] sm:$0xff]   ;;  %v5018_v55 = vld [vmem:[%s6305_s1 + $0xb8] sm:$0xff]   ;;  %v4010_v2 = vrot.slane %v5815_v15, 9 }
  0x73   : > { %4617 = vmatprep.subr.bf16.mxu0 %v5011_v50 }
  0x74   : > { %4426 = vmatpush3.bf16.msra.mxu1 %v5010_v45  ;;  %v5930_v45 = vsel %vm5301_vm6, %v2499_v54, %v2503_v24  ;;  %v5024_v54 = vld [vmem:[%s6305_s1 + $0x248] sm:$0xff]   ;;  %v6407_v24 = vld [vmem:[#allocation6_spill] sm:$0xff] }
  0x75   : > { %4435 = vmatprep.subr.bf16.mxu1 %v5012_v29 }
  0x76   : > { %4618 = vmatpush3.bf16.msra.mxu0 %v5011_v50  ;;  %v5019_v50 = vld [vmem:[%s6305_s1 + $0x238] sm:$0xff]  }
  0x77   : > { %4627 = vmatprep.subr.bf16.mxu0 %v5013_v62  ;;  %4428 = vmatmul.mubr.msk.bf16.vlgmr.msra.gmra.mrb[0].mxu1 %vm391_vm2, %v5635_v18  ;;  %v4001_v18 = vcombine.low %v5784_v11, %v5930_v45  ;;  %v5021_v11 = vld [vmem:[%s6305_s1 + $0xc0] sm:$0xff]  }
  0x78   : > { %4436 = vmatpush3.bf16.msra.mxu1 %v5012_v29  ;;  %4431 = vmatprep.mubr.msk.bf16.mxu1 %vm391_vm2, %v5687_v42  ;;  %v6406_v29 = vld [vmem:[#allocation5_spill] sm:$0xff] }
  0x79   : > { %4620 = vmatmul.mubr.msk.bf16.vlgmr.msra.gmra.mrb[0].mxu0 %vm391_vm2, %v5907_v57  ;;  %4437 = vmatprep.subr.bf16.mxu1 %v5014_v51 }
  0x7a   : > { %4628 = vmatpush3.bf16.msra.mxu0 %v5013_v62  ;;  %4623 = vmatprep.mubr.msk.bf16.mxu0 %vm391_vm2, %v5919_v61  ;;  %v5023_v62 = vld [vmem:[%s6305_s1 + $0xc8] sm:$0xff]  }
  0x7b   : > { %4629 = vmatprep.subr.bf16.mxu0 %v5015_v39 }
  0x7c   : > { %4438 = vmatpush3.bf16.msra.mxu1 %v5014_v51  ;;  %v2619_v51 = vrot.slane %v5819_v1, 5  ;;  %v5031_v1 = vld [vmem:[%s6305_s1 + $0xe8] sm:$0xff]  }
  0x7d   : > { %4439 = vmatprep.subr.bf16.mxu1 %v5016_v36 }
  0x7e   : > { %4630 = vmatpush3.bf16.msra.mxu0 %v5015_v39  ;;  %v5025_v39 = vld [vmem:[%s6305_s1 + $0xd0] sm:$0xff]  }
  0x7f   : > { %4631 = vmatprep.subr.bf16.mxu0 %v5017_v53  ;;  %4432 = vmatmul.mubr.msk.bf16.gmra.mrb[4].mxu1 %vm391_vm2, %v5694_v26 }
  0x80   : > { %4440 = vmatpush3.bf16.msra.mxu1 %v5016_v36  ;;  %4443 = vmatprep.mubr.msk.bf16.mxu1 %vm391_vm2, %v3795_v17  ;;  %v5978_v36 = vsel %vm5190_vm3, %v4010_v2, %v2619_v51  ;;  %v2738_v17 = vrot.slane %v2736_v22, 5  ;;  %v5040_v22 = vld [vmem:[%s6305_s1 + $0x288] sm:$0xff]  }
  0x81   : > { %4624 = vmatmul.mubr.msk.bf16.gmra.mrb[4].mxu0 %vm391_vm2, %v4001_v18  ;;  %4441 = vmatprep.subr.bf16.mxu1 %v5018_v55 }
  0x82   : > { %4632 = vmatpush3.bf16.msra.mxu0 %v5017_v53  ;;  %4635 = vmatprep.mubr.msk.bf16.mxu0 %vm391_vm2, %v6406_v29  ;;  %v6408_v53 = vld [vmem:[#allocation16_spill] sm:$0xff] }
  0x83   : > { %4633 = vmatprep.subr.bf16.mxu0 %v5019_v50  ;;  %v4019_v18 = vcombine.low %v6408_v53, %v5978_v36 }
  0x84   : > { %4442 = vmatpush3.bf16.msra.mxu1 %v5018_v55  ;;  %v5027_v55 = vld [vmem:[%s6305_s1 + $0xd8] sm:$0xff]  }
  0x85   : > { %4451 = vmatprep.subr.bf16.mxu1 %v5021_v11 }
  0x86   : > { %4634 = vmatpush3.bf16.msra.mxu0 %v5019_v50  ;;  %v2732_v50 = vrot.slane %v2492_v6, 5  ;;  %v5029_v6 = vld [vmem:[%s6305_s1 + $0xe0] sm:$0xff]  }
  0x87   : > { %4643 = vmatprep.subr.bf16.mxu0 %v5022_v52  ;;  %4444 = vmatmul.mubr.msk.bf16.vlgmr.msra.gmra.mrb[0].mxu1 %vm391_vm2, %v6402_v60  ;;  %v5026_v60 = vld [vmem:[%s6305_s1 + $0x250] sm:$0xff]  }
  0x88   : > { %4452 = vmatpush3.bf16.msra.mxu1 %v5021_v11  ;;  %4447 = vmatprep.mubr.msk.bf16.mxu1 %vm391_vm2, %v5823_v48  ;;  %v5028_v48 = vld [vmem:[%s6305_s1 + $0x258] sm:$0xff]   ;;  %v2734_v25 = vor.u32 %v2733_v30, %v2732_v50  ;;  %v2739_v11 = vrot.slane %v2501_v56, 6  ;;  %v6412_v50 = vld [vmem:[#allocation3_spill] sm:$0xff] }
  0x89   : > { %4636 = vmatmul.mubr.msk.bf16.vlgmr.msra.gmra.mrb[0].mxu0 %vm391_vm2, %v6407_v24  ;;  %4453 = vmatprep.subr.bf16.mxu1 %v5023_v62  ;;  %v5039_v30 = vld [vmem:[%s6305_s1 + $0x108] sm:$0xff]  }
  0x8a   : > { %4644 = vmatpush3.bf16.msra.mxu0 %v5022_v52  ;;  %4639 = vmatprep.mubr.msk.bf16.mxu0 %vm391_vm2, %v5742_v10  ;;  %v6409_v52 = vld [vmem:[#allocation8_spill] sm:$0xff]  ;;  %v2735_v56 = vrot.slane %v2734_v25, 4  ;;  %v2740_v51 = vor.u32 %v2739_v11, %v2738_v17  ;;  %v6414_v25 = vld [vmem:[#allocation19_spill] sm:$0xff]  ;;  %v4071_v17 = vcombine.low %v5815_v15, %v5863_v13  ;;  %v5053_v11 = vld [vmem:[%s6305_s1 + $0x138] sm:$0xff]  }
  0x8b   : > { %4645 = vmatprep.subr.bf16.mxu0 %v5024_v54  ;;  %v5055_v15 = vld [vmem:[%s6305_s1 + $0x140] sm:$0xff]  }
  0x8c   : > { %4454 = vmatpush3.bf16.msra.mxu1 %v5023_v62  ;;  %v6410_v62 = vld [vmem:[#allocation9_spill] sm:$0xff] }
  0x8d   : > { %4455 = vmatprep.subr.bf16.mxu1 %v5025_v39  ;;  %v6411_v2 = vcombine.low %v6409_v52, %v6410_v62 }
  0x8e   : > { %4646 = vmatpush3.bf16.msra.mxu0 %v5024_v54  ;;  %v5032_v54 = vld [vmem:[%s6305_s1 + $0x268] sm:$0xff]  }
  0x8f   : > { %4647 = vmatprep.subr.bf16.mxu0 %v5026_v60  ;;  %4448 = vmatmul.mubr.msk.bf16.gmra.mrb[4].mxu1 %vm391_vm2, %v5835_v12  ;;  %v5030_v12 = vld [vmem:[%s6305_s1 + $0x260] sm:$0xff]  }
  0x90   : > { %4456 = vmatpush3.bf16.msra.mxu1 %v5025_v39  ;;  %4459 = vmatprep.mubr.msk.bf16.mxu1 %vm391_vm2, %v6411_v2  ;;  %v5033_v39 = vld [vmem:[%s6305_s1 + $0xf0] sm:$0xff]   ;;  %v3090_v2 = vshll.u32 %v5873_v14, 16 }
  0x91   : > { %4640 = vmatmul.mubr.msk.bf16.gmra.mrb[4].mxu0 %vm391_vm2, %v4019_v18  ;;  %4457 = vmatprep.subr.bf16.mxu1 %v5027_v55  ;;  %v5035_v18 = vld [vmem:[%s6305_s1 + $0xf8] sm:$0xff]  }
  0x92   : > { %4648 = vmatpush3.bf16.msra.mxu0 %v5026_v60  ;;  %4651 = vmatprep.mubr.msk.bf16.mxu0 %vm391_vm2, %v5746_v16  ;;  %v6032_v60 = vsel %vm5461_vm9, %v2735_v56, %v2740_v51  ;;  %v5057_v56 = vld [vmem:[%s6305_s1 + $0x148] sm:$0xff]  }
  0x93   : > { %4649 = vmatprep.subr.bf16.mxu0 %v5028_v48  ;;  %v4036_v53 = vcombine.low %v5628_v37, %v6032_v60  ;;  %v5037_v37 = vld [vmem:[%s6305_s1 + $0x100] sm:$0xff]  }
  0x94   : > { %4458 = vmatpush3.bf16.msra.mxu1 %v5027_v55  ;;  %v5036_v55 = vld [vmem:[%s6305_s1 + $0x278] sm:$0xff]  }
  0x95   : > { %4467 = vmatprep.subr.bf16.mxu1 %v5029_v6 }
  0x96   : > { %4650 = vmatpush3.bf16.msra.mxu0 %v5028_v48  ;;  %v5042_v48 = vld [vmem:[%s6305_s1 + $0x290] sm:$0xff]  }
  0x97   : > { %4659 = vmatprep.subr.bf16.mxu0 %v5030_v12  ;;  %4460 = vmatmul.mubr.msk.bf16.vlgmr.msra.gmra.mrb[0].mxu1 %vm391_vm2, %v5881_v5  ;;  %v5034_v5 = vld [vmem:[%s6305_s1 + $0x270] sm:$0xff]  }
  0x98   : > { %4468 = vmatpush3.bf16.msra.mxu1 %v5029_v6  ;;  %4463 = vmatprep.mubr.msk.bf16.mxu1 %vm391_vm2, %v5907_v57  ;;  %v5038_v57 = vld [vmem:[%s6305_s1 + $0x280] sm:$0xff]   ;;  %v5044_v6 = vld [vmem:[%s6305_s1 + $0x298] sm:$0xff]  }
  0x99   : > { %4652 = vmatmul.mubr.msk.bf16.vlgmr.msra.gmra.mrb[0].mxu0 %vm391_vm2, %v5548_v43  ;;  %4469 = vmatprep.subr.bf16.mxu1 %v5031_v1 }
  0x9a   : > { %4660 = vmatpush3.bf16.msra.mxu0 %v5030_v12  ;;  %4655 = vmatprep.mubr.msk.bf16.mxu0 %vm391_vm2, %v5750_v58  ;;  %v3083_v12 = vrot.slane %v3081_v35, 4 }
  0x9b   : > { %4661 = vmatprep.subr.bf16.mxu0 %v5032_v54 }
  0x9c   : > { %4470 = vmatpush3.bf16.msra.mxu1 %v5031_v1  ;;  %v6415_v1 = vld [vmem:[#allocation15_spill] sm:$0xff] }
  0x9d   : > { %4471 = vmatprep.subr.bf16.mxu1 %v5033_v39 }
  0x9e   : > { %4662 = vmatpush3.bf16.msra.mxu0 %v5032_v54  ;;  %v3092_v54 = vrot.slane %v3090_v2, 5 }
  0x9f   : > { %4663 = vmatprep.subr.bf16.mxu0 %v5034_v5  ;;  %4464 = vmatmul.mubr.msk.bf16.gmra.mrb[4].mxu1 %vm391_vm2, %v5919_v61  ;;  %v6413_v61 = vcombine.low %v5243_v46, %v6412_v50  ;;  %v5041_v46 = vld [vmem:[%s6305_s1 + $0x110] sm:$0xff]  }
  0xa0   : > { %4472 = vmatpush3.bf16.msra.mxu1 %v5033_v39  ;;  %v5058_v39 = vld [vmem:[%s6305_s1 + $0x2c8] sm:$0xff]  }
  0xa1   : > { %4656 = vmatmul.mubr.msk.bf16.gmra.mrb[4].mxu0 %vm391_vm2, %v4036_v53  ;;  %4473 = vmatprep.subr.bf16.mxu1 %v5035_v18  ;;  %v5062_v53 = vld [vmem:[%s6305_s1 + $0x2d8] sm:$0xff]  }
  0xa2   : > { %4664 = vmatpush3.bf16.msra.mxu0 %v5034_v5  ;;  %4667 = vmatprep.mubr.msk.bf16.mxu0 %vm391_vm2, %v5764_v49 }
  0xa3   : > { %4665 = vmatprep.subr.bf16.mxu0 %v5036_v55  ;;  %4475 = vmatprep.mubr.msk.bf16.mxu1 %vm391_vm2, %v6413_v61  ;;  %v6418_v61 = vld [vmem:[#allocation17_spill] sm:$0xff] }
  0xa4   : > { %4474 = vmatpush3.bf16.msra.mxu1 %v5035_v18  ;;  %v6417_v18 = vld [vmem:[#allocation7_spill] sm:$0xff] }
  0xa5   : > { %4483 = vmatprep.subr.bf16.mxu1 %v5037_v37 }
  0xa6   : > { %4666 = vmatpush3.bf16.msra.mxu0 %v5036_v55  ;;  %v4097_v55 = vrot.slane %v5863_v13, 9 }
  0xa7   : > { %4675 = vmatprep.subr.bf16.mxu0 %v5038_v57  ;;  %4476 = vmatmul.mubr.msk.bf16.vlgmr.msra.gmra.mrb[0].mxu1 %vm391_vm2, %v6406_v29  ;;  %v5043_v29 = vld [vmem:[%s6305_s1 + $0x118] sm:$0xff]  }
  0xa8   : > { %4484 = vmatpush3.bf16.msra.mxu1 %v5037_v37  ;;  %4479 = vmatprep.mubr.msk.bf16.mxu1 %vm391_vm2, %v6407_v24  ;;  %v5045_v24 = vld [vmem:[%s6305_s1 + $0x120] sm:$0xff]   ;;  %v3208_v37 = vrot.slane %v5873_v14, 5 }
  0xa9   : > { %4668 = vmatmul.mubr.msk.bf16.vlgmr.msra.gmra.mrb[0].mxu0 %vm391_vm2, %v5638_v34  ;;  %4485 = vmatprep.subr.bf16.mxu1 %v5039_v30 }
  0xaa   : > { %4676 = vmatpush3.bf16.msra.mxu0 %v5038_v57  ;;  %4671 = vmatprep.mubr.msk.bf16.mxu0 %vm391_vm2, %v5777_v31  ;;  %v5067_v57 = vld [vmem:[%s6305_s1 + $0x170] sm:$0xff]   ;;  %v3209_v50 = vsel %vm5190_vm3, %v4097_v55, %v3208_v37 }
  0xab   : > { %4677 = vmatprep.subr.bf16.mxu0 %v5040_v22 }
  0xac   : > { %4486 = vmatpush3.bf16.msra.mxu1 %v5039_v30  ;;  %v3321_v30 = vrot.slane %v3081_v35, 5 }
  0xad   : > { %4487 = vmatprep.subr.bf16.mxu1 %v5041_v46 }
  0xae   : > { %4678 = vmatpush3.bf16.msra.mxu0 %v5040_v22 }
  0xaf   : > { %4679 = vmatprep.subr.bf16.mxu0 %v5042_v48  ;;  %4480 = vmatmul.mubr.msk.bf16.gmra.mrb[4].mxu1 %vm391_vm2, %v5742_v10  ;;  %v5046_v10 = vld [vmem:[%s6305_s1 + $0x2a0] sm:$0xff]  }
  0xb0   : > { %4488 = vmatpush3.bf16.msra.mxu1 %v5041_v46  ;;  %4491 = vmatprep.mubr.msk.bf16.mxu1 %vm391_vm2, %v3856_v0  ;;  %v3084_v0 = vshll.u32 %v5863_v13, 16  ;;  %v3325_v46 = vshrl.u32 %v5873_v14, 16  ;;  %v3328_v13 = vrot.slane %v3090_v2, 6  ;;  %v5072_v14 = vld [vmem:[%s6305_s1 + $0x308] sm:$0xff]  }
  0xb1   : > { %4672 = vmatmul.mubr.msk.bf16.gmra.mrb[4].mxu0 %vm391_vm2, %v4054_v41  ;;  %4489 = vmatprep.subr.bf16.mxu1 %v5043_v29  ;;  %v5048_v41 = vld [vmem:[%s6305_s1 + $0x2a8] sm:$0xff]  }
  0xb2   : > { %4680 = vmatpush3.bf16.msra.mxu0 %v5042_v48  ;;  %4683 = vmatprep.mubr.msk.bf16.mxu0 %vm391_vm2, %v5326_v7  ;;  %v3086_v52 = vrot.slane %v3084_v0, 5  ;;  %v3322_v22 = vrot.slane %v3084_v0, 6  ;;  %v5070_v48 = vld [vmem:[%s6305_s1 + $0x2f8] sm:$0xff]  }
  0xb3   : > { %4681 = vmatprep.subr.bf16.mxu0 %v5044_v6 }
  0xb4   : > { %4490 = vmatpush3.bf16.msra.mxu1 %v5043_v29  ;;  %v3087_v62 = vor.u32 %v3086_v52, %v3083_v12  ;;  %v3327_v29 = vrot.slane %v3325_v46, 5 }
  0xb5   : > { %4499 = vmatprep.subr.bf16.mxu1 %v5045_v24 }
  0xb6   : > { %4682 = vmatpush3.bf16.msra.mxu0 %v5044_v6  ;;  %v3088_v51 = vrot.slane %v3087_v62, 4  ;;  %v5071_v6 = vld [vmem:[%s6305_s1 + $0x300] sm:$0xff]  }
  0xb7   : > { %4691 = vmatprep.subr.bf16.mxu0 %v5046_v10  ;;  %4492 = vmatmul.mubr.msk.bf16.vlgmr.msra.gmra.mrb[0].mxu1 %vm391_vm2, %v5746_v16  ;;  %v5052_v16 = vld [vmem:[%s6305_s1 + $0x2b0] sm:$0xff]  }
  0xb8   : > { %4500 = vmatpush3.bf16.msra.mxu1 %v5045_v24  ;;  %4495 = vmatprep.mubr.msk.bf16.mxu1 %vm391_vm2, %v5548_v43  ;;  %v5054_v43 = vld [vmem:[%s6305_s1 + $0x2b8] sm:$0xff]   ;;  %v6419_v24 = vld [vmem:[#allocation11_spill] sm:$0xff] }
  0xb9   : > { %4684 = vmatmul.mubr.msk.bf16.vlgmr.msra.gmra.mrb[0].mxu0 %vm391_vm2, %v6414_v25  ;;  %4501 = vmatprep.subr.bf16.mxu1 %v5047_v8 }
  0xba   : > { %4692 = vmatpush3.bf16.msra.mxu0 %v5046_v10  ;;  %4687 = vmatprep.mubr.msk.bf16.mxu0 %vm391_vm2, %v5790_v38  ;;  %v3329_v10 = vor.u32 %v3328_v13, %v3327_v29 }
  0xbb   : > { %4693 = vmatprep.subr.bf16.mxu0 %v5048_v41 }
  0xbc   : > { %4502 = vmatpush3.bf16.msra.mxu1 %v5047_v8  ;;  %v6420_v8 = vld [vmem:[#allocation20_spill] sm:$0xff] }
  0xbd   : > { %4503 = vmatprep.subr.bf16.mxu1 %v5050_v40 }
  0xbe   : > { %4694 = vmatpush3.bf16.msra.mxu0 %v5048_v41  ;;  %v5073_v41 = vld [vmem:[%s6305_s1 + $0x310] sm:$0xff]  }
  0xbf   : > { %4695 = vmatprep.subr.bf16.mxu0 %v5052_v16  ;;  %4496 = vmatmul.mubr.msk.bf16.gmra.mrb[4].mxu1 %vm391_vm2, %v5750_v58  ;;  %v5056_v58 = vld [vmem:[%s6305_s1 + $0x2c0] sm:$0xff]  }
  0xc0   : > { %4504 = vmatpush3.bf16.msra.mxu1 %v5050_v40  ;;  %4507 = vmatprep.mubr.msk.bf16.mxu1 %vm391_vm2, %v3877_v3  ;;  %v3093_v3 = vsel %vm5301_vm6, %v3088_v51, %v3092_v54  ;;  %v4151_v54 = vld [vmem:[%s6307_s3] ss:$0 sm:$0xff] }
  0xc1   : > { %4688 = vmatmul.mubr.msk.bf16.gmra.mrb[4].mxu0 %vm391_vm2, %v4071_v17  ;;  %4505 = vmatprep.subr.bf16.mxu1 %v5053_v11  ;;  %v4088_v5 = vcombine.low %v5930_v45, %v3093_v3  ;;  %v5064_v45 = vld [vmem:[%s6305_s1 + $0x2e0] sm:$0xff]  }
  0xc2   : > { %4696 = vmatpush3.bf16.msra.mxu0 %v5052_v16  ;;  %4699 = vmatprep.mubr.msk.bf16.mxu0 %vm391_vm2, %v6415_v1 }
  0xc3   : > { %4697 = vmatprep.subr.bf16.mxu0 %v5054_v43 }
  0xc4   : > { %4506 = vmatpush3.bf16.msra.mxu1 %v5053_v11 }
  0xc5   : > { %4515 = vmatprep.subr.bf16.mxu1 %v5055_v15 }
  0xc6   : > { %4698 = vmatpush3.bf16.msra.mxu0 %v5054_v43 }
  0xc7   : > { %4707 = vmatprep.subr.bf16.mxu0 %v5056_v58  ;;  %4508 = vmatmul.mubr.msk.bf16.vlgmr.msra.gmra.mrb[0].mxu1 %vm391_vm2, %v5764_v49  ;;  %v5060_v49 = vld [vmem:[%s6305_s1 + $0x2d0] sm:$0xff]  }
  0xc8   : > { %4516 = vmatpush3.bf16.msra.mxu1 %v5055_v15  ;;  %4511 = vmatprep.mubr.msk.bf16.mxu1 %vm391_vm2, %v5638_v34  ;;  %v5063_v34 = vld [vmem:[%s6305_s1 + $0x160] sm:$0xff]  }
  0xc9   : > { %4700 = vmatmul.mubr.msk.bf16.vlgmr.msra.gmra.mrb[0].mxu0 %vm391_vm2, %v6416_v47  ;;  %4517 = vmatprep.subr.bf16.mxu1 %v5057_v56 }
  0xca   : > { %4708 = vmatpush3.bf16.msra.mxu0 %v5056_v58  ;;  %4703 = vmatprep.mubr.msk.bf16.mxu0 %vm391_vm2, %v5799_v19 }
  0xcb   : > { %4709 = vmatprep.subr.bf16.mxu0 %v5058_v39 }
  0xcc   : > { %4518 = vmatpush3.bf16.msra.mxu1 %v5057_v56 }
  0xcd   : > { %4519 = vmatprep.subr.bf16.mxu1 %v5059_v9 }
  0xce   : > { %4710 = vmatpush3.bf16.msra.mxu0 %v5058_v39 }
  0xcf   : > { %4711 = vmatprep.subr.bf16.mxu0 %v5060_v49  ;;  %4512 = vmatmul.mubr.msk.bf16.gmra.mrb[4].mxu1 %vm391_vm2, %v5777_v31  ;;  %v5065_v31 = vld [vmem:[%s6305_s1 + $0x168] sm:$0xff]  }
  0xd0   : > { %4520 = vmatpush3.bf16.msra.mxu1 %v5059_v9  ;;  %4523 = vmatprep.mubr.msk.bf16.mxu1 %vm391_vm2, %v6417_v18 }
  0xd1   : > { %4704 = vmatmul.mubr.msk.bf16.gmra.mrb[4].mxu0 %vm391_vm2, %v4088_v5  ;;  %4521 = vmatprep.subr.bf16.mxu1 %v5061_v32 }
  0xd2   : > { %4712 = vmatpush3.bf16.msra.mxu0 %v5060_v49  ;;  %4715 = vmatprep.mubr.msk.bf16.mxu0 %vm391_vm2, %v6400_v44  ;;  %v5066_v44 = vld [vmem:[%s6305_s1 + $0x2e8] sm:$0xff]  }
  0xd3   : > { %4713 = vmatprep.subr.bf16.mxu0 %v5062_v53 }
  0xd4   : > { %4522 = vmatpush3.bf16.msra.mxu1 %v5061_v32 }
  0xd5   : > { %4531 = vmatprep.subr.bf16.mxu1 %v5063_v34 }
  0xd6   : > { %4714 = vmatpush3.bf16.msra.mxu0 %v5062_v53 }
  0xd7   : > { %4723 = vmatprep.subr.bf16.mxu0 %v5064_v45  ;;  %4524 = vmatmul.mubr.msk.bf16.vlgmr.msra.gmra.mrb[0].mxu1 %vm391_vm2, %v5326_v7  ;;  %v5068_v7 = vld [vmem:[%s6305_s1 + $0x2f0] sm:$0xff]  }
  0xd8   : > { %4532 = vmatpush3.bf16.msra.mxu1 %v5063_v34  ;;  %4527 = vmatprep.mubr.msk.bf16.mxu1 %vm391_vm2, %v6414_v25 }
  0xd9   : > { %4716 = vmatmul.mubr.msk.bf16.vlgmr.msra.gmra.mrb[0].mxu0 %vm391_vm2, %v6401_v28  ;;  %4533 = vmatprep.subr.bf16.mxu1 %v5065_v31  ;;  %v4106_v28 = vcombine.low %v5978_v36, %v3209_v50  ;;  %v3323_v36 = vor.u32 %v3322_v22, %v3321_v30 }
  0xda   : > { %4724 = vmatpush3.bf16.msra.mxu0 %v5064_v45  ;;  %4719 = vmatprep.mubr.msk.bf16.mxu0 %vm391_vm2, %v6418_v61 }
  0xdb   : > { %4725 = vmatprep.subr.bf16.mxu0 %v5066_v44 }
  0xdc   : > { %4534 = vmatpush3.bf16.msra.mxu1 %v5065_v31 }
  0xdd   : > { %4535 = vmatprep.subr.bf16.mxu1 %v5067_v57 }
  0xde   : > { %4726 = vmatpush3.bf16.msra.mxu0 %v5066_v44 }
  0xdf   : > { %4727 = vmatprep.subr.bf16.mxu0 %v5068_v7  ;;  %4528 = vmatmul.mubr.msk.bf16.gmra.mrb[4].mxu1 %vm391_vm2, %v5790_v38  ;;  %v3324_v38 = vrot.slane %v3323_v36, 4 }
  0xe0   : > { %4536 = vmatpush3.bf16.msra.mxu1 %v5067_v57  ;;  %4539 = vmatprep.mubr.msk.bf16.mxu1 %vm391_vm2, %v6419_v24 }
  0xe1   : > { %4720 = vmatmul.mubr.msk.bf16.gmra.mrb[4].mxu0 %vm391_vm2, %v4106_v28  ;;  %4537 = vmatprep.subr.bf16.mxu1 %v5069_v20 }
  0xe2   : > { %4728 = vmatpush3.bf16.msra.mxu0 %v5068_v7  ;;  %4731 = vmatprep.mubr.msk.bf16.mxu0 %vm391_vm2, %v5493_v23  ;;  %v3330_v23 = vsel %vm5461_vm9, %v3324_v38, %v3329_v10 }
  0xe3   : > { %4729 = vmatprep.subr.bf16.mxu0 %v5070_v48 }
  0xe4   : > { %4538 = vmatpush3.bf16.msra.mxu1 %v5069_v20 }
  0xe5   : > { %4755 = vmatprep.subr.bf16.mxu1 %v5071_v6 }
  0xe6   : > { %4730 = vmatpush3.bf16.msra.mxu0 %v5070_v48 }
  0xe7   : > { %4739 = vmatprep.subr.bf16.mxu0 %v5071_v6  ;;  %4540 = vmatmul.mubr.msk.bf16.vlgmr.msra.gmra.mrb[0].mxu1 %vm391_vm2, %v6415_v1 }
  0xe8   : > { %4759 = vmatpush3.bf16.msra.mxu1 %v5071_v6  ;;  %4543 = vmatprep.mubr.msk.bf16.mxu1 %vm391_vm2, %v6416_v47 }
  0xe9   : > { %4732 = vmatmul.mubr.msk.bf16.vlgmr.msra.gmra.mrb[0].mxu0 %vm391_vm2, %v5558_v63  ;;  %4756 = vmatprep.subr.bf16.mxu1 %v5072_v14  ;;  %v4123_v63 = vcombine.low %v6032_v60, %v3330_v23 }
  0xea   : > { %4740 = vmatpush3.bf16.msra.mxu0 %v5071_v6  ;;  %4735 = vmatprep.mubr.msk.bf16.mxu0 %vm391_vm2, %v6420_v8 }
  0xeb   : > { %4741 = vmatprep.subr.bf16.mxu0 %v5072_v14 }
  0xec   : > { %4760 = vmatpush3.bf16.msra.mxu1 %v5072_v14 }
  0xed   : > { %4757 = vmatprep.subr.bf16.mxu1 %v5073_v41 }
  0xee   : > { %4742 = vmatpush3.bf16.msra.mxu0 %v5072_v14 }
  0xef   : > { %4743 = vmatprep.subr.bf16.mxu0 %v5073_v41  ;;  %4544 = vmatmul.mubr.msk.bf16.gmra.mrb[4].mxu1 %vm391_vm2, %v5799_v19 }
  0xf0   : > { %4761 = vmatpush3.bf16.msra.mxu1 %v5073_v41  ;;  %4751 = vmatprep.mubr.msk.bf16.mxu1 %vm391_vm2, %v5760_v33 }
  0xf1   : > { %4736 = vmatmul.mubr.msk.bf16.gmra.mrb[4].mxu0 %vm391_vm2, %v4123_v63  ;;  %4758 = vmatprep.subr.bf16.mxu1 %v5074_v59 }
  0xf2   : > { %4744 = vmatpush3.bf16.msra.mxu0 %v5073_v41  ;;  %4747 = vmatprep.mubr.msk.bf16.mxu0 %vm391_vm2, %v5687_v42 }
  0xf3   : > { %4745 = vmatprep.subr.bf16.mxu0 %v5074_v59 }
  0xf4   : > { %4762 = vmatpush3.bf16.msra.mxu1 %v5074_v59 }
  0xf6   : > { %4746 = vmatpush3.bf16.msra.mxu0 %v5074_v59 }
  0xf7   : > { %4752 = vmatmul.mubr.msk.bf16.vlgmr.msra.gmra.mrb[8].mxu1 %vm391_vm2, %v4141_v27 }
  0xf9   : > { %4748 = vmatmul.mubr.msk.bf16.vlgmr.msra.gmra.mrb[0].mxu0 %vm391_vm2, %v5694_v26  ;;  %v4150_v26 = vld [vmem:[%s6306_s2] ss:$0 sm:$0xff] }
 0x1ba   : > { %v4541_v19 = vpop.f32.mrb[0].mxu1 }
 0x1bb   : > { %v1988_v60 = vpop.f32.mrb[1].mxu1 }
 0x1bc   : > { %v4542_v25 = vpop.f32.mrb[2].mxu1 }
 0x1bd   : > { %v1991_v40 = vpop.f32.mrb[3].mxu1 }
 0x1c2   : > { %v4545_v35 = vpop.f32.mrb[4].mxu1 }
 0x1c3   : > { %v2004_v42 = vpop.f32.mrb[5].mxu1 }
 0x1c4   : > { %v4737_v0 = vpop.f32.mrb[4].mxu0  ;;  %v4546_v33 = vpop.f32.mrb[6].mxu1 }
 0x1c5   : > { %v4767_v16 = vadd.f32 %v4737_v0, %v4545_v35  ;;  %v3419_v17 = vpop.f32.mrb[5].mxu0  ;;  %v2007_v52 = vpop.f32.mrb[7].mxu1 }
 0x1c6   : > { %v4769_v11 = vadd.f32 %v3419_v17, %v2004_v42  ;;  %v4738_v12 = vpop.f32.mrb[6].mxu0 }
 0x1c7   : > { %v4771_v43 = vadd.f32 %v4738_v12, %v4546_v33  ;;  %v3422_v21 = vpop.f32.mrb[7].mxu0 }
 0x1c8   : > { %v4773_v4 = vadd.f32 %v3422_v21, %v2007_v52 }
 0x1ca   : > { %v4753_v27 = vpop.f32.mrb[8].mxu1 }
 0x1cb   : > { %v4768_v62 = vadd.f32 %v4767_v16, %v4753_v27  ;;  %v3534_v2 = vpop.f32.mrb[9].mxu1 }
 0x1cc   : > { %v4749_v15 = vpop.f32.mrb[0].mxu0  ;;  %v4770_v56 = vadd.f32 %v4769_v11, %v3534_v2  ;;  %v4754_v51 = vpop.f32.mrb[10].mxu1 }
 0x1cd   : > { %v4763_v1 = vadd.f32 %v4749_v15, %v4541_v19  ;;  %v3518_v58 = vpop.f32.mrb[1].mxu0  ;;  %v3570_v47 = vmul.f32 %v4768_v62, %v4150_v26  ;;  %v4772_v3 = vadd.f32 %v4771_v43, %v4754_v51  ;;  %v3537_v49 = vpop.f32.mrb[11].mxu1 }
 0x1ce   : > { %v4764_v39 = vadd.f32 %v3518_v58, %v1988_v60  ;;  %v4750_v9 = vpop.f32.mrb[2].mxu0  ;;  %v3568_v53 = vmul.f32 %v4770_v56, %v4150_v26  ;;  %v4774_v45 = vadd.f32 %v4773_v4, %v3537_v49 }
 0x1cf   : > { %v3566_v5 = vmul.f32 %v4763_v1, %v4150_v26  ;;  %v4765_v32 = vadd.f32 %v4750_v9, %v4542_v25  ;;  %v3521_v34 = vpop.f32.mrb[3].mxu0  ;;  %v3585_v31 = vadd.f32 %v4151_v54, %v3570_v47  ;;  %v3571_v37 = vmul.f32 %v4772_v3, %v4150_v26 }
 0x1d0   : > { %v3564_v18 = vmul.f32 %v4764_v39, %v4150_v26  ;;  %v4766_v55 = vadd.f32 %v3521_v34, %v1991_v40  ;;  %v3583_v50 = vadd.f32 %v4151_v54, %v3568_v53  ;;  %v3569_v61 = vmul.f32 %v4774_v45, %v4150_v26 }
 0x1d1   : > { %v3581_v44 = vadd.f32 %v4151_v54, %v3566_v5  ;;  %v3567_v57 = vmul.f32 %v4765_v32, %v4150_v26  ;;  %v3593_v28 = vmax.f32 %v3585_v31, 0.0  ;;  %v3586_v30 = vadd.f32 %v4151_v54, %v3571_v37 }
 0x1d2   : > { %v3579_v7 = vadd.f32 %v4151_v54, %v3564_v18  ;;  %v3565_v20 = vmul.f32 %v4766_v55, %v4150_v26  ;;  %v3591_v48 = vmax.f32 %v3583_v50, 0.0  ;;  %v3584_v36 = vadd.f32 %v4151_v54, %v3569_v61 }
 0x1d3   : > { %v3589_v22 = vmax.f32 %v3581_v44, 0.0  ;;  %v3582_v46 = vadd.f32 %v4151_v54, %v3567_v57  ;;  %v3594_v6 = vmax.f32 %v3586_v30, 0.0  ;;  %v3604_v14 = vsel %vm391_vm2, %v3593_v28, -inf }
 0x1d4   : > { %v3587_v29 = vmax.f32 %v3579_v7, 0.0  ;;  %v3580_v13 = vadd.f32 %v4151_v54, %v3565_v20  ;;  %v3592_v38 = vmax.f32 %v3584_v36, 0.0  ;;  %v3601_v63 = vsel %vm391_vm2, %v3591_v48, -inf }
 0x1d5   : > { %v3590_v24 = vmax.f32 %v3582_v46, 0.0  ;;  %v3598_v10 = vsel %vm391_vm2, %v3589_v22, -inf  ;;  %v3605_v8 = vsel %vm391_vm2, %v3594_v6, -inf }
 0x1d6   : > { %v3588_v23 = vmax.f32 %v3580_v13, 0.0  ;;  %v3606_v59 = vmax.f32 %v3604_v14, %v3605_v8  ;;  %v3602_v19 = vsel %vm391_vm2, %v3592_v38, -inf  ;;  %v3595_v60 = vsel %vm391_vm2, %v3587_v29, -inf }
 0x1d7   : > { %v3599_v41 = vsel %vm391_vm2, %v3590_v24, -inf  ;;  %v3603_v35 = vmax.f32 %v3601_v63, %v3602_v19 }
 0x1d8   : > { %v3600_v25 = vmax.f32 %v3598_v10, %v3599_v41  ;;  %v3596_v40 = vsel %vm391_vm2, %v3588_v23, -inf  ;;  %v3610_v42 = vpack.c.bf16 %v3606_v59, %v3606_v59 }
 0x1d9   : > { %v3597_v0 = vmax.f32 %v3595_v60, %v3596_v40  ;;  %v3609_v17 = vpack.c.bf16 %v3603_v35, %v3603_v35 }
 0x1da   : > { %v3608_v16 = vpack.c.bf16 %v3600_v25, %v3600_v25  ;;  %3615 = vst.msk [vmem:[%s197_s16 + $0xc] sm:$0xf] %vm3611_vm13, %v3610_v42 }
 0x1db   : > { %v3607_v33 = vpack.c.bf16 %v3597_v0, %v3597_v0  ;;  %3614 = vst.msk [vmem:[%s197_s16 + $0x8] sm:$0xf] %vm3611_vm13, %v3609_v17 }
 0x1dc   : > { %3613 = vst.msk [vmem:[%s197_s16 + $0x4] sm:$0xf] %vm3611_vm13, %v3608_v16 }
 0x1dd   : > { %3612 = vst.msk [vmem:[%s197_s16] sm:$0xf] %vm3611_vm13, %v3607_v33 }
 0x1de PF: > { %s14_s15 = sadd.s32 1, %s5084_s15  }
 0x1df   : > { %p11_p4 = scmp.ge.s32.totalorder %s14_s15, 4  }
 0x1e1   :  { %13 = sbr.rel (!%p11_p4) target bundleno = 1 (0x1), region = 90 }

// kernel: dann_forward.5
= control target key start
LH: loop header
LB: loop body
LE: loop exit
PB: predicated region body
PF: predicated region fallthrough
CT: control target
= control target key end

     0   :  { %s2222_s21 = smov 0   ;;  %s2687_s0 = inlined_call_operand.vmem [shape: bf16[16,800], index: 0, kind: input, shape index: {}]   ;;  %s2688_s1 = inlined_call_operand.vmem [shape: bf16[800,256], index: 1, kind: input, shape index: {}]   ;;  %s2689_s2 = inlined_call_operand.vmem [shape: f32[1,256], index: 2, kind: input, shape index: {}]   ;;  %s2690_s3 = inlined_call_operand.vmem [shape: f32[1,256], index: 3, kind: input, shape index: {}]   ;;  %s2691_s4 = inlined_call_operand.vmem [shape: bf16[128,128], index: 4, kind: input, shape index: {}]   ;;  %s2692_s5 = inlined_call_operand.vmem [shape: f32[1,128], index: 5, kind: input, shape index: {}]   ;;  %s2693_s6 = inlined_call_operand.vmem [shape: f32[1,128], index: 6, kind: input, shape index: {}]   ;;  %s2694_s7 = inlined_call_operand.vmem [shape: bf16[128,128], index: 7, kind: input, shape index: {}]   ;;  %s2695_s8 = inlined_call_operand.vmem [shape: f32[1,128], index: 8, kind: input, shape index: {}]   ;;  %s2696_s9 = inlined_call_operand.vmem [shape: bf16[128,128], index: 9, kind: input, shape index: {}]   ;;  %s2697_s10 = inlined_call_operand.vmem [shape: f32[1,128], index: 10, kind: input, shape index: {}]   ;;  %s2698_s11 = inlined_call_operand.vmem [shape: f32[16,128], index: 11, kind: output, shape index: {0}]   ;;  %s2699_s12 = inlined_call_operand.vmem [shape: f32[16,128], index: 12, kind: output, shape index: {1}]  }
   0x1 LB: > { %s1702_s22 = sadd.s32 4294967295, %s2152_s21   ;;  %p1706_p0 = scmp.ge.s32.totalorder %s2152_s21, 1  ;;  %s2152_s21 = sphi %s2222_s21, %s23_s21  }
   0x2   : > { %p365_p1 = scmp.lt.s32.totalorder %s2152_s21, 3 }
   0x4   : > { %p366_p2 = pnand %p1706_p0, %p365_p1 }
   0x5   : > { %v1957_v0 = vld [vmem:[%s2688_s1 + $0x104] ss:$8 sps:$4 sm:$0xff] (!%p366_p2)   ;;  %v1959_v1 = vld [vmem:[%s2688_s1 + $0x100] ss:$8 sps:$4 sm:$0xff] (!%p366_p2)   ;;  %v1960_v2 = vld [vmem:[%s2688_s1 + $0x114] ss:$8 sps:$4 sm:$0xff] (!%p366_p2)  }
   0x6   : > { %369 = sbr.rel (%p366_p2) target bundleno = 1149 (0x47d), region = 64  ;;  %1097 = vmatprep.subr.bf16.mxu0 (!%p366_p2), %v1957_v0  ;;  %v1962_v3 = vld [vmem:[%s2688_s1 + $0x110] ss:$8 sps:$4 sm:$0xff] (!%p366_p2)   ;;  %v1963_v4 = vld [vmem:[%s2688_s1 + $0x124] ss:$8 sps:$4 sm:$0xff] (!%p366_p2)   ;;  %p410_p3 = scmp.lt.s32.totalorder (!%p366_p2), %s1702_s22, 1 }
   0x7   : > { %1098 = vmatpush1.bf16.msra.mxu0 (!%p366_p2), %v1959_v1  ;;  %v1965_v5 = vld [vmem:[%s2688_s1 + $0x120] ss:$8 sps:$4 sm:$0xff] (!%p366_p2)   ;;  %v1966_v6 = vld [vmem:[%s2688_s1 + $0x134] ss:$8 sps:$4 sm:$0xff] (!%p366_p2)   ;;  %v1968_v7 = vld [vmem:[%s2688_s1 + $0x130] ss:$8 sps:$4 sm:$0xff] (!%p366_p2)  }
   0x8   : > { %1099 = vmatprep.subr.bf16.mxu0 (!%p366_p2), %v1960_v2  ;;  %v1969_v8 = vld [vmem:[%s2688_s1 + $0x144] ss:$8 sps:$4 sm:$0xff] (!%p366_p2)   ;;  %v1971_v9 = vld [vmem:[%s2688_s1 + $0x140] ss:$8 sps:$4 sm:$0xff] (!%p366_p2)   ;;  %v1972_v10 = vld [vmem:[%s2688_s1 + $0x154] ss:$8 sps:$4 sm:$0xff] (!%p366_p2)  }
   0x9   : > { %v1974_v11 = vld [vmem:[%s2688_s1 + $0x150] ss:$8 sps:$4 sm:$0xff] (!%p366_p2)   ;;  %v1975_v12 = vld [vmem:[%s2688_s1 + $0x164] ss:$8 sps:$4 sm:$0xff] (!%p366_p2)   ;;  %v1977_v15 = vld [vmem:[%s2688_s1 + $0x160] ss:$8 sps:$4 sm:$0xff] (!%p366_p2)  }
   0xa   : > { %v1978_v16 = vld [vmem:[%s2688_s1 + $0x174] ss:$8 sps:$4 sm:$0xff] (!%p366_p2)   ;;  %v1980_v17 = vld [vmem:[%s2688_s1 + $0x170] ss:$8 sps:$4 sm:$0xff] (!%p366_p2)   ;;  %v2017_v18 = vld [vmem:[%s2688_s1 + $0x4] ss:$8 sps:$4 sm:$0xff] (!%p366_p2)  }
   0xb   : > { %1100 = vmatpush1.bf16.msra.mxu0 (!%p366_p2), %v1962_v3  ;;  %v2019_v19 = vld [vmem:[%s2688_s1] ss:$8 sps:$4 sm:$0xff] (!%p366_p2)   ;;  %v1981_v20 = vld [vmem:[%s2688_s1 + $0x184] ss:$8 sps:$4 sm:$0xff] (!%p366_p2)   ;;  %1056 = vmatprep.subr.bf16.mxu1 (!%p366_p2), %v2017_v18  ;;  %v2023_v21 = vld [vmem:[%s2688_s1 + $0x14] ss:$8 sps:$4 sm:$0xff] (!%p366_p2)  }
   0xc   : > { %1101 = vmatprep.subr.bf16.mxu0 (!%p366_p2), %v1963_v4  ;;  %1057 = vmatpush1.bf16.msra.mxu1 (!%p366_p2), %v2019_v19  ;;  %v2025_v22 = vld [vmem:[%s2688_s1 + $0x10] ss:$8 sps:$4 sm:$0xff] (!%p366_p2)   ;;  %v1983_v23 = vld [vmem:[%s2688_s1 + $0x180] ss:$8 sps:$4 sm:$0xff] (!%p366_p2)   ;;  %v1984_v24 = vld [vmem:[%s2688_s1 + $0x194] ss:$8 sps:$4 sm:$0xff] (!%p366_p2)  }
   0xd   : > { %s2701_s22 = smov (!%p410_p3, %s1702_s22), 1  ;;  %1058 = vmatprep.subr.bf16.mxu1 %v2023_v21  ;;  %v2029_v25 = vld [vmem:[%s2688_s1 + $0x24] ss:$8 sps:$4 sm:$0xff]   ;;  %v2031_v26 = vld [vmem:[%s2688_s1 + $0x20] ss:$8 sps:$4 sm:$0xff]   ;;  %vm1052_vm0 = vcmask 261120  }
   0xe   : > { %s1945_s25 = smul.u32 28, %s2701_s22  ;;  %v1986_v27 = vld [vmem:[%s2688_s1 + $0x190] ss:$8 sps:$4 sm:$0xff]   ;;  %v2035_v28 = vld [vmem:[%s2688_s1 + $0x34] ss:$8 sps:$4 sm:$0xff]   ;;  %vm2156_vm1 = vmmov 0  }
   0xf   : > { %1102 = vmatpush1.bf16.msra.mxu0 %v1965_v5  ;;  %v1987_v29 = vld [vmem:[%s2688_s1 + $0x1a4] ss:$8 sps:$4 sm:$0xff]   ;;  %v2037_v30 = vld [vmem:[%s2688_s1 + $0x30] ss:$8 sps:$4 sm:$0xff]   ;;  %v1989_v31 = vld [vmem:[%s2688_s1 + $0x1a0] ss:$8 sps:$4 sm:$0xff]  }
  0x10   : > { %1103 = vmatprep.subr.bf16.mxu0 %v1966_v6  ;;  %s2269_s14 = scalar_lea.vmem %s2687_s0, %s1945_s25  ;;  %1059 = vmatpush1.bf16.msra.mxu1 %v2025_v22  ;;  %v2041_v32 = vld [vmem:[%s2688_s1 + $0x44] ss:$8 sps:$4 sm:$0xff]   ;;  %v1990_v33 = vld [vmem:[%s2688_s1 + $0x1b4] ss:$8 sps:$4 sm:$0xff]   ;;  %v2043_v34 = vld [vmem:[%s2688_s1 + $0x40] ss:$8 sps:$4 sm:$0xff]  }
  0x11   : > { %v2278_v13 = vld [vmem:[%s2269_s14 + $0x8] sm:$0xff]  ;;  %1060 = vmatprep.subr.bf16.mxu1 %v2029_v25  ;;  %v1992_v35 = vld [vmem:[%s2688_s1 + $0x1b0] ss:$8 sps:$4 sm:$0xff]   ;;  %v2047_v36 = vld [vmem:[%s2688_s1 + $0x54] ss:$8 sps:$4 sm:$0xff]   ;;  %v2154_v25 = vmov 0.0  }
  0x12   : > { %v1713_v14 = vcombine.high %v2278_v13, %v2278_v13  ;;  %v1993_v37 = vld [vmem:[%s2688_s1 + $0x1c4] ss:$8 sps:$4 sm:$0xff]   ;;  %v2049_v38 = vld [vmem:[%s2688_s1 + $0x50] ss:$8 sps:$4 sm:$0xff]   ;;  %v1995_v39 = vld [vmem:[%s2688_s1 + $0x1c0] ss:$8 sps:$4 sm:$0xff]   ;;  %v1712_v54 = vcombine.low %v2278_v13, %v2278_v13 }
  0x13   : > { %1104 = vmatpush1.bf16.msra.mxu0 %v1968_v7  ;;  %v2053_v40 = vld [vmem:[%s2688_s1 + $0x64] ss:$8 sps:$4 sm:$0xff]   ;;  %v1996_v41 = vld [vmem:[%s2688_s1 + $0x1d4] ss:$8 sps:$4 sm:$0xff]   ;;  %v2055_v42 = vld [vmem:[%s2688_s1 + $0x60] ss:$8 sps:$4 sm:$0xff]  }
  0x14   : > { %1105 = vmatprep.subr.bf16.mxu0 %v1969_v8  ;;  %1129 = vmatprep.mubr.bf16.mxu0 %v1713_v14  ;;  %v1998_v43 = vld [vmem:[%s2688_s1 + $0x1d0] ss:$8 sps:$4 sm:$0xff]   ;;  %v2059_v44 = vld [vmem:[%s2688_s1 + $0x74] ss:$8 sps:$4 sm:$0xff]   ;;  %v1999_v45 = vld [vmem:[%s2688_s1 + $0x1e4] ss:$8 sps:$4 sm:$0xff]  }
  0x15   : > { %1061 = vmatpush1.bf16.msra.mxu1 %v2031_v26  ;;  %v2061_v46 = vld [vmem:[%s2688_s1 + $0x70] ss:$8 sps:$4 sm:$0xff]   ;;  %v2001_v47 = vld [vmem:[%s2688_s1 + $0x1e0] ss:$8 sps:$4 sm:$0xff]   ;;  %v2065_v48 = vld [vmem:[%s2688_s1 + $0x84] ss:$8 sps:$4 sm:$0xff]  }
  0x16   : > { %1062 = vmatprep.subr.bf16.mxu1 %v2035_v28  ;;  %v2002_v49 = vld [vmem:[%s2688_s1 + $0x1f4] ss:$8 sps:$4 sm:$0xff]   ;;  %v2067_v50 = vld [vmem:[%s2688_s1 + $0x80] ss:$8 sps:$4 sm:$0xff]   ;;  %v2004_v51 = vld [vmem:[%s2688_s1 + $0x1f0] ss:$8 sps:$4 sm:$0xff]  }
  0x17   : > { %1106 = vmatpush1.bf16.msra.mxu0 %v1971_v9  ;;  %v2071_v52 = vld [vmem:[%s2688_s1 + $0x94] ss:$8 sps:$4 sm:$0xff]   ;;  %v2010_v53 = vld [vmem:[%s2688_s1 + $0x204] ss:$8 sps:$4 sm:$0xff]   ;;  %v2073_v55 = vld [vmem:[%s2688_s1 + $0x90] ss:$8 sps:$4 sm:$0xff]  }
  0x18   : > { %1107 = vmatprep.subr.bf16.mxu0 %v1972_v10  ;;  %v2405_v56 = vld [vmem:[%s2269_s14 + $0x10] sm:$0xff]  ;;  %v2008_v57 = vld [vmem:[%s2688_s1 + $0x200] ss:$8 sps:$4 sm:$0xff]   ;;  %v2077_v58 = vld [vmem:[%s2688_s1 + $0xa4] ss:$8 sps:$4 sm:$0xff]   ;;  %s1708_s27 = sshll.u32 %s2701_s22, 3 }
  0x19   : > { %1063 = vmatpush1.bf16.msra.mxu1 %v2037_v30  ;;  %v2013_v59 = vld [vmem:[%s2688_s1 + $0x214] ss:$8 sps:$4 sm:$0xff]   ;;  %v1715_v60 = vcombine.high %v2405_v56, %v2405_v56  ;;  %v2079_v61 = vld [vmem:[%s2688_s1 + $0xa0] ss:$8 sps:$4 sm:$0xff]   ;;  %v2011_v62 = vld [vmem:[%s2688_s1 + $0x210] ss:$8 sps:$4 sm:$0xff]   ;;  %s418_s30 = scalar_lea.vmem %s2698_s11, %s1708_s27  ;;  %s422_s15 = scalar_lea.vmem %s2699_s12, %s1708_s27 }
  0x1a   : > { %1064 = vmatprep.subr.bf16.mxu1 %v2041_v32  ;;  %v2016_v63 = vld [vmem:[%s2688_s1 + $0x224] ss:$8 sps:$4 sm:$0xff]   ;;  %v2083_v0 = vld [vmem:[%s2688_s1 + $0xb4] ss:$8 sps:$4 sm:$0xff]   ;;  %v2014_v2 = vld [vmem:[%s2688_s1 + $0x220] ss:$8 sps:$4 sm:$0xff]  }
  0x1b   : > { %1108 = vmatpush1.bf16.msra.mxu0 %v1974_v11  ;;  %v424_v1 = vld [vmem:[%s2269_s14] sm:$0xff]  ;;  %v2022_v4 = vld [vmem:[%s2688_s1 + $0x234] ss:$8 sps:$4 sm:$0xff]   ;;  %v2085_v5 = vld [vmem:[%s2688_s1 + $0xb0] ss:$8 sps:$4 sm:$0xff]  }
  0x1c   : > { %1109 = vmatprep.subr.bf16.mxu0 %v1975_v12  ;;  %v1711_v3 = vcombine.high %v424_v1, %v424_v1  ;;  %v2089_v6 = vld [vmem:[%s2688_s1 + $0xc4] ss:$8 sps:$4 sm:$0xff]   ;;  %v2091_v7 = vld [vmem:[%s2688_s1 + $0xc0] ss:$8 sps:$4 sm:$0xff]   ;;  %v2020_v8 = vld [vmem:[%s2688_s1 + $0x230] ss:$8 sps:$4 sm:$0xff]   ;;  %v1710_v22 = vcombine.low %v424_v1, %v424_v1 }
  0x1d   : > { %1065 = vmatpush1.bf16.msra.mxu1 %v2043_v34  ;;  %v2095_v9 = vld [vmem:[%s2688_s1 + $0xd4] ss:$8 sps:$4 sm:$0xff]   ;;  %v2028_v10 = vld [vmem:[%s2688_s1 + $0x244] ss:$8 sps:$4 sm:$0xff]   ;;  %v2097_v11 = vld [vmem:[%s2688_s1 + $0xd0] ss:$8 sps:$4 sm:$0xff]  }
  0x1e   : > { %1066 = vmatprep.subr.bf16.mxu1 %v2047_v36  ;;  %1088 = vmatprep.mubr.bf16.mxu1 %v1711_v3  ;;  %v2026_v12 = vld [vmem:[%s2688_s1 + $0x240] ss:$8 sps:$4 sm:$0xff]   ;;  %v2103_v13 = vld [vmem:[%s2688_s1 + $0xe4] ss:$8 sps:$4 sm:$0xff]   ;;  %v2034_v14 = vld [vmem:[%s2688_s1 + $0x254] ss:$8 sps:$4 sm:$0xff]  }
  0x1f   : > { %1110 = vmatpush1.bf16.msra.mxu0 %v1977_v15  ;;  %v2105_v15 = vld [vmem:[%s2688_s1 + $0xe0] ss:$8 sps:$4 sm:$0xff]   ;;  %v2040_v18 = vld [vmem:[%s2688_s1 + $0x264] ss:$8 sps:$4 sm:$0xff]   ;;  %v2111_v19 = vld [vmem:[%s2688_s1 + $0xf0] ss:$8 sps:$4 sm:$0xff]  }
  0x20   : > { %1111 = vmatprep.subr.bf16.mxu0 %v1978_v16  ;;  %v2032_v16 = vld [vmem:[%s2688_s1 + $0x250] ss:$8 sps:$4 sm:$0xff]   ;;  %v2046_v21 = vld [vmem:[%s2688_s1 + $0x274] ss:$8 sps:$4 sm:$0xff]   ;;  %v2052_v26 = vld [vmem:[%s2688_s1 + $0x284] ss:$8 sps:$4 sm:$0xff]  }
  0x21   : > { %1067 = vmatpush1.bf16.msra.mxu1 %v2049_v38  ;;  %v2050_v28 = vld [vmem:[%s2688_s1 + $0x280] ss:$8 sps:$4 sm:$0xff]   ;;  %v2116_v30 = vld [vmem:[%s2691_s4 + $0x10] sm:$0xff]   ;;  %v2064_v32 = vld [vmem:[%s2688_s1 + $0x2a4] ss:$8 sps:$4 sm:$0xff]  }
  0x22   : > { %1068 = vmatprep.subr.bf16.mxu1 %v2053_v40  ;;  %v2062_v34 = vld [vmem:[%s2688_s1 + $0x2a0] ss:$8 sps:$4 sm:$0xff]   ;;  %v2076_v38 = vld [vmem:[%s2688_s1 + $0x2c4] ss:$8 sps:$4 sm:$0xff]   ;;  %v2082_v40 = vld [vmem:[%s2688_s1 + $0x2d4] ss:$8 sps:$4 sm:$0xff]  }
  0x23   : > { %1112 = vmatpush1.bf16.msra.mxu0 %v1980_v17  ;;  %v2106_v17 = vld [vmem:[%s2688_s1 + $0xf4] ss:$8 sps:$4 sm:$0xff]   ;;  %v2118_v36 = vld [vmem:[%s2691_s4 + $0x20] sm:$0xff]  }
  0x24   : > { %1113 = vmatprep.subr.bf16.mxu0 %v1981_v20  ;;  %v2038_v20 = vld [vmem:[%s2688_s1 + $0x260] ss:$8 sps:$4 sm:$0xff]  }
  0x25   : > { %1069 = vmatpush1.bf16.msra.mxu1 %v2055_v42  ;;  %v2088_v42 = vld [vmem:[%s2688_s1 + $0x2e4] ss:$8 sps:$4 sm:$0xff]  }
  0x26   : > { %1070 = vmatprep.subr.bf16.mxu1 %v2059_v44  ;;  %v2094_v44 = vld [vmem:[%s2688_s1 + $0x2f4] ss:$8 sps:$4 sm:$0xff]  }
  0x27   : > { %1114 = vmatpush1.bf16.msra.mxu0 %v1983_v23  ;;  %v2114_v23 = vld [vmem:[%s2691_s4] sm:$0xff]  }
  0x28   : > { %1115 = vmatprep.subr.bf16.mxu0 %v1984_v24  ;;  %v2044_v24 = vld [vmem:[%s2688_s1 + $0x270] ss:$8 sps:$4 sm:$0xff]  }
  0x29   : > { %1071 = vmatpush1.bf16.msra.mxu1 %v2061_v46  ;;  %v2102_v46 = vld [vmem:[%s2688_s1 + $0x304] ss:$8 sps:$4 sm:$0xff]  }
  0x2a   : > { %1072 = vmatprep.subr.bf16.mxu1 %v2065_v48  ;;  %v2100_v48 = vld [vmem:[%s2688_s1 + $0x300] ss:$8 sps:$4 sm:$0xff]  }
  0x2b   : > { %1116 = vmatpush1.bf16.msra.mxu0 %v1986_v27  ;;  %v2115_v27 = vld [vmem:[%s2691_s4 + $0x8] sm:$0xff]  }
  0x2c   : > { %1117 = vmatprep.subr.bf16.mxu0 %v1987_v29  ;;  %v2058_v29 = vld [vmem:[%s2688_s1 + $0x294] ss:$8 sps:$4 sm:$0xff]  }
  0x2d   : > { %1073 = vmatpush1.bf16.msra.mxu1 %v2067_v50  ;;  %v2108_v50 = vld [vmem:[%s2688_s1 + $0x310] ss:$8 sps:$4 sm:$0xff]  }
  0x2e   : > { %1074 = vmatprep.subr.bf16.mxu1 %v2071_v52  ;;  %v2007_v52 = vld [vmem:[%s2269_s14 + $0x18] ss:$0 sps:$4 sm:$0xff]  }
  0x2f   : > { %1118 = vmatpush1.bf16.msra.mxu0 %v1989_v31  ;;  %v2056_v31 = vld [vmem:[%s2688_s1 + $0x290] ss:$8 sps:$4 sm:$0xff]  }
  0x30   : > { %1119 = vmatprep.subr.bf16.mxu0 %v1990_v33  ;;  %v2117_v33 = vld [vmem:[%s2691_s4 + $0x18] sm:$0xff]  }
  0x31   : > { %1075 = vmatpush1.bf16.msra.mxu1 %v2073_v55  ;;  %v2119_v55 = vld [vmem:[%s2691_s4 + $0x28] sm:$0xff]  }
  0x32   : > { %1076 = vmatprep.subr.bf16.mxu1 %v2077_v58  ;;  %v1234_v58 = vld [vmem:[%s2690_s3] sm:$0x3] }
  0x33   : > { %1120 = vmatpush1.bf16.msra.mxu0 %v1992_v35  ;;  %v2070_v35 = vld [vmem:[%s2688_s1 + $0x2b4] ss:$8 sps:$4 sm:$0xff]  }
  0x34   : > { %1121 = vmatprep.subr.bf16.mxu0 %v1993_v37  ;;  %v2068_v37 = vld [vmem:[%s2688_s1 + $0x2b0] ss:$8 sps:$4 sm:$0xff]  }
  0x35   : > { %1077 = vmatpush1.bf16.msra.mxu1 %v2079_v61 }
  0x36   : > { %1078 = vmatprep.subr.bf16.mxu1 %v2083_v0 }
  0x37   : > { %1122 = vmatpush1.bf16.msra.mxu0 %v1995_v39  ;;  %v2074_v39 = vld [vmem:[%s2688_s1 + $0x2c0] ss:$8 sps:$4 sm:$0xff]  }
  0x38   : > { %1123 = vmatprep.subr.bf16.mxu0 %v1996_v41  ;;  %v2080_v41 = vld [vmem:[%s2688_s1 + $0x2d0] ss:$8 sps:$4 sm:$0xff]  }
  0x39   : > { %1079 = vmatpush1.bf16.msra.mxu1 %v2085_v5 }
  0x3a   : > { %1080 = vmatprep.subr.bf16.mxu1 %v2089_v6 }
  0x3b   : > { %1124 = vmatpush1.bf16.msra.mxu0 %v1998_v43  ;;  %v2086_v43 = vld [vmem:[%s2688_s1 + $0x2e0] ss:$8 sps:$4 sm:$0xff]  }
  0x3c   : > { %1125 = vmatprep.subr.bf16.mxu0 %v1999_v45  ;;  %v2092_v45 = vld [vmem:[%s2688_s1 + $0x2f0] ss:$8 sps:$4 sm:$0xff]  }
  0x3d   : > { %1081 = vmatpush1.bf16.msra.mxu1 %v2091_v7 }
  0x3e   : > { %1082 = vmatprep.subr.bf16.mxu1 %v2095_v9 }
  0x3f   : > { %1126 = vmatpush1.bf16.msra.mxu0 %v2001_v47  ;;  %v1714_v47 = vcombine.low %v2405_v56, %v2405_v56  ;;  %v1220_v56 = vld [vmem:[%s2689_s2] sm:$0x3] }
  0x40   : > { %1127 = vmatprep.subr.bf16.mxu0 %v2002_v49  ;;  %v2110_v49 = vld [vmem:[%s2688_s1 + $0x314] ss:$8 sps:$4 sm:$0xff]  }
  0x41   : > { %1083 = vmatpush1.bf16.msra.mxu1 %v2097_v11 }
  0x42   : > { %1084 = vmatprep.subr.bf16.mxu1 %v2103_v13 }
  0x43   : > { %1128 = vmatpush1.bf16.msra.mxu0 %v2004_v51  ;;  %v2155_v51 = vmov 0  }
  0x44   : > { %1138 = vmatprep.subr.bf16.mxu0 %v2010_v53  ;;  %v1222_v53 = vlaneseq }
  0x45   : > { %1085 = vmatpush1.bf16.msra.mxu1 %v2105_v15 }
  0x46   : > { %1130 = vmatmul.mubr.bf16.vlgmr.msra.gmra.mrb[0].mxu0 %v1712_v54  ;;  %1086 = vmatprep.subr.bf16.mxu1 %v2106_v17  ;;  %v1223_v54 = vshrl.u32 %v1222_v53, 7  ;;  %v2122_v17 = vld [vmem:[%s2694_s7] sm:$0xff]  }
  0x47   : > { %1139 = vmatpush1.bf16.msra.mxu0 %v2008_v57  ;;  %1170 = vmatprep.mubr.bf16.mxu0 %v1715_v60  ;;  %v2120_v60 = vld [vmem:[%s2691_s4 + $0x30] sm:$0xff]   ;;  %v1837_v53 = vld [vmem:[%s2697_s10] ss:$0 sm:$0xff] }
  0x48   : > { %1140 = vmatprep.subr.bf16.mxu0 %v2013_v59  ;;  %v1228_v57 = vsub.s32 1, %v1223_v54  ;;  %v1224_v3 = vsub.s32 0, %v1223_v54 }
  0x49   : > { %1087 = vmatpush1.bf16.msra.mxu1 %v2111_v19  ;;  %v2123_v19 = vld [vmem:[%s2694_s7 + $0x8] sm:$0xff]  }
  0x4a   : > { %1875 = vmatprep.subr.bf16.mxu1 %v2154_v25  ;;  %v1229_v59 = vrot.slane %v1220_v56, %v1228_v57  ;;  %v1243_v61 = vrot.slane %v1234_v58, %v1228_v57  ;;  %v1239_v7 = vrot.slane %v1234_v58, %v1224_v3 }
  0x4b   : > { %1141 = vmatpush1.bf16.msra.mxu0 %v2011_v62  ;;  %v2121_v62 = vld [vmem:[%s2691_s4 + $0x38] sm:$0xff]  }
  0x4c   : > { %1142 = vmatprep.subr.bf16.mxu0 %v2016_v63  ;;  %1089 = vmatmul.mubr.bf16.vlgmr.msra.gmra.mrb[0].mxu1 %v1710_v22  ;;  %v2126_v22 = vld [vmem:[%s2694_s7 + $0x20] sm:$0xff]  }
  0x4d   : > { %1876 = vmatpush3.bf16.msra.mxu1 %v2114_v23  ;;  %1891 = vmatprep.mubr.msk.bf16.mxu1 %vm2156_vm1, %v2154_v25  ;;  %v2127_v23 = vld [vmem:[%s2694_s7 + $0x28] sm:$0xff]  }
  0x4e   : > { %1877 = vmatprep.subr.bf16.mxu1 %v2154_v25 }
  0x4f   : > { %1143 = vmatpush1.bf16.msra.mxu0 %v2014_v2 }
  0x50   : > { %1144 = vmatprep.subr.bf16.mxu0 %v2022_v4  ;;  %v1225_v4 = vrot.slane %v1220_v56, %v1224_v3 }
  0x51   : > { %1878 = vmatpush3.bf16.msra.mxu1 %v2115_v27  ;;  %v1826_v27 = vld [vmem:[%s2692_s5] ss:$0 sm:$0xff] }
  0x52   : > { %1879 = vmatprep.subr.bf16.mxu1 %v2154_v25 }
  0x53   : > { %1145 = vmatpush1.bf16.msra.mxu0 %v2020_v8 }
  0x54   : > { %1146 = vmatprep.subr.bf16.mxu0 %v2028_v10 }
  0x55   : > { %1880 = vmatpush3.bf16.msra.mxu1 %v2116_v30 }
  0x56   : > { %1881 = vmatprep.subr.bf16.mxu1 %v2154_v25 }
  0x57   : > { %1147 = vmatpush1.bf16.msra.mxu0 %v2026_v12 }
  0x58   : > { %1148 = vmatprep.subr.bf16.mxu0 %v2034_v14 }
  0x59   : > { %1882 = vmatpush3.bf16.msra.mxu1 %v2117_v33 }
  0x5a   : > { %1883 = vmatprep.subr.bf16.mxu1 %v2154_v25 }
  0x5b   : > { %1149 = vmatpush1.bf16.msra.mxu0 %v2032_v16 }
  0x5c   : > { %1150 = vmatprep.subr.bf16.mxu0 %v2040_v18 }
  0x5d   : > { %1884 = vmatpush3.bf16.msra.mxu1 %v2118_v36  ;;  %v2130_v36 = vld [vmem:[%s2696_s9] sm:$0xff]  }
  0x5e   : > { %1885 = vmatprep.subr.bf16.mxu1 %v2154_v25 }
  0x5f   : > { %1151 = vmatpush1.bf16.msra.mxu0 %v2038_v20  ;;  %v2124_v20 = vld [vmem:[%s2694_s7 + $0x10] sm:$0xff]  }
  0x60   : > { %1152 = vmatprep.subr.bf16.mxu0 %v2046_v21  ;;  %v2125_v21 = vld [vmem:[%s2694_s7 + $0x18] sm:$0xff]  }
  0x61   : > { %1886 = vmatpush3.bf16.msra.mxu1 %v2119_v55 }
  0x62   : > { %1887 = vmatprep.subr.bf16.mxu1 %v2154_v25 }
  0x63   : > { %1153 = vmatpush1.bf16.msra.mxu0 %v2044_v24  ;;  %v2128_v24 = vld [vmem:[%s2694_s7 + $0x30] sm:$0xff]  }
  0x64   : > { %1154 = vmatprep.subr.bf16.mxu0 %v2052_v26  ;;  %v2129_v26 = vld [vmem:[%s2694_s7 + $0x38] sm:$0xff]  }
  0x65   : > { %1888 = vmatpush3.bf16.msra.mxu1 %v2120_v60 }
  0x66   : > { %1889 = vmatprep.subr.bf16.mxu1 %v2154_v25 }
  0x67   : > { %1155 = vmatpush1.bf16.msra.mxu0 %v2050_v28 }
  0x68   : > { %1156 = vmatprep.subr.bf16.mxu0 %v2058_v29  ;;  %v1827_v29 = vld [vmem:[%s2693_s6] ss:$0 sm:$0xff] }
  0x69   : > { %1890 = vmatpush3.bf16.msra.mxu1 %v2121_v62 }
  0x6a   : > { %1895 = vmatprep.subr.bf16.mxu1 %v2154_v25 }
  0x6b   : > { %1157 = vmatpush1.bf16.msra.mxu0 %v2056_v31 }
  0x6c   : > { %1158 = vmatprep.subr.bf16.mxu0 %v2064_v32 }
  0x6f   : > { %1159 = vmatpush1.bf16.msra.mxu0 %v2062_v34 }
  0x70   : > { %1160 = vmatprep.subr.bf16.mxu0 %v2070_v35 }
  0x73   : > { %1161 = vmatpush1.bf16.msra.mxu0 %v2068_v37 }
  0x74   : > { %1162 = vmatprep.subr.bf16.mxu0 %v2076_v38  ;;  %v2131_v38 = vld [vmem:[%s2696_s9 + $0x8] sm:$0xff]  }
  0x77   : > { %1163 = vmatpush1.bf16.msra.mxu0 %v2074_v39  ;;  %v2132_v39 = vld [vmem:[%s2696_s9 + $0x10] sm:$0xff]  }
  0x78   : > { %1164 = vmatprep.subr.bf16.mxu0 %v2082_v40  ;;  %v2133_v40 = vld [vmem:[%s2696_s9 + $0x18] sm:$0xff]  }
  0x7b   : > { %1165 = vmatpush1.bf16.msra.mxu0 %v2080_v41  ;;  %v2134_v41 = vld [vmem:[%s2696_s9 + $0x20] sm:$0xff]  }
  0x7c   : > { %1166 = vmatprep.subr.bf16.mxu0 %v2088_v42  ;;  %v2135_v42 = vld [vmem:[%s2696_s9 + $0x28] sm:$0xff]  }
  0x7f   : > { %1167 = vmatpush1.bf16.msra.mxu0 %v2086_v43  ;;  %v2136_v43 = vld [vmem:[%s2696_s9 + $0x30] sm:$0xff]  }
  0x80   : > { %1168 = vmatprep.subr.bf16.mxu0 %v2094_v44  ;;  %v2137_v44 = vld [vmem:[%s2696_s9 + $0x38] sm:$0xff]  }
  0x83   : > { %1169 = vmatpush1.bf16.msra.mxu0 %v2092_v45 }
  0x84   : > { %1179 = vmatprep.subr.bf16.mxu0 %v2102_v46 }
  0x86   : > { %1171 = vmatmul.mubr.bf16.vlgmr.msra.gmra.mrb[0].mxu0 %v1714_v47  ;;  %v1828_v47 = vld [vmem:[%s2695_s8] ss:$0 sm:$0xff] }
  0x87   : > { %1180 = vmatpush1.bf16.msra.mxu0 %v2100_v48  ;;  %1211 = vmatprep.mubr.bf16.mxu0 %v2155_v51 }
  0x88   : > { %1181 = vmatprep.subr.bf16.mxu0 %v2110_v49 }
  0x8b   : > { %1182 = vmatpush1.bf16.msra.mxu0 %v2108_v50 }
  0x92   : > { %1817 = vmatmul.mubr.msk.bf16.vlgmr.msra.gmra.mrb[0].mxu0 %vm1052_vm0, %v2007_v52 }
 0x11f   : > { %v1090_v63 = vpop.f32.mrb[0].mxu1 }
 0x120   : > { %v1092_v0 = vpop.f32.mrb[1].mxu1 }
 0x121   : > { %v1094_v1 = vpop.f32.mrb[2].mxu1 }
 0x122   : > { %v1095_v2 = vpop.f32.mrb[3].mxu1 }
 0x165   : > { %v1213_v5 = vpop.f32.mrb[0].mxu0 }
 0x166   : > { %v1935_v6 = vadd.f32 %v1213_v5, %v1090_v63  ;;  %v1215_v8 = vpop.f32.mrb[1].mxu0 }
 0x167   : > { %v1936_v9 = vadd.f32 %v1215_v8, %v1092_v0  ;;  %v1217_v10 = vpop.f32.mrb[2].mxu0 }
 0x168   : > { %v1232_v11 = vmul.f32 %v1935_v6, %v1225_v4  ;;  %v1218_v12 = vpop.f32.mrb[3].mxu0 }
 0x169   : > { %v1233_v13 = vmul.f32 %v1936_v9, %v1229_v59 }
 0x16a   : > { %v1246_v14 = vadd.f32 %v1239_v7, %v1232_v11 }
 0x16b   : > { %v2595_v15 = vadd.f32 %v1243_v61, %v1233_v13 }
 0x16c   : > { %v1248_v16 = vmax.f32 %v1246_v14, 0.0 }
 0x16d   : > { %v1249_v45 = vmax.f32 %v2595_v15, 0.0 }
 0x16e   : > { %v1250_v18 = vpack.c.bf16 %v1248_v16, %v1248_v16 }
 0x16f   : > { %v1251_v46 = vpack.c.bf16 %v1249_v45, %v1249_v45 }
 0x170   : > { %1892 = vmatmul.mubr.bf16.vlgmr.msra.gmra.mrb[4].mxu1 %v1250_v18 }
 0x171   : > { %1896 = vmatpush3.bf16.msra.mxu1 %v2122_v17  ;;  %1911 = vmatprep.mubr.msk.bf16.mxu1 %vm2156_vm1, %v2154_v25 }
 0x172   : > { %1897 = vmatprep.subr.bf16.mxu1 %v2154_v25 }
 0x175   : > { %1898 = vmatpush3.bf16.msra.mxu1 %v2123_v19 }
 0x176   : > { %1899 = vmatprep.subr.bf16.mxu1 %v2154_v25 }
 0x179   : > { %1900 = vmatpush3.bf16.msra.mxu1 %v2124_v20 }
 0x17a   : > { %1901 = vmatprep.subr.bf16.mxu1 %v2154_v25 }
 0x17d   : > { %1902 = vmatpush3.bf16.msra.mxu1 %v2125_v21 }
 0x17e   : > { %1903 = vmatprep.subr.bf16.mxu1 %v2154_v25 }
 0x181   : > { %1904 = vmatpush3.bf16.msra.mxu1 %v2126_v22 }
 0x182   : > { %1905 = vmatprep.subr.bf16.mxu1 %v2154_v25 }
 0x185   : > { %1906 = vmatpush3.bf16.msra.mxu1 %v2127_v23 }
 0x186   : > { %1907 = vmatprep.subr.bf16.mxu1 %v2154_v25 }
 0x189   : > { %1908 = vmatpush3.bf16.msra.mxu1 %v2128_v24 }
 0x18a   : > { %1909 = vmatprep.subr.bf16.mxu1 %v2154_v25 }
 0x18d   : > { %1910 = vmatpush3.bf16.msra.mxu1 %v2129_v26 }
 0x18e   : > { %1915 = vmatprep.subr.bf16.mxu1 %v2154_v25 }
 0x243   : > { %v1350_v28 = vpop.f32.mrb[4].mxu1 }
 0x244   : > { %v1363_v30 = vmul.f32 %v1826_v27, %v1350_v28  ;;  %v1893_v31 = vpop.f32.mrb[5].mxu1 }
 0x245   : > { %v1353_v32 = vpop.f32.mrb[6].mxu1 }
 0x246   : > { %v1371_v33 = vadd.f32 %v1827_v29, %v1363_v30  ;;  %v1894_v34 = vpop.f32.mrb[7].mxu1 }
 0x248   : > { %v1372_v35 = vmax.f32 %v1371_v33, 0.0 }
 0x24a   : > { %v1373_v37 = vpack.c.bf16 %v1372_v35, %v1372_v35 }
 0x24c   : > { %1912 = vmatmul.mubr.bf16.vlgmr.msra.gmra.mrb[8].mxu1 %v1373_v37 }
 0x24d   : > { %1916 = vmatpush3.bf16.msra.mxu1 %v2130_v36  ;;  %1931 = vmatprep.mubr.msk.bf16.mxu1 %vm2156_vm1, %v2154_v25 }
 0x24e   : > { %1917 = vmatprep.subr.bf16.mxu1 %v2154_v25 }
 0x251   : > { %1918 = vmatpush3.bf16.msra.mxu1 %v2131_v38 }
 0x252   : > { %1919 = vmatprep.subr.bf16.mxu1 %v2154_v25 }
 0x255   : > { %1920 = vmatpush3.bf16.msra.mxu1 %v2132_v39 }
 0x256   : > { %1921 = vmatprep.subr.bf16.mxu1 %v2154_v25 }
 0x259   : > { %1922 = vmatpush3.bf16.msra.mxu1 %v2133_v40 }
 0x25a   : > { %1923 = vmatprep.subr.bf16.mxu1 %v2154_v25 }
 0x25d   : > { %1924 = vmatpush3.bf16.msra.mxu1 %v2134_v41 }
 0x25e   : > { %1925 = vmatprep.subr.bf16.mxu1 %v2154_v25 }
 0x261   : > { %1926 = vmatpush3.bf16.msra.mxu1 %v2135_v42 }
 0x262   : > { %1927 = vmatprep.subr.bf16.mxu1 %v2154_v25 }
 0x265   : > { %1928 = vmatpush3.bf16.msra.mxu1 %v2136_v43 }
 0x266   : > { %1929 = vmatprep.subr.bf16.mxu1 %v2154_v25 }
 0x269   : > { %1930 = vmatpush3.bf16.msra.mxu1 %v2137_v44 }
 0x26c   : > { %1932 = vmatmul.mubr.bf16.vlgmr.msra.gmra.mrb[12].mxu1 %v1251_v46 }
 0x31f   : > { %v1479_v48 = vpop.f32.mrb[8].mxu1 }
 0x320   : > { %v1480_v49 = vadd.f32 %v1828_v47, %v1479_v48  ;;  %v1913_v50 = vpop.f32.mrb[9].mxu1 }
 0x321   : > { %v1482_v51 = vpop.f32.mrb[10].mxu1 }
 0x322   : > { %1485 = vmax.xlane.f32.xlu0 %v1480_v49  ;;  %v1914_v52 = vpop.f32.mrb[11].mxu1 }
 0x33f   : > { %v1601_v54 = vpop.f32.mrb[12].mxu1 }
 0x340   : > { %v1602_v55 = vadd.f32 %v1837_v53, %v1601_v54  ;;  %v1933_v25 = vpop.f32.mrb[13].mxu1 }
 0x341   : > { %v1604_v56 = vpop.f32.mrb[14].mxu1 }
 0x342   : > { %1607 = vmax.xlane.f32.xlu0 %v1602_v55  ;;  %v1934_v57 = vpop.f32.mrb[15].mxu1 }
 0x3af   : > { %v1486_v58 = vpop.xlane.xlu0 %1485 }
 0x3b0   : > { %v1487_v59 = vsub.f32 %v1480_v49, %v1486_v58 }
 0x3b2   : > { %v1488_v60 = vmul.f32 1.442695, %v1487_v59 }
 0x3b4   : > { %2138 = vpow2.f32 %v1488_v60 }
 0x3be   : > { %v2139_v61 = vpop.eup %2138 }
 0x3bf   : > { %1490 = vadd.xlane.f32.xlu1 %v2139_v61 }
 0x3cf   : > { %v1608_v62 = vpop.xlane.xlu0 %1607 }
 0x3d0   : > { %v1609_v63 = vsub.f32 %v1602_v55, %v1608_v62 }
 0x3d2   : > { %v1610_v0 = vmul.f32 1.442695, %v1609_v63 }
 0x3d4   : > { %2140 = vpow2.f32 %v1610_v0 }
 0x3de   : > { %v2141_v1 = vpop.eup %2140 }
 0x3df   : > { %1612 = vadd.xlane.f32.xlu1 %v2141_v1 }
 0x44c   : > { %v1491_v2 = vpop.xlane.xlu1 %1490 }
 0x44d   : > { %2142 = vlog2.f32 %v1491_v2 }
 0x457   : > { %v2143_v3 = vpop.eup %2142 }
 0x458   : > { %v1493_v4 = vmul.f32 0.6931472, %v2143_v3 }
 0x45a   : > { %v1494_v5 = vsub.f32 %v1487_v59, %v1493_v4 }
 0x45c   : > { %1495 = vst [vmem:[%s418_s30] sm:$0xff] %v1494_v5 }
 0x46c   : > { %v1613_v6 = vpop.xlane.xlu1 %1612 }
 0x46d   : > { %2144 = vlog2.f32 %v1613_v6 }
 0x477   : > { %v2145_v7 = vpop.eup %2144 }
 0x478   : > { %v1615_v8 = vmul.f32 0.6931472, %v2145_v7 }
 0x47a   : > { %v1616_v9 = vsub.f32 %v1609_v63, %v1615_v8 }
 0x47c   : > { %1617 = vst [vmem:[%s422_s15] sm:$0xff] %v1616_v9 }
 0x47d PF: > { %s23_s21 = sadd.s32 1, %s2152_s21  }
 0x47e   : > { %p20_p4 = scmp.ge.s32.totalorder %s23_s21, 4  }
 0x480   :  { %22 = sbr.rel (!%p20_p4) target bundleno = 1 (0x1), region = 106 }

</bundles_post_ra>
